<compile_context>
chip_gen: v7x
topology: tpu7x:2x2x1
jax: 0.10.0
libtpu: 0.0.40
codegen_flags: <defaults>
</compile_context>

<pallas_src>
import jax
import jax.numpy as jnp
from jax.experimental import pallas as pl
from jax.experimental.pallas import tpu as pltpu

# ----------------------------- hyper-params ---------------------------------
BATCH = 2
SEQ_LEN = 8
D_MODEL = 32
N_HEADS = 4
D_K = D_MODEL // N_HEADS
D_FF = 64
N_LAYERS = 2
D_HIDDEN = 64
D_OUT = 1
LN_EPS = 1e-5


# ----------------------------- small helpers --------------------------------
def _layernorm(x, g, b):
    mu = jnp.mean(x, axis=-1, keepdims=True)
    var = jnp.mean(jnp.square(x - mu), axis=-1, keepdims=True)
    return (x - mu) * jax.lax.rsqrt(var + LN_EPS) * g + b


def _fullspec(shape):
    zeros = (0,) * len(shape)
    return pl.BlockSpec(shape, lambda i, _z=zeros: _z)


# ----------------------------- fused Pallas kernel ---------------------------
def _td_forward_kernel(
    x_ref, pe_ref,
    wqkv_ref, bqkv_ref, wo_ref, bo_ref,
    ln1g_ref, ln1b_ref,
    w1_ref, b1_ref, w2_ref, b2_ref,
    ln2g_ref, ln2b_ref,
    dw1_ref, db1_ref, dw2_ref, db2_ref,
    o_ref,
):
    f32 = jnp.float32
    x = x_ref[...] + pe_ref[...]                       # (B*S, D)
    scale = 1.0 / (D_K ** 0.5)

    for l in range(N_LAYERS):                          # static unroll (2 layers)
        # ---- fused QKV projection: one lane-dense (B*S, 3*D) matmul --------
        qkv = jnp.dot(x, wqkv_ref[l], preferred_element_type=f32) + bqkv_ref[l]
        q3 = qkv[:, 0 * D_MODEL:1 * D_MODEL].reshape(BATCH, SEQ_LEN, D_MODEL)
        k3 = qkv[:, 1 * D_MODEL:2 * D_MODEL].reshape(BATCH, SEQ_LEN, D_MODEL)
        v3 = qkv[:, 2 * D_MODEL:3 * D_MODEL].reshape(BATCH, SEQ_LEN, D_MODEL)

        # ---- multi-head attention: static head loop, batched over B --------
        head_outs = []
        for h in range(N_HEADS):
            sl = slice(h * D_K, (h + 1) * D_K)
            qh, kh, vh = q3[:, :, sl], k3[:, :, sl], v3[:, :, sl]  # (B, S, dk)
            scores = jnp.einsum("bqd,bkd->bqk", qh, kh,
                                preferred_element_type=f32) * scale  # (B, S, S)
            scores = scores - jnp.max(scores, axis=-1, keepdims=True)
            p = jnp.exp(scores)
            p = p * pl.reciprocal(jnp.sum(p, axis=-1, keepdims=True), approx=True)
            head_outs.append(jnp.einsum("bqk,bkd->bqd", p, vh,
                                        preferred_element_type=f32))
        attn = jnp.concatenate(head_outs, axis=-1)      # (B, S, D)
        attn = attn.reshape(BATCH * SEQ_LEN, D_MODEL)

        attn_out = jnp.dot(attn, wo_ref[l], preferred_element_type=f32) + bo_ref[l]
        x = _layernorm(x + attn_out, ln1g_ref[l], ln1b_ref[l])

        # ---- FFN ------------------------------------------------------------
        hidden = jnp.maximum(
            jnp.dot(x, w1_ref[l], preferred_element_type=f32) + b1_ref[l], 0.0)
        ffn_out = jnp.dot(hidden, w2_ref[l], preferred_element_type=f32) + b2_ref[l]
        x = _layernorm(x + ffn_out, ln2g_ref[l], ln2b_ref[l])

    # ---- DNN head: flatten(B, S*D) @ W1  ==  sum_s x3[:, s, :] @ W1[s] ------
    # (avoids a lane-merging (16,32)->(2,256) reshape; stays lane-dense)
    x3 = x.reshape(BATCH, SEQ_LEN, D_MODEL)
    acc = jnp.zeros((BATCH, D_HIDDEN), f32)
    for s in range(SEQ_LEN):
        acc = acc + jnp.dot(x3[:, s, :], dw1_ref[s], preferred_element_type=f32)
    hdn = jnp.maximum(acc + db1_ref[...], 0.0)
    # Dropout is identity in eval mode.
    out = jnp.dot(hdn, dw2_ref[...], preferred_element_type=f32) + db2_ref[...]
    o_ref[...] = out.astype(o_ref.dtype)


# ----------------------------- model forward ---------------------------------
def td_model_forward(params, enc_inputs, pe_tiled):
    """enc_inputs: (B, S, D_MODEL) float32 -> (B, D_OUT)."""
    B, S, D = enc_inputs.shape
    # TODO(synk): the original Transformer()'s input embedding is undefined in
    # the snippet; enc_inputs are assumed to already be d_model-dim features.
    x2d = enc_inputs.reshape(B * S, D)

    args = [
        x2d, pe_tiled,
        params["wqkv"], params["bqkv"], params["wo"], params["bo"],
        params["ln1_g"], params["ln1_b"],
        params["w1"], params["b1"], params["w2"], params["b2"],
        params["ln2_g"], params["ln2_b"],
        params["dnn_w1"], params["dnn_b1"], params["dnn_w2"], params["dnn_b2"],
    ]
    return pl.pallas_call(
        _td_forward_kernel,
        out_shape=jax.ShapeDtypeStruct((B, D_OUT), jnp.float32),
        grid=(1,),
        in_specs=[_fullspec(a.shape) for a in args],
        out_specs=_fullspec((B, D_OUT)),
        compiler_params=pltpu.CompilerParams(
            dimension_semantics=("arbitrary",)),
    )(*args)


# ----------------------------- parameters ------------------------------------
def init_params(key):
    def dense(k, fan_in, fan_out):
        w = jax.random.normal(k, (fan_in, fan_out), jnp.float32) * (fan_in ** -0.5)
        b = jnp.zeros((fan_out,), jnp.float32)
        return w, b

    keys = jax.random.split(key, N_LAYERS * 6 + 2)
    ki = 0
    wqkv, bqkv, wo, bo = [], [], [], []
    w1, b1, w2, b2 = [], [], [], []
    ln1g, ln1b, ln2g, ln2b = [], [], [], []
    for _ in range(N_LAYERS):
        wq, bq = dense(keys[ki], D_MODEL, D_MODEL); ki += 1
        wk, bk = dense(keys[ki], D_MODEL, D_MODEL); ki += 1
        wv, bv = dense(keys[ki], D_MODEL, D_MODEL); ki += 1
        wqkv.append(jnp.concatenate([wq, wk, wv], axis=1))       # (D, 3D)
        bqkv.append(jnp.concatenate([bq, bk, bv])[None, :])      # (1, 3D)
        w, b = dense(keys[ki], D_MODEL, D_MODEL); ki += 1
        wo.append(w); bo.append(b[None, :])
        w, b = dense(keys[ki], D_MODEL, D_FF); ki += 1
        w1.append(w); b1.append(b[None, :])
        w, b = dense(keys[ki], D_FF, D_MODEL); ki += 1
        w2.append(w); b2.append(b[None, :])
        ln1g.append(jnp.ones((1, D_MODEL), jnp.float32))
        ln1b.append(jnp.zeros((1, D_MODEL), jnp.float32))
        ln2g.append(jnp.ones((1, D_MODEL), jnp.float32))
        ln2b.append(jnp.zeros((1, D_MODEL), jnp.float32))
    dw1, db1 = dense(keys[ki], SEQ_LEN * D_MODEL, D_HIDDEN); ki += 1
    dw2, db2 = dense(keys[ki], D_HIDDEN, D_OUT); ki += 1

    return {
        "wqkv": jnp.stack(wqkv), "bqkv": jnp.stack(bqkv),
        "wo": jnp.stack(wo), "bo": jnp.stack(bo),
        "ln1_g": jnp.stack(ln1g), "ln1_b": jnp.stack(ln1b),
        "w1": jnp.stack(w1), "b1": jnp.stack(b1),
        "w2": jnp.stack(w2), "b2": jnp.stack(b2),
        "ln2_g": jnp.stack(ln2g), "ln2_b": jnp.stack(ln2b),
        # pre-reshaped so the kernel can index per-sequence-position slabs
        "dnn_w1": dw1.reshape(SEQ_LEN, D_MODEL, D_HIDDEN),
        "dnn_b1": db1[None, :],
        "dnn_w2": dw2,
        "dnn_b2": db2[None, :],
    }


def sinusoidal_pos_encoding(seq_len, d_model):
    pos = jnp.arange(seq_len, dtype=jnp.float32)[:, None]
    i = jnp.arange(d_model, dtype=jnp.float32)[None, :]
    angle = pos / jnp.power(10000.0, (2.0 * jnp.floor(i / 2.0)) / d_model)
    return jnp.where((jnp.arange(d_model) % 2) == 0, jnp.sin(angle), jnp.cos(angle))


# ----------------------------- driver ----------------------------------------
if __name__ == "__main__":
    key = jax.random.PRNGKey(0)
    k_param, k_input = jax.random.split(key)
    params = init_params(k_param)
    enc_inputs = jax.random.normal(k_input, (BATCH, SEQ_LEN, D_MODEL), jnp.float32)
    # Precompute PE once outside jit; tiled to (B*S, D) so the kernel just adds it.
    pe_tiled = jnp.tile(sinusoidal_pos_encoding(SEQ_LEN, D_MODEL), (BATCH, 1))

    out = jax.jit(td_model_forward)(params, enc_inputs, pe_tiled)
    out = jax.block_until_ready(out)
    assert out.shape == (BATCH, D_OUT), out.shape
    print("KERNEL_OK")
</pallas_src>

<mosaic_0001>
module attributes {stable_mosaic.version = 11 : i64} {
  func.func @_td_forward_kernel(%arg0: i32, %arg1: memref<16x32xf32, #tpu.memory_space<vmem>>, %arg2: memref<16x32xf32, #tpu.memory_space<vmem>>, %arg3: memref<2x32x96xf32, #tpu.memory_space<vmem>>, %arg4: memref<2x1x96xf32, #tpu.memory_space<vmem>>, %arg5: memref<2x32x32xf32, #tpu.memory_space<vmem>>, %arg6: memref<2x1x32xf32, #tpu.memory_space<vmem>>, %arg7: memref<2x1x32xf32, #tpu.memory_space<vmem>>, %arg8: memref<2x1x32xf32, #tpu.memory_space<vmem>>, %arg9: memref<2x32x64xf32, #tpu.memory_space<vmem>>, %arg10: memref<2x1x64xf32, #tpu.memory_space<vmem>>, %arg11: memref<2x64x32xf32, #tpu.memory_space<vmem>>, %arg12: memref<2x1x32xf32, #tpu.memory_space<vmem>>, %arg13: memref<2x1x32xf32, #tpu.memory_space<vmem>>, %arg14: memref<2x1x32xf32, #tpu.memory_space<vmem>>, %arg15: memref<8x32x64xf32, #tpu.memory_space<vmem>>, %arg16: memref<1x64xf32, #tpu.memory_space<vmem>>, %arg17: memref<64x1xf32, #tpu.memory_space<vmem>>, %arg18: memref<1x1xf32, #tpu.memory_space<vmem>>, %arg19: memref<2x1xf32, #tpu.memory_space<vmem>>) attributes {dimension_semantics = [#tpu.dimension_semantics<arbitrary>], iteration_bounds = array<i64: 1>, scalar_prefetch = 0 : i64, scratch_operands = 0 : i64, tpu.core_type = #tpu.core_type<tc>, window_params = [{pipeline_mode = #tpu.pipeline_mode<synchronous>, transform_indices = @transform_0, window_bounds = array<i64: 16, 32>}, {pipeline_mode = #tpu.pipeline_mode<synchronous>, transform_indices = @transform_1, window_bounds = array<i64: 16, 32>}, {pipeline_mode = #tpu.pipeline_mode<synchronous>, transform_indices = @transform_2, window_bounds = array<i64: 2, 32, 96>}, {pipeline_mode = #tpu.pipeline_mode<synchronous>, transform_indices = @transform_3, window_bounds = array<i64: 2, 1, 96>}, {pipeline_mode = #tpu.pipeline_mode<synchronous>, transform_indices = @transform_4, window_bounds = array<i64: 2, 32, 32>}, {pipeline_mode = #tpu.pipeline_mode<synchronous>, transform_indices = @transform_5, window_bounds = array<i64: 2, 1, 32>}, {pipeline_mode = #tpu.pipeline_mode<synchronous>, transform_indices = @transform_6, window_bounds = array<i64: 2, 1, 32>}, {pipeline_mode = #tpu.pipeline_mode<synchronous>, transform_indices = @transform_7, window_bounds = array<i64: 2, 1, 32>}, {pipeline_mode = #tpu.pipeline_mode<synchronous>, transform_indices = @transform_8, window_bounds = array<i64: 2, 32, 64>}, {pipeline_mode = #tpu.pipeline_mode<synchronous>, transform_indices = @transform_9, window_bounds = array<i64: 2, 1, 64>}, {pipeline_mode = #tpu.pipeline_mode<synchronous>, transform_indices = @transform_10, window_bounds = array<i64: 2, 64, 32>}, {pipeline_mode = #tpu.pipeline_mode<synchronous>, transform_indices = @transform_11, window_bounds = array<i64: 2, 1, 32>}, {pipeline_mode = #tpu.pipeline_mode<synchronous>, transform_indices = @transform_12, window_bounds = array<i64: 2, 1, 32>}, {pipeline_mode = #tpu.pipeline_mode<synchronous>, transform_indices = @transform_13, window_bounds = array<i64: 2, 1, 32>}, {pipeline_mode = #tpu.pipeline_mode<synchronous>, transform_indices = @transform_14, window_bounds = array<i64: 8, 32, 64>}, {pipeline_mode = #tpu.pipeline_mode<synchronous>, transform_indices = @transform_15, window_bounds = array<i64: 1, 64>}, {pipeline_mode = #tpu.pipeline_mode<synchronous>, transform_indices = @transform_16, window_bounds = array<i64: 64, 1>}, {pipeline_mode = #tpu.pipeline_mode<synchronous>, transform_indices = @transform_17, window_bounds = array<i64: 1, 1>}, {pipeline_mode = #tpu.pipeline_mode<synchronous>, transform_indices = @transform_18, window_bounds = array<i64: 2, 1>}]} {
    %c0 = arith.constant 0 : index
    %c0_0 = arith.constant 0 : index
    %0 = vector.load %arg1[%c0, %c0_0] : memref<16x32xf32, #tpu.memory_space<vmem>>, vector<16x32xf32>
    %c0_1 = arith.constant 0 : index
    %c0_2 = arith.constant 0 : index
    %1 = vector.load %arg2[%c0_1, %c0_2] : memref<16x32xf32, #tpu.memory_space<vmem>>, vector<16x32xf32>
    %2 = arith.addf %0, %1 : vector<16x32xf32>
    %c0_3 = arith.constant 0 : index
    %c0_4 = arith.constant 0 : index
    %c0_5 = arith.constant 0 : index
    %3 = vector.load %arg3[%c0_3, %c0_4, %c0_5] : memref<2x32x96xf32, #tpu.memory_space<vmem>>, vector<1x32x96xf32>
    %4 = vector.shape_cast %3 : vector<1x32x96xf32> to vector<32x96xf32>
    %cst = arith.constant dense<0.000000e+00> : vector<16x96xf32>
    %5 = tpu.matmul %2, %4, %cst {dimension_numbers = #tpu.dot_dimension_numbers<[1], [0], [0], [1], [0, 0, 1, 1], [], []>} : vector<16x32xf32>, vector<32x96xf32>, vector<16x96xf32> -> vector<16x96xf32>
    %c0_6 = arith.constant 0 : index
    %c0_7 = arith.constant 0 : index
    %c0_8 = arith.constant 0 : index
    %6 = vector.load %arg4[%c0_6, %c0_7, %c0_8] : memref<2x1x96xf32, #tpu.memory_space<vmem>>, vector<1x1x96xf32>
    %7 = vector.shape_cast %6 : vector<1x1x96xf32> to vector<1x96xf32>
    %8 = vector.broadcast %7 : vector<1x96xf32> to vector<16x96xf32>
    %9 = arith.addf %5, %8 : vector<16x96xf32>
    %10 = vector.extract_strided_slice %9 {offsets = [0, 0], sizes = [16, 32], strides = [1, 1]} : vector<16x96xf32> to vector<16x32xf32>
    %11 = vector.shape_cast %10 : vector<16x32xf32> to vector<2x8x32xf32>
    %12 = vector.extract_strided_slice %9 {offsets = [0, 32], sizes = [16, 32], strides = [1, 1]} : vector<16x96xf32> to vector<16x32xf32>
    %13 = vector.shape_cast %12 : vector<16x32xf32> to vector<2x8x32xf32>
    %14 = vector.extract_strided_slice %9 {offsets = [0, 64], sizes = [16, 32], strides = [1, 1]} : vector<16x96xf32> to vector<16x32xf32>
    %15 = vector.shape_cast %14 : vector<16x32xf32> to vector<2x8x32xf32>
    %16 = vector.extract_strided_slice %11 {offsets = [0, 0, 0], sizes = [2, 8, 8], strides = [1, 1, 1]} : vector<2x8x32xf32> to vector<2x8x8xf32>
    %17 = vector.extract_strided_slice %13 {offsets = [0, 0, 0], sizes = [2, 8, 8], strides = [1, 1, 1]} : vector<2x8x32xf32> to vector<2x8x8xf32>
    %18 = vector.extract_strided_slice %15 {offsets = [0, 0, 0], sizes = [2, 8, 8], strides = [1, 1, 1]} : vector<2x8x32xf32> to vector<2x8x8xf32>
    "tpu.trace_start"() <{level = 10 : i32, message = "bqd,bkd->bqk"}> : () -> ()
    %cst_9 = arith.constant dense<0.000000e+00> : vector<2x8x8xf32>
    %19 = tpu.matmul %16, %17, %cst_9 {dimension_numbers = #tpu.dot_dimension_numbers<[2], [2], [1], [1], [0, 0, 0, 1, 1, 1], [0], [0]>} : vector<2x8x8xf32>, vector<2x8x8xf32>, vector<2x8x8xf32> -> vector<2x8x8xf32>
    "tpu.trace_stop"() : () -> ()
    %cst_10 = arith.constant 0.353553385 : f32
    %20 = vector.broadcast %cst_10 : f32 to vector<2x8x8xf32>
    %21 = arith.mulf %19, %20 : vector<2x8x8xf32>
    %cst_11 = arith.constant dense<0xFF800000> : vector<2x8xf32>
    %22 = vector.multi_reduction <maximumf>, %21, %cst_11 [2] : vector<2x8x8xf32> to vector<2x8xf32>
    %23 = vector.shape_cast %22 : vector<2x8xf32> to vector<2x8x1xf32>
    %24 = vector.broadcast %23 : vector<2x8x1xf32> to vector<2x8x8xf32>
    %25 = arith.subf %21, %24 : vector<2x8x8xf32>
    %26 = math.exp %25 : vector<2x8x8xf32>
    %cst_12 = arith.constant dense<0.000000e+00> : vector<2x8xf32>
    %27 = vector.multi_reduction <add>, %26, %cst_12 [2] : vector<2x8x8xf32> to vector<2x8xf32>
    %28 = vector.shape_cast %27 : vector<2x8xf32> to vector<2x8x1xf32>
    %29 = tpu.reciprocal %28 {approx = true} : vector<2x8x1xf32> -> vector<2x8x1xf32>
    %30 = vector.broadcast %29 : vector<2x8x1xf32> to vector<2x8x8xf32>
    %31 = arith.mulf %26, %30 : vector<2x8x8xf32>
    "tpu.trace_start"() <{level = 10 : i32, message = "bqk,bkd->bqd"}> : () -> ()
    %cst_13 = arith.constant dense<0.000000e+00> : vector<2x8x8xf32>
    %32 = tpu.matmul %31, %18, %cst_13 {dimension_numbers = #tpu.dot_dimension_numbers<[2], [1], [1], [2], [0, 0, 0, 1, 1, 2], [0], [0]>} : vector<2x8x8xf32>, vector<2x8x8xf32>, vector<2x8x8xf32> -> vector<2x8x8xf32>
    "tpu.trace_stop"() : () -> ()
    %33 = vector.extract_strided_slice %11 {offsets = [0, 0, 8], sizes = [2, 8, 8], strides = [1, 1, 1]} : vector<2x8x32xf32> to vector<2x8x8xf32>
    %34 = vector.extract_strided_slice %13 {offsets = [0, 0, 8], sizes = [2, 8, 8], strides = [1, 1, 1]} : vector<2x8x32xf32> to vector<2x8x8xf32>
    %35 = vector.extract_strided_slice %15 {offsets = [0, 0, 8], sizes = [2, 8, 8], strides = [1, 1, 1]} : vector<2x8x32xf32> to vector<2x8x8xf32>
    "tpu.trace_start"() <{level = 10 : i32, message = "bqd,bkd->bqk"}> : () -> ()
    %cst_14 = arith.constant dense<0.000000e+00> : vector<2x8x8xf32>
    %36 = tpu.matmul %33, %34, %cst_14 {dimension_numbers = #tpu.dot_dimension_numbers<[2], [2], [1], [1], [0, 0, 0, 1, 1, 1], [0], [0]>} : vector<2x8x8xf32>, vector<2x8x8xf32>, vector<2x8x8xf32> -> vector<2x8x8xf32>
    "tpu.trace_stop"() : () -> ()
    %cst_15 = arith.constant 0.353553385 : f32
    %37 = vector.broadcast %cst_15 : f32 to vector<2x8x8xf32>
    %38 = arith.mulf %36, %37 : vector<2x8x8xf32>
    %cst_16 = arith.constant dense<0xFF800000> : vector<2x8xf32>
    %39 = vector.multi_reduction <maximumf>, %38, %cst_16 [2] : vector<2x8x8xf32> to vector<2x8xf32>
    %40 = vector.shape_cast %39 : vector<2x8xf32> to vector<2x8x1xf32>
    %41 = vector.broadcast %40 : vector<2x8x1xf32> to vector<2x8x8xf32>
    %42 = arith.subf %38, %41 : vector<2x8x8xf32>
    %43 = math.exp %42 : vector<2x8x8xf32>
    %cst_17 = arith.constant dense<0.000000e+00> : vector<2x8xf32>
    %44 = vector.multi_reduction <add>, %43, %cst_17 [2] : vector<2x8x8xf32> to vector<2x8xf32>
    %45 = vector.shape_cast %44 : vector<2x8xf32> to vector<2x8x1xf32>
    %46 = tpu.reciprocal %45 {approx = true} : vector<2x8x1xf32> -> vector<2x8x1xf32>
    %47 = vector.broadcast %46 : vector<2x8x1xf32> to vector<2x8x8xf32>
    %48 = arith.mulf %43, %47 : vector<2x8x8xf32>
    "tpu.trace_start"() <{level = 10 : i32, message = "bqk,bkd->bqd"}> : () -> ()
    %cst_18 = arith.constant dense<0.000000e+00> : vector<2x8x8xf32>
    %49 = tpu.matmul %48, %35, %cst_18 {dimension_numbers = #tpu.dot_dimension_numbers<[2], [1], [1], [2], [0, 0, 0, 1, 1, 2], [0], [0]>} : vector<2x8x8xf32>, vector<2x8x8xf32>, vector<2x8x8xf32> -> vector<2x8x8xf32>
    "tpu.trace_stop"() : () -> ()
    %50 = vector.extract_strided_slice %11 {offsets = [0, 0, 16], sizes = [2, 8, 8], strides = [1, 1, 1]} : vector<2x8x32xf32> to vector<2x8x8xf32>
    %51 = vector.extract_strided_slice %13 {offsets = [0, 0, 16], sizes = [2, 8, 8], strides = [1, 1, 1]} : vector<2x8x32xf32> to vector<2x8x8xf32>
    %52 = vector.extract_strided_slice %15 {offsets = [0, 0, 16], sizes = [2, 8, 8], strides = [1, 1, 1]} : vector<2x8x32xf32> to vector<2x8x8xf32>
    "tpu.trace_start"() <{level = 10 : i32, message = "bqd,bkd->bqk"}> : () -> ()
    %cst_19 = arith.constant dense<0.000000e+00> : vector<2x8x8xf32>
    %53 = tpu.matmul %50, %51, %cst_19 {dimension_numbers = #tpu.dot_dimension_numbers<[2], [2], [1], [1], [0, 0, 0, 1, 1, 1], [0], [0]>} : vector<2x8x8xf32>, vector<2x8x8xf32>, vector<2x8x8xf32> -> vector<2x8x8xf32>
    "tpu.trace_stop"() : () -> ()
    %cst_20 = arith.constant 0.353553385 : f32
    %54 = vector.broadcast %cst_20 : f32 to vector<2x8x8xf32>
    %55 = arith.mulf %53, %54 : vector<2x8x8xf32>
    %cst_21 = arith.constant dense<0xFF800000> : vector<2x8xf32>
    %56 = vector.multi_reduction <maximumf>, %55, %cst_21 [2] : vector<2x8x8xf32> to vector<2x8xf32>
    %57 = vector.shape_cast %56 : vector<2x8xf32> to vector<2x8x1xf32>
    %58 = vector.broadcast %57 : vector<2x8x1xf32> to vector<2x8x8xf32>
    %59 = arith.subf %55, %58 : vector<2x8x8xf32>
    %60 = math.exp %59 : vector<2x8x8xf32>
    %cst_22 = arith.constant dense<0.000000e+00> : vector<2x8xf32>
    %61 = vector.multi_reduction <add>, %60, %cst_22 [2] : vector<2x8x8xf32> to vector<2x8xf32>
    %62 = vector.shape_cast %61 : vector<2x8xf32> to vector<2x8x1xf32>
    %63 = tpu.reciprocal %62 {approx = true} : vector<2x8x1xf32> -> vector<2x8x1xf32>
    %64 = vector.broadcast %63 : vector<2x8x1xf32> to vector<2x8x8xf32>
    %65 = arith.mulf %60, %64 : vector<2x8x8xf32>
    "tpu.trace_start"() <{level = 10 : i32, message = "bqk,bkd->bqd"}> : () -> ()
    %cst_23 = arith.constant dense<0.000000e+00> : vector<2x8x8xf32>
    %66 = tpu.matmul %65, %52, %cst_23 {dimension_numbers = #tpu.dot_dimension_numbers<[2], [1], [1], [2], [0, 0, 0, 1, 1, 2], [0], [0]>} : vector<2x8x8xf32>, vector<2x8x8xf32>, vector<2x8x8xf32> -> vector<2x8x8xf32>
    "tpu.trace_stop"() : () -> ()
    %67 = vector.extract_strided_slice %11 {offsets = [0, 0, 24], sizes = [2, 8, 8], strides = [1, 1, 1]} : vector<2x8x32xf32> to vector<2x8x8xf32>
    %68 = vector.extract_strided_slice %13 {offsets = [0, 0, 24], sizes = [2, 8, 8], strides = [1, 1, 1]} : vector<2x8x32xf32> to vector<2x8x8xf32>
    %69 = vector.extract_strided_slice %15 {offsets = [0, 0, 24], sizes = [2, 8, 8], strides = [1, 1, 1]} : vector<2x8x32xf32> to vector<2x8x8xf32>
    "tpu.trace_start"() <{level = 10 : i32, message = "bqd,bkd->bqk"}> : () -> ()
    %cst_24 = arith.constant dense<0.000000e+00> : vector<2x8x8xf32>
    %70 = tpu.matmul %67, %68, %cst_24 {dimension_numbers = #tpu.dot_dimension_numbers<[2], [2], [1], [1], [0, 0, 0, 1, 1, 1], [0], [0]>} : vector<2x8x8xf32>, vector<2x8x8xf32>, vector<2x8x8xf32> -> vector<2x8x8xf32>
    "tpu.trace_stop"() : () -> ()
    %cst_25 = arith.constant 0.353553385 : f32
    %71 = vector.broadcast %cst_25 : f32 to vector<2x8x8xf32>
    %72 = arith.mulf %70, %71 : vector<2x8x8xf32>
    %cst_26 = arith.constant dense<0xFF800000> : vector<2x8xf32>
    %73 = vector.multi_reduction <maximumf>, %72, %cst_26 [2] : vector<2x8x8xf32> to vector<2x8xf32>
    %74 = vector.shape_cast %73 : vector<2x8xf32> to vector<2x8x1xf32>
    %75 = vector.broadcast %74 : vector<2x8x1xf32> to vector<2x8x8xf32>
    %76 = arith.subf %72, %75 : vector<2x8x8xf32>
    %77 = math.exp %76 : vector<2x8x8xf32>
    %cst_27 = arith.constant dense<0.000000e+00> : vector<2x8xf32>
    %78 = vector.multi_reduction <add>, %77, %cst_27 [2] : vector<2x8x8xf32> to vector<2x8xf32>
    %79 = vector.shape_cast %78 : vector<2x8xf32> to vector<2x8x1xf32>
    %80 = tpu.reciprocal %79 {approx = true} : vector<2x8x1xf32> -> vector<2x8x1xf32>
    %81 = vector.broadcast %80 : vector<2x8x1xf32> to vector<2x8x8xf32>
    %82 = arith.mulf %77, %81 : vector<2x8x8xf32>
    "tpu.trace_start"() <{level = 10 : i32, message = "bqk,bkd->bqd"}> : () -> ()
    %cst_28 = arith.constant dense<0.000000e+00> : vector<2x8x8xf32>
    %83 = tpu.matmul %82, %69, %cst_28 {dimension_numbers = #tpu.dot_dimension_numbers<[2], [1], [1], [2], [0, 0, 0, 1, 1, 2], [0], [0]>} : vector<2x8x8xf32>, vector<2x8x8xf32>, vector<2x8x8xf32> -> vector<2x8x8xf32>
    "tpu.trace_stop"() : () -> ()
    %84 = tpu.concatenate %32, %49, %66, %83 in 2 : vector<2x8x8xf32>, vector<2x8x8xf32>, vector<2x8x8xf32>, vector<2x8x8xf32> -> vector<2x8x32xf32>
    %85 = vector.shape_cast %84 : vector<2x8x32xf32> to vector<16x32xf32>
    %c0_29 = arith.constant 0 : index
    %c0_30 = arith.constant 0 : index
    %c0_31 = arith.constant 0 : index
    %86 = vector.load %arg5[%c0_29, %c0_30, %c0_31] : memref<2x32x32xf32, #tpu.memory_space<vmem>>, vector<1x32x32xf32>
    %87 = vector.shape_cast %86 : vector<1x32x32xf32> to vector<32x32xf32>
    %cst_32 = arith.constant dense<0.000000e+00> : vector<16x32xf32>
    %88 = tpu.matmul %85, %87, %cst_32 {dimension_numbers = #tpu.dot_dimension_numbers<[1], [0], [0], [1], [0, 0, 1, 1], [], []>} : vector<16x32xf32>, vector<32x32xf32>, vector<16x32xf32> -> vector<16x32xf32>
    %c0_33 = arith.constant 0 : index
    %c0_34 = arith.constant 0 : index
    %c0_35 = arith.constant 0 : index
    %89 = vector.load %arg6[%c0_33, %c0_34, %c0_35] : memref<2x1x32xf32, #tpu.memory_space<vmem>>, vector<1x1x32xf32>
    %90 = vector.shape_cast %89 : vector<1x1x32xf32> to vector<1x32xf32>
    %91 = vector.broadcast %90 : vector<1x32xf32> to vector<16x32xf32>
    %92 = arith.addf %88, %91 : vector<16x32xf32>
    %93 = arith.addf %2, %92 : vector<16x32xf32>
    %c0_36 = arith.constant 0 : index
    %c0_37 = arith.constant 0 : index
    %c0_38 = arith.constant 0 : index
    %94 = vector.load %arg7[%c0_36, %c0_37, %c0_38] : memref<2x1x32xf32, #tpu.memory_space<vmem>>, vector<1x1x32xf32>
    %95 = vector.shape_cast %94 : vector<1x1x32xf32> to vector<1x32xf32>
    %c0_39 = arith.constant 0 : index
    %c0_40 = arith.constant 0 : index
    %c0_41 = arith.constant 0 : index
    %96 = vector.load %arg8[%c0_39, %c0_40, %c0_41] : memref<2x1x32xf32, #tpu.memory_space<vmem>>, vector<1x1x32xf32>
    %97 = vector.shape_cast %96 : vector<1x1x32xf32> to vector<1x32xf32>
    %cst_42 = arith.constant dense<0.000000e+00> : vector<16xf32>
    %98 = vector.multi_reduction <add>, %93, %cst_42 [1] : vector<16x32xf32> to vector<16xf32>
    %99 = vector.shape_cast %98 : vector<16xf32> to vector<16x1xf32>
    %cst_43 = arith.constant 3.200000e+01 : f32
    %100 = vector.broadcast %cst_43 : f32 to vector<16x1xf32>
    %101 = arith.divf %99, %100 : vector<16x1xf32>
    %102 = vector.broadcast %101 : vector<16x1xf32> to vector<16x32xf32>
    %103 = arith.subf %93, %102 : vector<16x32xf32>
    %104 = arith.mulf %103, %103 : vector<16x32xf32>
    %cst_44 = arith.constant dense<0.000000e+00> : vector<16xf32>
    %105 = vector.multi_reduction <add>, %104, %cst_44 [1] : vector<16x32xf32> to vector<16xf32>
    %106 = vector.shape_cast %105 : vector<16xf32> to vector<16x1xf32>
    %cst_45 = arith.constant 3.200000e+01 : f32
    %107 = vector.broadcast %cst_45 : f32 to vector<16x1xf32>
    %108 = arith.divf %106, %107 : vector<16x1xf32>
    %109 = vector.broadcast %101 : vector<16x1xf32> to vector<16x32xf32>
    %110 = arith.subf %93, %109 : vector<16x32xf32>
    %cst_46 = arith.constant 9.99999974E-6 : f32
    %111 = vector.broadcast %cst_46 : f32 to vector<16x1xf32>
    %112 = arith.addf %108, %111 : vector<16x1xf32>
    %113 = math.rsqrt %112 : vector<16x1xf32>
    %114 = vector.broadcast %113 : vector<16x1xf32> to vector<16x32xf32>
    %115 = arith.mulf %110, %114 : vector<16x32xf32>
    %116 = vector.broadcast %95 : vector<1x32xf32> to vector<16x32xf32>
    %117 = arith.mulf %115, %116 : vector<16x32xf32>
    %118 = vector.broadcast %97 : vector<1x32xf32> to vector<16x32xf32>
    %119 = arith.addf %117, %118 : vector<16x32xf32>
    %c0_47 = arith.constant 0 : index
    %c0_48 = arith.constant 0 : index
    %c0_49 = arith.constant 0 : index
    %120 = vector.load %arg9[%c0_47, %c0_48, %c0_49] : memref<2x32x64xf32, #tpu.memory_space<vmem>>, vector<1x32x64xf32>
    %121 = vector.shape_cast %120 : vector<1x32x64xf32> to vector<32x64xf32>
    %cst_50 = arith.constant dense<0.000000e+00> : vector<16x64xf32>
    %122 = tpu.matmul %119, %121, %cst_50 {dimension_numbers = #tpu.dot_dimension_numbers<[1], [0], [0], [1], [0, 0, 1, 1], [], []>} : vector<16x32xf32>, vector<32x64xf32>, vector<16x64xf32> -> vector<16x64xf32>
    %c0_51 = arith.constant 0 : index
    %c0_52 = arith.constant 0 : index
    %c0_53 = arith.constant 0 : index
    %123 = vector.load %arg10[%c0_51, %c0_52, %c0_53] : memref<2x1x64xf32, #tpu.memory_space<vmem>>, vector<1x1x64xf32>
    %124 = vector.shape_cast %123 : vector<1x1x64xf32> to vector<1x64xf32>
    %125 = vector.broadcast %124 : vector<1x64xf32> to vector<16x64xf32>
    %126 = arith.addf %122, %125 : vector<16x64xf32>
    %cst_54 = arith.constant 0.000000e+00 : f32
    %127 = vector.broadcast %cst_54 : f32 to vector<16x64xf32>
    %128 = arith.maximumf %126, %127 : vector<16x64xf32>
    %c0_55 = arith.constant 0 : index
    %c0_56 = arith.constant 0 : index
    %c0_57 = arith.constant 0 : index
    %129 = vector.load %arg11[%c0_55, %c0_56, %c0_57] : memref<2x64x32xf32, #tpu.memory_space<vmem>>, vector<1x64x32xf32>
    %130 = vector.shape_cast %129 : vector<1x64x32xf32> to vector<64x32xf32>
    %cst_58 = arith.constant dense<0.000000e+00> : vector<16x32xf32>
    %131 = tpu.matmul %128, %130, %cst_58 {dimension_numbers = #tpu.dot_dimension_numbers<[1], [0], [0], [1], [0, 0, 1, 1], [], []>} : vector<16x64xf32>, vector<64x32xf32>, vector<16x32xf32> -> vector<16x32xf32>
    %c0_59 = arith.constant 0 : index
    %c0_60 = arith.constant 0 : index
    %c0_61 = arith.constant 0 : index
    %132 = vector.load %arg12[%c0_59, %c0_60, %c0_61] : memref<2x1x32xf32, #tpu.memory_space<vmem>>, vector<1x1x32xf32>
    %133 = vector.shape_cast %132 : vector<1x1x32xf32> to vector<1x32xf32>
    %134 = vector.broadcast %133 : vector<1x32xf32> to vector<16x32xf32>
    %135 = arith.addf %131, %134 : vector<16x32xf32>
    %136 = arith.addf %119, %135 : vector<16x32xf32>
    %c0_62 = arith.constant 0 : index
    %c0_63 = arith.constant 0 : index
    %c0_64 = arith.constant 0 : index
    %137 = vector.load %arg13[%c0_62, %c0_63, %c0_64] : memref<2x1x32xf32, #tpu.memory_space<vmem>>, vector<1x1x32xf32>
    %138 = vector.shape_cast %137 : vector<1x1x32xf32> to vector<1x32xf32>
    %c0_65 = arith.constant 0 : index
    %c0_66 = arith.constant 0 : index
    %c0_67 = arith.constant 0 : index
    %139 = vector.load %arg14[%c0_65, %c0_66, %c0_67] : memref<2x1x32xf32, #tpu.memory_space<vmem>>, vector<1x1x32xf32>
    %140 = vector.shape_cast %139 : vector<1x1x32xf32> to vector<1x32xf32>
    %cst_68 = arith.constant dense<0.000000e+00> : vector<16xf32>
    %141 = vector.multi_reduction <add>, %136, %cst_68 [1] : vector<16x32xf32> to vector<16xf32>
    %142 = vector.shape_cast %141 : vector<16xf32> to vector<16x1xf32>
    %cst_69 = arith.constant 3.200000e+01 : f32
    %143 = vector.broadcast %cst_69 : f32 to vector<16x1xf32>
    %144 = arith.divf %142, %143 : vector<16x1xf32>
    %145 = vector.broadcast %144 : vector<16x1xf32> to vector<16x32xf32>
    %146 = arith.subf %136, %145 : vector<16x32xf32>
    %147 = arith.mulf %146, %146 : vector<16x32xf32>
    %cst_70 = arith.constant dense<0.000000e+00> : vector<16xf32>
    %148 = vector.multi_reduction <add>, %147, %cst_70 [1] : vector<16x32xf32> to vector<16xf32>
    %149 = vector.shape_cast %148 : vector<16xf32> to vector<16x1xf32>
    %cst_71 = arith.constant 3.200000e+01 : f32
    %150 = vector.broadcast %cst_71 : f32 to vector<16x1xf32>
    %151 = arith.divf %149, %150 : vector<16x1xf32>
    %152 = vector.broadcast %144 : vector<16x1xf32> to vector<16x32xf32>
    %153 = arith.subf %136, %152 : vector<16x32xf32>
    %cst_72 = arith.constant 9.99999974E-6 : f32
    %154 = vector.broadcast %cst_72 : f32 to vector<16x1xf32>
    %155 = arith.addf %151, %154 : vector<16x1xf32>
    %156 = math.rsqrt %155 : vector<16x1xf32>
    %157 = vector.broadcast %156 : vector<16x1xf32> to vector<16x32xf32>
    %158 = arith.mulf %153, %157 : vector<16x32xf32>
    %159 = vector.broadcast %138 : vector<1x32xf32> to vector<16x32xf32>
    %160 = arith.mulf %158, %159 : vector<16x32xf32>
    %161 = vector.broadcast %140 : vector<1x32xf32> to vector<16x32xf32>
    %162 = arith.addf %160, %161 : vector<16x32xf32>
    %c1 = arith.constant 1 : index
    %c0_73 = arith.constant 0 : index
    %c0_74 = arith.constant 0 : index
    %163 = vector.load %arg3[%c1, %c0_73, %c0_74] : memref<2x32x96xf32, #tpu.memory_space<vmem>>, vector<1x32x96xf32>
    %164 = vector.shape_cast %163 : vector<1x32x96xf32> to vector<32x96xf32>
    %cst_75 = arith.constant dense<0.000000e+00> : vector<16x96xf32>
    %165 = tpu.matmul %162, %164, %cst_75 {dimension_numbers = #tpu.dot_dimension_numbers<[1], [0], [0], [1], [0, 0, 1, 1], [], []>} : vector<16x32xf32>, vector<32x96xf32>, vector<16x96xf32> -> vector<16x96xf32>
    %c1_76 = arith.constant 1 : index
    %c0_77 = arith.constant 0 : index
    %c0_78 = arith.constant 0 : index
    %166 = vector.load %arg4[%c1_76, %c0_77, %c0_78] : memref<2x1x96xf32, #tpu.memory_space<vmem>>, vector<1x1x96xf32>
    %167 = vector.shape_cast %166 : vector<1x1x96xf32> to vector<1x96xf32>
    %168 = vector.broadcast %167 : vector<1x96xf32> to vector<16x96xf32>
    %169 = arith.addf %165, %168 : vector<16x96xf32>
    %170 = vector.extract_strided_slice %169 {offsets = [0, 0], sizes = [16, 32], strides = [1, 1]} : vector<16x96xf32> to vector<16x32xf32>
    %171 = vector.shape_cast %170 : vector<16x32xf32> to vector<2x8x32xf32>
    %172 = vector.extract_strided_slice %169 {offsets = [0, 32], sizes = [16, 32], strides = [1, 1]} : vector<16x96xf32> to vector<16x32xf32>
    %173 = vector.shape_cast %172 : vector<16x32xf32> to vector<2x8x32xf32>
    %174 = vector.extract_strided_slice %169 {offsets = [0, 64], sizes = [16, 32], strides = [1, 1]} : vector<16x96xf32> to vector<16x32xf32>
    %175 = vector.shape_cast %174 : vector<16x32xf32> to vector<2x8x32xf32>
    %176 = vector.extract_strided_slice %171 {offsets = [0, 0, 0], sizes = [2, 8, 8], strides = [1, 1, 1]} : vector<2x8x32xf32> to vector<2x8x8xf32>
    %177 = vector.extract_strided_slice %173 {offsets = [0, 0, 0], sizes = [2, 8, 8], strides = [1, 1, 1]} : vector<2x8x32xf32> to vector<2x8x8xf32>
    %178 = vector.extract_strided_slice %175 {offsets = [0, 0, 0], sizes = [2, 8, 8], strides = [1, 1, 1]} : vector<2x8x32xf32> to vector<2x8x8xf32>
    "tpu.trace_start"() <{level = 10 : i32, message = "bqd,bkd->bqk"}> : () -> ()
    %cst_79 = arith.constant dense<0.000000e+00> : vector<2x8x8xf32>
    %179 = tpu.matmul %176, %177, %cst_79 {dimension_numbers = #tpu.dot_dimension_numbers<[2], [2], [1], [1], [0, 0, 0, 1, 1, 1], [0], [0]>} : vector<2x8x8xf32>, vector<2x8x8xf32>, vector<2x8x8xf32> -> vector<2x8x8xf32>
    "tpu.trace_stop"() : () -> ()
    %cst_80 = arith.constant 0.353553385 : f32
    %180 = vector.broadcast %cst_80 : f32 to vector<2x8x8xf32>
    %181 = arith.mulf %179, %180 : vector<2x8x8xf32>
    %cst_81 = arith.constant dense<0xFF800000> : vector<2x8xf32>
    %182 = vector.multi_reduction <maximumf>, %181, %cst_81 [2] : vector<2x8x8xf32> to vector<2x8xf32>
    %183 = vector.shape_cast %182 : vector<2x8xf32> to vector<2x8x1xf32>
    %184 = vector.broadcast %183 : vector<2x8x1xf32> to vector<2x8x8xf32>
    %185 = arith.subf %181, %184 : vector<2x8x8xf32>
    %186 = math.exp %185 : vector<2x8x8xf32>
    %cst_82 = arith.constant dense<0.000000e+00> : vector<2x8xf32>
    %187 = vector.multi_reduction <add>, %186, %cst_82 [2] : vector<2x8x8xf32> to vector<2x8xf32>
    %188 = vector.shape_cast %187 : vector<2x8xf32> to vector<2x8x1xf32>
    %189 = tpu.reciprocal %188 {approx = true} : vector<2x8x1xf32> -> vector<2x8x1xf32>
    %190 = vector.broadcast %189 : vector<2x8x1xf32> to vector<2x8x8xf32>
    %191 = arith.mulf %186, %190 : vector<2x8x8xf32>
    "tpu.trace_start"() <{level = 10 : i32, message = "bqk,bkd->bqd"}> : () -> ()
    %cst_83 = arith.constant dense<0.000000e+00> : vector<2x8x8xf32>
    %192 = tpu.matmul %191, %178, %cst_83 {dimension_numbers = #tpu.dot_dimension_numbers<[2], [1], [1], [2], [0, 0, 0, 1, 1, 2], [0], [0]>} : vector<2x8x8xf32>, vector<2x8x8xf32>, vector<2x8x8xf32> -> vector<2x8x8xf32>
    "tpu.trace_stop"() : () -> ()
    %193 = vector.extract_strided_slice %171 {offsets = [0, 0, 8], sizes = [2, 8, 8], strides = [1, 1, 1]} : vector<2x8x32xf32> to vector<2x8x8xf32>
    %194 = vector.extract_strided_slice %173 {offsets = [0, 0, 8], sizes = [2, 8, 8], strides = [1, 1, 1]} : vector<2x8x32xf32> to vector<2x8x8xf32>
    %195 = vector.extract_strided_slice %175 {offsets = [0, 0, 8], sizes = [2, 8, 8], strides = [1, 1, 1]} : vector<2x8x32xf32> to vector<2x8x8xf32>
    "tpu.trace_start"() <{level = 10 : i32, message = "bqd,bkd->bqk"}> : () -> ()
    %cst_84 = arith.constant dense<0.000000e+00> : vector<2x8x8xf32>
    %196 = tpu.matmul %193, %194, %cst_84 {dimension_numbers = #tpu.dot_dimension_numbers<[2], [2], [1], [1], [0, 0, 0, 1, 1, 1], [0], [0]>} : vector<2x8x8xf32>, vector<2x8x8xf32>, vector<2x8x8xf32> -> vector<2x8x8xf32>
    "tpu.trace_stop"() : () -> ()
    %cst_85 = arith.constant 0.353553385 : f32
    %197 = vector.broadcast %cst_85 : f32 to vector<2x8x8xf32>
    %198 = arith.mulf %196, %197 : vector<2x8x8xf32>
    %cst_86 = arith.constant dense<0xFF800000> : vector<2x8xf32>
    %199 = vector.multi_reduction <maximumf>, %198, %cst_86 [2] : vector<2x8x8xf32> to vector<2x8xf32>
    %200 = vector.shape_cast %199 : vector<2x8xf32> to vector<2x8x1xf32>
    %201 = vector.broadcast %200 : vector<2x8x1xf32> to vector<2x8x8xf32>
    %202 = arith.subf %198, %201 : vector<2x8x8xf32>
    %203 = math.exp %202 : vector<2x8x8xf32>
    %cst_87 = arith.constant dense<0.000000e+00> : vector<2x8xf32>
    %204 = vector.multi_reduction <add>, %203, %cst_87 [2] : vector<2x8x8xf32> to vector<2x8xf32>
    %205 = vector.shape_cast %204 : vector<2x8xf32> to vector<2x8x1xf32>
    %206 = tpu.reciprocal %205 {approx = true} : vector<2x8x1xf32> -> vector<2x8x1xf32>
    %207 = vector.broadcast %206 : vector<2x8x1xf32> to vector<2x8x8xf32>
    %208 = arith.mulf %203, %207 : vector<2x8x8xf32>
    "tpu.trace_start"() <{level = 10 : i32, message = "bqk,bkd->bqd"}> : () -> ()
    %cst_88 = arith.constant dense<0.000000e+00> : vector<2x8x8xf32>
    %209 = tpu.matmul %208, %195, %cst_88 {dimension_numbers = #tpu.dot_dimension_numbers<[2], [1], [1], [2], [0, 0, 0, 1, 1, 2], [0], [0]>} : vector<2x8x8xf32>, vector<2x8x8xf32>, vector<2x8x8xf32> -> vector<2x8x8xf32>
    "tpu.trace_stop"() : () -> ()
    %210 = vector.extract_strided_slice %171 {offsets = [0, 0, 16], sizes = [2, 8, 8], strides = [1, 1, 1]} : vector<2x8x32xf32> to vector<2x8x8xf32>
    %211 = vector.extract_strided_slice %173 {offsets = [0, 0, 16], sizes = [2, 8, 8], strides = [1, 1, 1]} : vector<2x8x32xf32> to vector<2x8x8xf32>
    %212 = vector.extract_strided_slice %175 {offsets = [0, 0, 16], sizes = [2, 8, 8], strides = [1, 1, 1]} : vector<2x8x32xf32> to vector<2x8x8xf32>
    "tpu.trace_start"() <{level = 10 : i32, message = "bqd,bkd->bqk"}> : () -> ()
    %cst_89 = arith.constant dense<0.000000e+00> : vector<2x8x8xf32>
    %213 = tpu.matmul %210, %211, %cst_89 {dimension_numbers = #tpu.dot_dimension_numbers<[2], [2], [1], [1], [0, 0, 0, 1, 1, 1], [0], [0]>} : vector<2x8x8xf32>, vector<2x8x8xf32>, vector<2x8x8xf32> -> vector<2x8x8xf32>
    "tpu.trace_stop"() : () -> ()
    %cst_90 = arith.constant 0.353553385 : f32
    %214 = vector.broadcast %cst_90 : f32 to vector<2x8x8xf32>
    %215 = arith.mulf %213, %214 : vector<2x8x8xf32>
    %cst_91 = arith.constant dense<0xFF800000> : vector<2x8xf32>
    %216 = vector.multi_reduction <maximumf>, %215, %cst_91 [2] : vector<2x8x8xf32> to vector<2x8xf32>
    %217 = vector.shape_cast %216 : vector<2x8xf32> to vector<2x8x1xf32>
    %218 = vector.broadcast %217 : vector<2x8x1xf32> to vector<2x8x8xf32>
    %219 = arith.subf %215, %218 : vector<2x8x8xf32>
    %220 = math.exp %219 : vector<2x8x8xf32>
    %cst_92 = arith.constant dense<0.000000e+00> : vector<2x8xf32>
    %221 = vector.multi_reduction <add>, %220, %cst_92 [2] : vector<2x8x8xf32> to vector<2x8xf32>
    %222 = vector.shape_cast %221 : vector<2x8xf32> to vector<2x8x1xf32>
    %223 = tpu.reciprocal %222 {approx = true} : vector<2x8x1xf32> -> vector<2x8x1xf32>
    %224 = vector.broadcast %223 : vector<2x8x1xf32> to vector<2x8x8xf32>
    %225 = arith.mulf %220, %224 : vector<2x8x8xf32>
    "tpu.trace_start"() <{level = 10 : i32, message = "bqk,bkd->bqd"}> : () -> ()
    %cst_93 = arith.constant dense<0.000000e+00> : vector<2x8x8xf32>
    %226 = tpu.matmul %225, %212, %cst_93 {dimension_numbers = #tpu.dot_dimension_numbers<[2], [1], [1], [2], [0, 0, 0, 1, 1, 2], [0], [0]>} : vector<2x8x8xf32>, vector<2x8x8xf32>, vector<2x8x8xf32> -> vector<2x8x8xf32>
    "tpu.trace_stop"() : () -> ()
    %227 = vector.extract_strided_slice %171 {offsets = [0, 0, 24], sizes = [2, 8, 8], strides = [1, 1, 1]} : vector<2x8x32xf32> to vector<2x8x8xf32>
    %228 = vector.extract_strided_slice %173 {offsets = [0, 0, 24], sizes = [2, 8, 8], strides = [1, 1, 1]} : vector<2x8x32xf32> to vector<2x8x8xf32>
    %229 = vector.extract_strided_slice %175 {offsets = [0, 0, 24], sizes = [2, 8, 8], strides = [1, 1, 1]} : vector<2x8x32xf32> to vector<2x8x8xf32>
    "tpu.trace_start"() <{level = 10 : i32, message = "bqd,bkd->bqk"}> : () -> ()
    %cst_94 = arith.constant dense<0.000000e+00> : vector<2x8x8xf32>
    %230 = tpu.matmul %227, %228, %cst_94 {dimension_numbers = #tpu.dot_dimension_numbers<[2], [2], [1], [1], [0, 0, 0, 1, 1, 1], [0], [0]>} : vector<2x8x8xf32>, vector<2x8x8xf32>, vector<2x8x8xf32> -> vector<2x8x8xf32>
    "tpu.trace_stop"() : () -> ()
    %cst_95 = arith.constant 0.353553385 : f32
    %231 = vector.broadcast %cst_95 : f32 to vector<2x8x8xf32>
    %232 = arith.mulf %230, %231 : vector<2x8x8xf32>
    %cst_96 = arith.constant dense<0xFF800000> : vector<2x8xf32>
    %233 = vector.multi_reduction <maximumf>, %232, %cst_96 [2] : vector<2x8x8xf32> to vector<2x8xf32>
    %234 = vector.shape_cast %233 : vector<2x8xf32> to vector<2x8x1xf32>
    %235 = vector.broadcast %234 : vector<2x8x1xf32> to vector<2x8x8xf32>
    %236 = arith.subf %232, %235 : vector<2x8x8xf32>
    %237 = math.exp %236 : vector<2x8x8xf32>
    %cst_97 = arith.constant dense<0.000000e+00> : vector<2x8xf32>
    %238 = vector.multi_reduction <add>, %237, %cst_97 [2] : vector<2x8x8xf32> to vector<2x8xf32>
    %239 = vector.shape_cast %238 : vector<2x8xf32> to vector<2x8x1xf32>
    %240 = tpu.reciprocal %239 {approx = true} : vector<2x8x1xf32> -> vector<2x8x1xf32>
    %241 = vector.broadcast %240 : vector<2x8x1xf32> to vector<2x8x8xf32>
    %242 = arith.mulf %237, %241 : vector<2x8x8xf32>
    "tpu.trace_start"() <{level = 10 : i32, message = "bqk,bkd->bqd"}> : () -> ()
    %cst_98 = arith.constant dense<0.000000e+00> : vector<2x8x8xf32>
    %243 = tpu.matmul %242, %229, %cst_98 {dimension_numbers = #tpu.dot_dimension_numbers<[2], [1], [1], [2], [0, 0, 0, 1, 1, 2], [0], [0]>} : vector<2x8x8xf32>, vector<2x8x8xf32>, vector<2x8x8xf32> -> vector<2x8x8xf32>
    "tpu.trace_stop"() : () -> ()
    %244 = tpu.concatenate %192, %209, %226, %243 in 2 : vector<2x8x8xf32>, vector<2x8x8xf32>, vector<2x8x8xf32>, vector<2x8x8xf32> -> vector<2x8x32xf32>
    %245 = vector.shape_cast %244 : vector<2x8x32xf32> to vector<16x32xf32>
    %c1_99 = arith.constant 1 : index
    %c0_100 = arith.constant 0 : index
    %c0_101 = arith.constant 0 : index
    %246 = vector.load %arg5[%c1_99, %c0_100, %c0_101] : memref<2x32x32xf32, #tpu.memory_space<vmem>>, vector<1x32x32xf32>
    %247 = vector.shape_cast %246 : vector<1x32x32xf32> to vector<32x32xf32>
    %cst_102 = arith.constant dense<0.000000e+00> : vector<16x32xf32>
    %248 = tpu.matmul %245, %247, %cst_102 {dimension_numbers = #tpu.dot_dimension_numbers<[1], [0], [0], [1], [0, 0, 1, 1], [], []>} : vector<16x32xf32>, vector<32x32xf32>, vector<16x32xf32> -> vector<16x32xf32>
    %c1_103 = arith.constant 1 : index
    %c0_104 = arith.constant 0 : index
    %c0_105 = arith.constant 0 : index
    %249 = vector.load %arg6[%c1_103, %c0_104, %c0_105] : memref<2x1x32xf32, #tpu.memory_space<vmem>>, vector<1x1x32xf32>
    %250 = vector.shape_cast %249 : vector<1x1x32xf32> to vector<1x32xf32>
    %251 = vector.broadcast %250 : vector<1x32xf32> to vector<16x32xf32>
    %252 = arith.addf %248, %251 : vector<16x32xf32>
    %253 = arith.addf %162, %252 : vector<16x32xf32>
    %c1_106 = arith.constant 1 : index
    %c0_107 = arith.constant 0 : index
    %c0_108 = arith.constant 0 : index
    %254 = vector.load %arg7[%c1_106, %c0_107, %c0_108] : memref<2x1x32xf32, #tpu.memory_space<vmem>>, vector<1x1x32xf32>
    %255 = vector.shape_cast %254 : vector<1x1x32xf32> to vector<1x32xf32>
    %c1_109 = arith.constant 1 : index
    %c0_110 = arith.constant 0 : index
    %c0_111 = arith.constant 0 : index
    %256 = vector.load %arg8[%c1_109, %c0_110, %c0_111] : memref<2x1x32xf32, #tpu.memory_space<vmem>>, vector<1x1x32xf32>
    %257 = vector.shape_cast %256 : vector<1x1x32xf32> to vector<1x32xf32>
    %cst_112 = arith.constant dense<0.000000e+00> : vector<16xf32>
    %258 = vector.multi_reduction <add>, %253, %cst_112 [1] : vector<16x32xf32> to vector<16xf32>
    %259 = vector.shape_cast %258 : vector<16xf32> to vector<16x1xf32>
    %cst_113 = arith.constant 3.200000e+01 : f32
    %260 = vector.broadcast %cst_113 : f32 to vector<16x1xf32>
    %261 = arith.divf %259, %260 : vector<16x1xf32>
    %262 = vector.broadcast %261 : vector<16x1xf32> to vector<16x32xf32>
    %263 = arith.subf %253, %262 : vector<16x32xf32>
    %264 = arith.mulf %263, %263 : vector<16x32xf32>
    %cst_114 = arith.constant dense<0.000000e+00> : vector<16xf32>
    %265 = vector.multi_reduction <add>, %264, %cst_114 [1] : vector<16x32xf32> to vector<16xf32>
    %266 = vector.shape_cast %265 : vector<16xf32> to vector<16x1xf32>
    %cst_115 = arith.constant 3.200000e+01 : f32
    %267 = vector.broadcast %cst_115 : f32 to vector<16x1xf32>
    %268 = arith.divf %266, %267 : vector<16x1xf32>
    %269 = vector.broadcast %261 : vector<16x1xf32> to vector<16x32xf32>
    %270 = arith.subf %253, %269 : vector<16x32xf32>
    %cst_116 = arith.constant 9.99999974E-6 : f32
    %271 = vector.broadcast %cst_116 : f32 to vector<16x1xf32>
    %272 = arith.addf %268, %271 : vector<16x1xf32>
    %273 = math.rsqrt %272 : vector<16x1xf32>
    %274 = vector.broadcast %273 : vector<16x1xf32> to vector<16x32xf32>
    %275 = arith.mulf %270, %274 : vector<16x32xf32>
    %276 = vector.broadcast %255 : vector<1x32xf32> to vector<16x32xf32>
    %277 = arith.mulf %275, %276 : vector<16x32xf32>
    %278 = vector.broadcast %257 : vector<1x32xf32> to vector<16x32xf32>
    %279 = arith.addf %277, %278 : vector<16x32xf32>
    %c1_117 = arith.constant 1 : index
    %c0_118 = arith.constant 0 : index
    %c0_119 = arith.constant 0 : index
    %280 = vector.load %arg9[%c1_117, %c0_118, %c0_119] : memref<2x32x64xf32, #tpu.memory_space<vmem>>, vector<1x32x64xf32>
    %281 = vector.shape_cast %280 : vector<1x32x64xf32> to vector<32x64xf32>
    %cst_120 = arith.constant dense<0.000000e+00> : vector<16x64xf32>
    %282 = tpu.matmul %279, %281, %cst_120 {dimension_numbers = #tpu.dot_dimension_numbers<[1], [0], [0], [1], [0, 0, 1, 1], [], []>} : vector<16x32xf32>, vector<32x64xf32>, vector<16x64xf32> -> vector<16x64xf32>
    %c1_121 = arith.constant 1 : index
    %c0_122 = arith.constant 0 : index
    %c0_123 = arith.constant 0 : index
    %283 = vector.load %arg10[%c1_121, %c0_122, %c0_123] : memref<2x1x64xf32, #tpu.memory_space<vmem>>, vector<1x1x64xf32>
    %284 = vector.shape_cast %283 : vector<1x1x64xf32> to vector<1x64xf32>
    %285 = vector.broadcast %284 : vector<1x64xf32> to vector<16x64xf32>
    %286 = arith.addf %282, %285 : vector<16x64xf32>
    %cst_124 = arith.constant 0.000000e+00 : f32
    %287 = vector.broadcast %cst_124 : f32 to vector<16x64xf32>
    %288 = arith.maximumf %286, %287 : vector<16x64xf32>
    %c1_125 = arith.constant 1 : index
    %c0_126 = arith.constant 0 : index
    %c0_127 = arith.constant 0 : index
    %289 = vector.load %arg11[%c1_125, %c0_126, %c0_127] : memref<2x64x32xf32, #tpu.memory_space<vmem>>, vector<1x64x32xf32>
    %290 = vector.shape_cast %289 : vector<1x64x32xf32> to vector<64x32xf32>
    %cst_128 = arith.constant dense<0.000000e+00> : vector<16x32xf32>
    %291 = tpu.matmul %288, %290, %cst_128 {dimension_numbers = #tpu.dot_dimension_numbers<[1], [0], [0], [1], [0, 0, 1, 1], [], []>} : vector<16x64xf32>, vector<64x32xf32>, vector<16x32xf32> -> vector<16x32xf32>
    %c1_129 = arith.constant 1 : index
    %c0_130 = arith.constant 0 : index
    %c0_131 = arith.constant 0 : index
    %292 = vector.load %arg12[%c1_129, %c0_130, %c0_131] : memref<2x1x32xf32, #tpu.memory_space<vmem>>, vector<1x1x32xf32>
    %293 = vector.shape_cast %292 : vector<1x1x32xf32> to vector<1x32xf32>
    %294 = vector.broadcast %293 : vector<1x32xf32> to vector<16x32xf32>
    %295 = arith.addf %291, %294 : vector<16x32xf32>
    %296 = arith.addf %279, %295 : vector<16x32xf32>
    %c1_132 = arith.constant 1 : index
    %c0_133 = arith.constant 0 : index
    %c0_134 = arith.constant 0 : index
    %297 = vector.load %arg13[%c1_132, %c0_133, %c0_134] : memref<2x1x32xf32, #tpu.memory_space<vmem>>, vector<1x1x32xf32>
    %298 = vector.shape_cast %297 : vector<1x1x32xf32> to vector<1x32xf32>
    %c1_135 = arith.constant 1 : index
    %c0_136 = arith.constant 0 : index
    %c0_137 = arith.constant 0 : index
    %299 = vector.load %arg14[%c1_135, %c0_136, %c0_137] : memref<2x1x32xf32, #tpu.memory_space<vmem>>, vector<1x1x32xf32>
    %300 = vector.shape_cast %299 : vector<1x1x32xf32> to vector<1x32xf32>
    %cst_138 = arith.constant dense<0.000000e+00> : vector<16xf32>
    %301 = vector.multi_reduction <add>, %296, %cst_138 [1] : vector<16x32xf32> to vector<16xf32>
    %302 = vector.shape_cast %301 : vector<16xf32> to vector<16x1xf32>
    %cst_139 = arith.constant 3.200000e+01 : f32
    %303 = vector.broadcast %cst_139 : f32 to vector<16x1xf32>
    %304 = arith.divf %302, %303 : vector<16x1xf32>
    %305 = vector.broadcast %304 : vector<16x1xf32> to vector<16x32xf32>
    %306 = arith.subf %296, %305 : vector<16x32xf32>
    %307 = arith.mulf %306, %306 : vector<16x32xf32>
    %cst_140 = arith.constant dense<0.000000e+00> : vector<16xf32>
    %308 = vector.multi_reduction <add>, %307, %cst_140 [1] : vector<16x32xf32> to vector<16xf32>
    %309 = vector.shape_cast %308 : vector<16xf32> to vector<16x1xf32>
    %cst_141 = arith.constant 3.200000e+01 : f32
    %310 = vector.broadcast %cst_141 : f32 to vector<16x1xf32>
    %311 = arith.divf %309, %310 : vector<16x1xf32>
    %312 = vector.broadcast %304 : vector<16x1xf32> to vector<16x32xf32>
    %313 = arith.subf %296, %312 : vector<16x32xf32>
    %cst_142 = arith.constant 9.99999974E-6 : f32
    %314 = vector.broadcast %cst_142 : f32 to vector<16x1xf32>
    %315 = arith.addf %311, %314 : vector<16x1xf32>
    %316 = math.rsqrt %315 : vector<16x1xf32>
    %317 = vector.broadcast %316 : vector<16x1xf32> to vector<16x32xf32>
    %318 = arith.mulf %313, %317 : vector<16x32xf32>
    %319 = vector.broadcast %298 : vector<1x32xf32> to vector<16x32xf32>
    %320 = arith.mulf %318, %319 : vector<16x32xf32>
    %321 = vector.broadcast %300 : vector<1x32xf32> to vector<16x32xf32>
    %322 = arith.addf %320, %321 : vector<16x32xf32>
    %323 = vector.shape_cast %322 : vector<16x32xf32> to vector<2x8x32xf32>
    %cst_143 = arith.constant 0.000000e+00 : f32
    %324 = vector.broadcast %cst_143 : f32 to vector<2x64xf32>
    %325 = vector.extract_strided_slice %323 {offsets = [0, 0, 0], sizes = [2, 1, 32], strides = [1, 1, 1]} : vector<2x8x32xf32> to vector<2x1x32xf32>
    %326 = vector.shape_cast %325 : vector<2x1x32xf32> to vector<2x32xf32>
    %c0_144 = arith.constant 0 : index
    %c0_145 = arith.constant 0 : index
    %c0_146 = arith.constant 0 : index
    %327 = vector.load %arg15[%c0_144, %c0_145, %c0_146] : memref<8x32x64xf32, #tpu.memory_space<vmem>>, vector<1x32x64xf32>
    %328 = vector.shape_cast %327 : vector<1x32x64xf32> to vector<32x64xf32>
    %cst_147 = arith.constant dense<0.000000e+00> : vector<2x64xf32>
    %329 = tpu.matmul %326, %328, %cst_147 {dimension_numbers = #tpu.dot_dimension_numbers<[1], [0], [0], [1], [0, 0, 1, 1], [], []>} : vector<2x32xf32>, vector<32x64xf32>, vector<2x64xf32> -> vector<2x64xf32>
    %330 = arith.addf %324, %329 : vector<2x64xf32>
    %331 = vector.extract_strided_slice %323 {offsets = [0, 1, 0], sizes = [2, 1, 32], strides = [1, 1, 1]} : vector<2x8x32xf32> to vector<2x1x32xf32>
    %332 = vector.shape_cast %331 : vector<2x1x32xf32> to vector<2x32xf32>
    %c1_148 = arith.constant 1 : index
    %c0_149 = arith.constant 0 : index
    %c0_150 = arith.constant 0 : index
    %333 = vector.load %arg15[%c1_148, %c0_149, %c0_150] : memref<8x32x64xf32, #tpu.memory_space<vmem>>, vector<1x32x64xf32>
    %334 = vector.shape_cast %333 : vector<1x32x64xf32> to vector<32x64xf32>
    %cst_151 = arith.constant dense<0.000000e+00> : vector<2x64xf32>
    %335 = tpu.matmul %332, %334, %cst_151 {dimension_numbers = #tpu.dot_dimension_numbers<[1], [0], [0], [1], [0, 0, 1, 1], [], []>} : vector<2x32xf32>, vector<32x64xf32>, vector<2x64xf32> -> vector<2x64xf32>
    %336 = arith.addf %330, %335 : vector<2x64xf32>
    %337 = vector.extract_strided_slice %323 {offsets = [0, 2, 0], sizes = [2, 1, 32], strides = [1, 1, 1]} : vector<2x8x32xf32> to vector<2x1x32xf32>
    %338 = vector.shape_cast %337 : vector<2x1x32xf32> to vector<2x32xf32>
    %c2 = arith.constant 2 : index
    %c0_152 = arith.constant 0 : index
    %c0_153 = arith.constant 0 : index
    %339 = vector.load %arg15[%c2, %c0_152, %c0_153] : memref<8x32x64xf32, #tpu.memory_space<vmem>>, vector<1x32x64xf32>
    %340 = vector.shape_cast %339 : vector<1x32x64xf32> to vector<32x64xf32>
    %cst_154 = arith.constant dense<0.000000e+00> : vector<2x64xf32>
    %341 = tpu.matmul %338, %340, %cst_154 {dimension_numbers = #tpu.dot_dimension_numbers<[1], [0], [0], [1], [0, 0, 1, 1], [], []>} : vector<2x32xf32>, vector<32x64xf32>, vector<2x64xf32> -> vector<2x64xf32>
    %342 = arith.addf %336, %341 : vector<2x64xf32>
    %343 = vector.extract_strided_slice %323 {offsets = [0, 3, 0], sizes = [2, 1, 32], strides = [1, 1, 1]} : vector<2x8x32xf32> to vector<2x1x32xf32>
    %344 = vector.shape_cast %343 : vector<2x1x32xf32> to vector<2x32xf32>
    %c3 = arith.constant 3 : index
    %c0_155 = arith.constant 0 : index
    %c0_156 = arith.constant 0 : index
    %345 = vector.load %arg15[%c3, %c0_155, %c0_156] : memref<8x32x64xf32, #tpu.memory_space<vmem>>, vector<1x32x64xf32>
    %346 = vector.shape_cast %345 : vector<1x32x64xf32> to vector<32x64xf32>
    %cst_157 = arith.constant dense<0.000000e+00> : vector<2x64xf32>
    %347 = tpu.matmul %344, %346, %cst_157 {dimension_numbers = #tpu.dot_dimension_numbers<[1], [0], [0], [1], [0, 0, 1, 1], [], []>} : vector<2x32xf32>, vector<32x64xf32>, vector<2x64xf32> -> vector<2x64xf32>
    %348 = arith.addf %342, %347 : vector<2x64xf32>
    %349 = vector.extract_strided_slice %323 {offsets = [0, 4, 0], sizes = [2, 1, 32], strides = [1, 1, 1]} : vector<2x8x32xf32> to vector<2x1x32xf32>
    %350 = vector.shape_cast %349 : vector<2x1x32xf32> to vector<2x32xf32>
    %c4 = arith.constant 4 : index
    %c0_158 = arith.constant 0 : index
    %c0_159 = arith.constant 0 : index
    %351 = vector.load %arg15[%c4, %c0_158, %c0_159] : memref<8x32x64xf32, #tpu.memory_space<vmem>>, vector<1x32x64xf32>
    %352 = vector.shape_cast %351 : vector<1x32x64xf32> to vector<32x64xf32>
    %cst_160 = arith.constant dense<0.000000e+00> : vector<2x64xf32>
    %353 = tpu.matmul %350, %352, %cst_160 {dimension_numbers = #tpu.dot_dimension_numbers<[1], [0], [0], [1], [0, 0, 1, 1], [], []>} : vector<2x32xf32>, vector<32x64xf32>, vector<2x64xf32> -> vector<2x64xf32>
    %354 = arith.addf %348, %353 : vector<2x64xf32>
    %355 = vector.extract_strided_slice %323 {offsets = [0, 5, 0], sizes = [2, 1, 32], strides = [1, 1, 1]} : vector<2x8x32xf32> to vector<2x1x32xf32>
    %356 = vector.shape_cast %355 : vector<2x1x32xf32> to vector<2x32xf32>
    %c5 = arith.constant 5 : index
    %c0_161 = arith.constant 0 : index
    %c0_162 = arith.constant 0 : index
    %357 = vector.load %arg15[%c5, %c0_161, %c0_162] : memref<8x32x64xf32, #tpu.memory_space<vmem>>, vector<1x32x64xf32>
    %358 = vector.shape_cast %357 : vector<1x32x64xf32> to vector<32x64xf32>
    %cst_163 = arith.constant dense<0.000000e+00> : vector<2x64xf32>
    %359 = tpu.matmul %356, %358, %cst_163 {dimension_numbers = #tpu.dot_dimension_numbers<[1], [0], [0], [1], [0, 0, 1, 1], [], []>} : vector<2x32xf32>, vector<32x64xf32>, vector<2x64xf32> -> vector<2x64xf32>
    %360 = arith.addf %354, %359 : vector<2x64xf32>
    %361 = vector.extract_strided_slice %323 {offsets = [0, 6, 0], sizes = [2, 1, 32], strides = [1, 1, 1]} : vector<2x8x32xf32> to vector<2x1x32xf32>
    %362 = vector.shape_cast %361 : vector<2x1x32xf32> to vector<2x32xf32>
    %c6 = arith.constant 6 : index
    %c0_164 = arith.constant 0 : index
    %c0_165 = arith.constant 0 : index
    %363 = vector.load %arg15[%c6, %c0_164, %c0_165] : memref<8x32x64xf32, #tpu.memory_space<vmem>>, vector<1x32x64xf32>
    %364 = vector.shape_cast %363 : vector<1x32x64xf32> to vector<32x64xf32>
    %cst_166 = arith.constant dense<0.000000e+00> : vector<2x64xf32>
    %365 = tpu.matmul %362, %364, %cst_166 {dimension_numbers = #tpu.dot_dimension_numbers<[1], [0], [0], [1], [0, 0, 1, 1], [], []>} : vector<2x32xf32>, vector<32x64xf32>, vector<2x64xf32> -> vector<2x64xf32>
    %366 = arith.addf %360, %365 : vector<2x64xf32>
    %367 = vector.extract_strided_slice %323 {offsets = [0, 7, 0], sizes = [2, 1, 32], strides = [1, 1, 1]} : vector<2x8x32xf32> to vector<2x1x32xf32>
    %368 = vector.shape_cast %367 : vector<2x1x32xf32> to vector<2x32xf32>
    %c7 = arith.constant 7 : index
    %c0_167 = arith.constant 0 : index
    %c0_168 = arith.constant 0 : index
    %369 = vector.load %arg15[%c7, %c0_167, %c0_168] : memref<8x32x64xf32, #tpu.memory_space<vmem>>, vector<1x32x64xf32>
    %370 = vector.shape_cast %369 : vector<1x32x64xf32> to vector<32x64xf32>
    %cst_169 = arith.constant dense<0.000000e+00> : vector<2x64xf32>
    %371 = tpu.matmul %368, %370, %cst_169 {dimension_numbers = #tpu.dot_dimension_numbers<[1], [0], [0], [1], [0, 0, 1, 1], [], []>} : vector<2x32xf32>, vector<32x64xf32>, vector<2x64xf32> -> vector<2x64xf32>
    %372 = arith.addf %366, %371 : vector<2x64xf32>
    %c0_170 = arith.constant 0 : index
    %c0_171 = arith.constant 0 : index
    %373 = vector.load %arg16[%c0_170, %c0_171] : memref<1x64xf32, #tpu.memory_space<vmem>>, vector<1x64xf32>
    %374 = vector.broadcast %373 : vector<1x64xf32> to vector<2x64xf32>
    %375 = arith.addf %372, %374 : vector<2x64xf32>
    %cst_172 = arith.constant 0.000000e+00 : f32
    %376 = vector.broadcast %cst_172 : f32 to vector<2x64xf32>
    %377 = arith.maximumf %375, %376 : vector<2x64xf32>
    %c0_173 = arith.constant 0 : index
    %c0_174 = arith.constant 0 : index
    %378 = vector.load %arg17[%c0_173, %c0_174] : memref<64x1xf32, #tpu.memory_space<vmem>>, vector<64x1xf32>
    %cst_175 = arith.constant dense<0.000000e+00> : vector<2x1xf32>
    %379 = tpu.matmul %377, %378, %cst_175 {dimension_numbers = #tpu.dot_dimension_numbers<[1], [0], [0], [1], [0, 0, 1, 1], [], []>} : vector<2x64xf32>, vector<64x1xf32>, vector<2x1xf32> -> vector<2x1xf32>
    %c0_176 = arith.constant 0 : index
    %c0_177 = arith.constant 0 : index
    %380 = vector.load %arg18[%c0_176, %c0_177] : memref<1x1xf32, #tpu.memory_space<vmem>>, vector<1x1xf32>
    %381 = vector.broadcast %380 : vector<1x1xf32> to vector<2x1xf32>
    %382 = arith.addf %379, %381 : vector<2x1xf32>
    %c0_178 = arith.constant 0 : index
    %c0_179 = arith.constant 0 : index
    %383 = vector.load %arg19[%c0_178, %c0_179] : memref<2x1xf32, #tpu.memory_space<vmem>>, vector<2x1xf32>
    tpu.vector_store %arg19[%c0_178, %c0_179], %382 {strides = array<i32>} : memref<2x1xf32, #tpu.memory_space<vmem>>, vector<2x1xf32>,
    return
  }
  func.func @transform_0(%arg0: i32) -> (i32, i32) {
    %c0_i32 = arith.constant 0 : i32
    %c0_i32_0 = arith.constant 0 : i32
    %c0_i32_1 = arith.constant 0 : i32
    return %c0_i32, %c0_i32_0 : i32, i32
  }
  func.func @transform_1(%arg0: i32) -> (i32, i32) {
    %c0_i32 = arith.constant 0 : i32
    %c0_i32_0 = arith.constant 0 : i32
    %c0_i32_1 = arith.constant 0 : i32
    return %c0_i32, %c0_i32_0 : i32, i32
  }
  func.func @transform_2(%arg0: i32) -> (i32, i32, i32) {
    %c0_i32 = arith.constant 0 : i32
    %c0_i32_0 = arith.constant 0 : i32
    %c0_i32_1 = arith.constant 0 : i32
    %c0_i32_2 = arith.constant 0 : i32
    return %c0_i32, %c0_i32_0, %c0_i32_1 : i32, i32, i32
  }
  func.func @transform_3(%arg0: i32) -> (i32, i32, i32) {
    %c0_i32 = arith.constant 0 : i32
    %c0_i32_0 = arith.constant 0 : i32
    %c0_i32_1 = arith.constant 0 : i32
    %c0_i32_2 = arith.constant 0 : i32
    return %c0_i32, %c0_i32_0, %c0_i32_1 : i32, i32, i32
  }
  func.func @transform_4(%arg0: i32) -> (i32, i32, i32) {
    %c0_i32 = arith.constant 0 : i32
    %c0_i32_0 = arith.constant 0 : i32
    %c0_i32_1 = arith.constant 0 : i32
    %c0_i32_2 = arith.constant 0 : i32
    return %c0_i32, %c0_i32_0, %c0_i32_1 : i32, i32, i32
  }
  func.func @transform_5(%arg0: i32) -> (i32, i32, i32) {
    %c0_i32 = arith.constant 0 : i32
    %c0_i32_0 = arith.constant 0 : i32
    %c0_i32_1 = arith.constant 0 : i32
    %c0_i32_2 = arith.constant 0 : i32
    return %c0_i32, %c0_i32_0, %c0_i32_1 : i32, i32, i32
  }
  func.func @transform_6(%arg0: i32) -> (i32, i32, i32) {
    %c0_i32 = arith.constant 0 : i32
    %c0_i32_0 = arith.constant 0 : i32
    %c0_i32_1 = arith.constant 0 : i32
    %c0_i32_2 = arith.constant 0 : i32
    return %c0_i32, %c0_i32_0, %c0_i32_1 : i32, i32, i32
  }
  func.func @transform_7(%arg0: i32) -> (i32, i32, i32) {
    %c0_i32 = arith.constant 0 : i32
    %c0_i32_0 = arith.constant 0 : i32
    %c0_i32_1 = arith.constant 0 : i32
    %c0_i32_2 = arith.constant 0 : i32
    return %c0_i32, %c0_i32_0, %c0_i32_1 : i32, i32, i32
  }
  func.func @transform_8(%arg0: i32) -> (i32, i32, i32) {
    %c0_i32 = arith.constant 0 : i32
    %c0_i32_0 = arith.constant 0 : i32
    %c0_i32_1 = arith.constant 0 : i32
    %c0_i32_2 = arith.constant 0 : i32
    return %c0_i32, %c0_i32_0, %c0_i32_1 : i32, i32, i32
  }
  func.func @transform_9(%arg0: i32) -> (i32, i32, i32) {
    %c0_i32 = arith.constant 0 : i32
    %c0_i32_0 = arith.constant 0 : i32
    %c0_i32_1 = arith.constant 0 : i32
    %c0_i32_2 = arith.constant 0 : i32
    return %c0_i32, %c0_i32_0, %c0_i32_1 : i32, i32, i32
  }
  func.func @transform_10(%arg0: i32) -> (i32, i32, i32) {
    %c0_i32 = arith.constant 0 : i32
    %c0_i32_0 = arith.constant 0 : i32
    %c0_i32_1 = arith.constant 0 : i32
    %c0_i32_2 = arith.constant 0 : i32
    return %c0_i32, %c0_i32_0, %c0_i32_1 : i32, i32, i32
  }
  func.func @transform_11(%arg0: i32) -> (i32, i32, i32) {
    %c0_i32 = arith.constant 0 : i32
    %c0_i32_0 = arith.constant 0 : i32
    %c0_i32_1 = arith.constant 0 : i32
    %c0_i32_2 = arith.constant 0 : i32
    return %c0_i32, %c0_i32_0, %c0_i32_1 : i32, i32, i32
  }
  func.func @transform_12(%arg0: i32) -> (i32, i32, i32) {
    %c0_i32 = arith.constant 0 : i32
    %c0_i32_0 = arith.constant 0 : i32
    %c0_i32_1 = arith.constant 0 : i32
    %c0_i32_2 = arith.constant 0 : i32
    return %c0_i32, %c0_i32_0, %c0_i32_1 : i32, i32, i32
  }
  func.func @transform_13(%arg0: i32) -> (i32, i32, i32) {
    %c0_i32 = arith.constant 0 : i32
    %c0_i32_0 = arith.constant 0 : i32
    %c0_i32_1 = arith.constant 0 : i32
    %c0_i32_2 = arith.constant 0 : i32
    return %c0_i32, %c0_i32_0, %c0_i32_1 : i32, i32, i32
  }
  func.func @transform_14(%arg0: i32) -> (i32, i32, i32) {
    %c0_i32 = arith.constant 0 : i32
    %c0_i32_0 = arith.constant 0 : i32
    %c0_i32_1 = arith.constant 0 : i32
    %c0_i32_2 = arith.constant 0 : i32
    return %c0_i32, %c0_i32_0, %c0_i32_1 : i32, i32, i32
  }
  func.func @transform_15(%arg0: i32) -> (i32, i32) {
    %c0_i32 = arith.constant 0 : i32
    %c0_i32_0 = arith.constant 0 : i32
    %c0_i32_1 = arith.constant 0 : i32
    return %c0_i32, %c0_i32_0 : i32, i32
  }
  func.func @transform_16(%arg0: i32) -> (i32, i32) {
    %c0_i32 = arith.constant 0 : i32
    %c0_i32_0 = arith.constant 0 : i32
    %c0_i32_1 = arith.constant 0 : i32
    return %c0_i32, %c0_i32_0 : i32, i32
  }
  func.func @transform_17(%arg0: i32) -> (i32, i32) {
    %c0_i32 = arith.constant 0 : i32
    %c0_i32_0 = arith.constant 0 : i32
    %c0_i32_1 = arith.constant 0 : i32
    return %c0_i32, %c0_i32_0 : i32, i32
  }
  func.func @transform_18(%arg0: i32) -> (i32, i32) {
    %c0_i32 = arith.constant 0 : i32
    %c0_i32_0 = arith.constant 0 : i32
    %c0_i32_1 = arith.constant 0 : i32
    return %c0_i32, %c0_i32_0 : i32, i32
  }
}

</mosaic_0001>

<bundles_post_ra>
// kernel: td_model_forward.1
= control target key start
LH: loop header
LB: loop body
LE: loop exit
PB: predicated region body
PF: predicated region fallthrough
CT: control target
= control target key end

     0   :  { %s6590_s0 = inlined_call_operand.vmem [shape: f32[16,32], index: 0, kind: input, shape index: {}]   ;;  %s6591_s1 = inlined_call_operand.vmem [shape: f32[16,32], index: 1, kind: input, shape index: {}]   ;;  %s6592_s2 = inlined_call_operand.hbm [shape: f32[2,32,96], index: 2, kind: input, shape index: {}]   ;;  %s6593_s3 = inlined_call_operand.vmem [shape: f32[2,1,96], index: 3, kind: input, shape index: {}]   ;;  %s6594_s4 = inlined_call_operand.hbm [shape: f32[2,32,32], index: 4, kind: input, shape index: {}]   ;;  %s6595_s5 = inlined_call_operand.hbm [shape: f32[2,1,32], index: 5, kind: input, shape index: {}]   ;;  %s6596_s6 = inlined_call_operand.vmem [shape: f32[2,1,32], index: 6, kind: input, shape index: {}]   ;;  %s6597_s7 = inlined_call_operand.hbm [shape: f32[2,1,32], index: 7, kind: input, shape index: {}]   ;;  %s6598_s8 = inlined_call_operand.hbm [shape: f32[2,32,64], index: 8, kind: input, shape index: {}]   ;;  %s6599_s9 = inlined_call_operand.hbm [shape: f32[2,1,64], index: 9, kind: input, shape index: {}]   ;;  %s6600_s10 = inlined_call_operand.vmem [shape: f32[2,64,32], index: 10, kind: input, shape index: {}]   ;;  %s6601_s11 = inlined_call_operand.hbm [shape: f32[2,1,32], index: 11, kind: input, shape index: {}]   ;;  %s6602_s12 = inlined_call_operand.vmem [shape: f32[2,1,32], index: 12, kind: input, shape index: {}]   ;;  %s6603_s13 = inlined_call_operand.vmem [shape: f32[2,1,32], index: 13, kind: input, shape index: {}]   ;;  %s6604_s14 = inlined_call_operand.vmem [shape: f32[8,32,64], index: 14, kind: input, shape index: {}]   ;;  %s6605_s15 = inlined_call_operand.hbm [shape: f32[1,64], index: 15, kind: input, shape index: {}]   ;;  %s6606_s16 = inlined_call_operand.vmem [shape: f32[64,1], index: 16, kind: input, shape index: {}]   ;;  %s6607_s17 = inlined_call_operand.<no memory space> [shape: f32[1,1], index: 17, kind: input, shape index: {}]   ;;  %s6608_s18 = inlined_call_operand.vmem [shape: f32[2,1], index: 18, kind: output, shape index: {}]  }
   0x1   :  { %6616 = sst [smem:[#allocation21_spill]] %s6590_s0  ;;  %v23_v0 = vstv %s6607_s17 }
   0x2   :  { %6617 = sst [smem:[#allocation22_spill]] %s6591_s1  ;;  %24 = vst [vmem:[#allocation2] sm:$0x1] %v23_v0 }
   0x3   :  { %6618 = sst [smem:[#allocation23_spill]] %s6592_s2 }
   0x4   :  { %25 = vsyncpa [#allocation4], 0 }
   0x5   :  { %26 = vsyncpa [#allocation6], 0 }
   0x6   :  { %27 = vsyncpa [#allocation9], 0 }
   0x7   :  { %28 = vsyncpa [#allocation12], 0 }
   0x8   :  { %29 = vsyncpa [#allocation15], 0  ;;  %s5694_s29 = smov [#allocation5]   ;;  %s5508_s1 = scalar_lea.hbm %s6594_s4, 1024 }
   0x9   :  { %s53_s30 = sshll.u32 %s5694_s29, 4  ;;  %p5509_p0 = scmp.ne.s32.totalorder %s6594_s4, %s5508_s1  ;;  %s54_s30 = int_to_ptr.vmem [resolvable:$true] %s53_s30 }
   0xa   :  { %p5512_p1 = scmp.lt.u32.totalorder %s5508_s1, %s6594_s4 }
   0xc   :  { %p5514_p2 = pnand %p5512_p1, %p5509_p0 }
   0xe   :  { %5517 = shalt.err (!%p5514_p2)
}
   0xf   :  { %s5518_s17 = scalar_lea.vmem %s54_s30, 1024  ;;  %p5523_p4 = scmp.lt.s32.totalorder %s54_s30, %s54_s30 }
  0x10   :  { %p5519_p3 = scmp.ne.s32.totalorder %s54_s30, %s5518_s17  ;;  %p5524_p5 = scmp.lt.s32.totalorder %s5518_s17, %s5518_s17 }
  0x12   :  { %p5525_p6 = por %p5524_p5, %p5523_p4 }
  0x14   :  { %p5526_p7 = pnand %p5525_p6, %p5519_p3 }
  0x16   :  { %5529 = shalt.err (!%p5526_p7)
}
  0x17   :  { %s6612_s23 = smov 128   ;;  %s5696_s24 = smov 8  }
  0x18   :  { %59 = dma.hbm_to_vmem [thread:$0]  %s6594_s4, 1024, %s54_s30, [#allocation6], %s6612_s23, %s6612_s23, %s5696_s24  }
  0x19   :  { %s5697_s27 = smov [#allocation8]   ;;  %s5698_s29 = smov [#allocation11]  }
  0x1a   :  { %s79_s28 = sshll.u32 %s5697_s27, 4  ;;  %s103_s0 = sshll.u32 %s5698_s29, 4  ;;  %s80_s28 = int_to_ptr.vmem [resolvable:$true] %s79_s28  ;;  %s104_s0 = int_to_ptr.vmem [resolvable:$true] %s103_s0 }
  0x1b   :  { %s5530_s20 = scalar_lea.hbm %s6597_s7, 32 }
  0x1c   :  { %p5531_p8 = scmp.ne.s32.totalorder %s6597_s7, %s5530_s20  ;;  %p5534_p9 = scmp.lt.u32.totalorder %s5530_s20, %s6597_s7 }
  0x1e   :  { %p5536_p10 = pnand %p5534_p9, %p5531_p8 }
  0x20   :  { %5539 = shalt.err (!%p5536_p10)
}
  0x21   :  { %s5540_s4 = scalar_lea.vmem %s80_s28, 32  ;;  %p5545_p12 = scmp.lt.s32.totalorder %s80_s28, %s80_s28 }
  0x22   :  { %p5541_p11 = scmp.ne.s32.totalorder %s80_s28, %s5540_s4  ;;  %p5546_p13 = scmp.lt.s32.totalorder %s5540_s4, %s5540_s4 }
  0x24   :  { %p5547_p0 = por %p5546_p13, %p5545_p12 }
  0x26   :  { %p5548_p1 = pnand %p5547_p0, %p5541_p11 }
  0x28   :  { %5551 = shalt.err (!%p5548_p1)
}
  0x29   :  { %s5699_s30 = smov 16   ;;  %s5700_s25 = smov 1  }
  0x2a   :  { %85 = dma.hbm_to_vmem [thread:$0]  %s6597_s7, 32, %s80_s28, [#allocation9], %s5699_s30, %s5699_s30, %s5700_s25  }
  0x2b   :  { %s5552_s1 = scalar_lea.hbm %s6599_s9, 32 }
  0x2c   :  { %p5553_p2 = scmp.ne.s32.totalorder %s6599_s9, %s5552_s1  ;;  %p5556_p3 = scmp.lt.u32.totalorder %s5552_s1, %s6599_s9 }
  0x2e   :  { %p5558_p4 = pnand %p5556_p3, %p5553_p2 }
  0x30   :  { %5561 = shalt.err (!%p5558_p4)
}
  0x31   :  { %s5562_s17 = scalar_lea.vmem %s104_s0, 32  ;;  %p5567_p6 = scmp.lt.s32.totalorder %s104_s0, %s104_s0 }
  0x32   :  { %p5563_p5 = scmp.ne.s32.totalorder %s104_s0, %s5562_s17  ;;  %p5568_p7 = scmp.lt.s32.totalorder %s5562_s17, %s5562_s17 }
  0x34   :  { %p5569_p8 = por %p5568_p7, %p5567_p6 }
  0x36   :  { %p5570_p9 = pnand %p5569_p8, %p5563_p5 }
  0x38   :  { %5573 = shalt.err (!%p5570_p9)
}
  0x39   :  { %109 = dma.hbm_to_vmem [thread:$0]  %s6599_s9, 32, %s104_s0, [#allocation12], %s5699_s30, %s5699_s30, %s5700_s25  }
  0x3a   :  { %s5701_s4 = smov [#allocation3]   ;;  %s5702_s27 = smov [#allocation7]  }
  0x3b   :  { %s39_s26 = sshll.u32 %s5701_s4, 4  ;;  %s65_s29 = sshll.u32 %s5702_s27, 4  ;;  %s40_s26 = int_to_ptr.vmem [resolvable:$true] %s39_s26  ;;  %s66_s29 = int_to_ptr.vmem [resolvable:$true] %s65_s29 }
  0x3c   :  { %s6619_s20 = sld [smem:[#allocation23_spill]] }
  0x42   :  { %s5574_s21 = scalar_lea.hbm %s6619_s20, 1024 }
  0x43   :  { %p5575_p10 = scmp.ne.s32.totalorder %s6619_s20, %s5574_s21  ;;  %p5578_p11 = scmp.lt.u32.totalorder %s5574_s21, %s6619_s20 }
  0x45   :  { %p5580_p12 = pnand %p5578_p11, %p5575_p10 }
  0x47   :  { %5583 = shalt.err (!%p5580_p12)
}
  0x48   :  { %s5584_s9 = scalar_lea.vmem %s40_s26, 1024  ;;  %p5589_p0 = scmp.lt.s32.totalorder %s40_s26, %s40_s26 }
  0x49   :  { %p5585_p13 = scmp.ne.s32.totalorder %s40_s26, %s5584_s9  ;;  %p5590_p1 = scmp.lt.s32.totalorder %s5584_s9, %s5584_s9 }
  0x4b   :  { %p5591_p2 = por %p5590_p1, %p5589_p0 }
  0x4d   :  { %p5592_p3 = pnand %p5591_p2, %p5585_p13 }
  0x4f   :  { %5595 = shalt.err (!%p5592_p3)
}
  0x50   :  { %s6620_s0 = smov 128   ;;  %s5596_s27 = scalar_lea.hbm %s6595_s5, 32 }
  0x51   :  { %45 = dma.hbm_to_vmem [thread:$0]  %s6619_s20, 1024, %s40_s26, [#allocation4], %s6620_s0, %s6620_s0, %s5696_s24  }
  0x52   :  { %p5597_p4 = scmp.ne.s32.totalorder %s6595_s5, %s5596_s27  ;;  %p5600_p5 = scmp.lt.u32.totalorder %s5596_s27, %s6595_s5 }
  0x54   :  { %p5602_p6 = pnand %p5600_p5, %p5597_p4 }
  0x56   :  { %5605 = shalt.err (!%p5602_p6)
}
  0x57   :  { %s5606_s2 = scalar_lea.vmem %s66_s29, 32  ;;  %p5611_p8 = scmp.lt.s32.totalorder %s66_s29, %s66_s29 }
  0x58   :  { %p5607_p7 = scmp.ne.s32.totalorder %s66_s29, %s5606_s2  ;;  %p5612_p9 = scmp.lt.s32.totalorder %s5606_s2, %s5606_s2 }
  0x5a   :  { %p5613_p10 = por %p5612_p9, %p5611_p8 }
  0x5c   :  { %p5614_p11 = pnand %p5613_p10, %p5607_p7 }
  0x5e   :  { %5617 = shalt.err (!%p5614_p11)
}
  0x5f   :  { %71 = dma.hbm_to_vmem [thread:$0]  %s6595_s5, 32, %s66_s29, [#allocation6], %s5699_s30, %s5699_s30, %s5700_s25  }
  0x60   :  { %s5703_s17 = smov [#allocation10]   ;;  %s5704_s7 = smov [#allocation13]  }
  0x61   :  { %s91_s9 = sshll.u32 %s5703_s17, 4  ;;  %s117_s28 = sshll.u32 %s5704_s7, 4  ;;  %s92_s9 = int_to_ptr.vmem [resolvable:$true] %s91_s9  ;;  %s118_s28 = int_to_ptr.vmem [resolvable:$true] %s117_s28 }
  0x62   :  { %s5618_s27 = scalar_lea.hbm %s6598_s8, 1024 }
  0x63   :  { %p5619_p12 = scmp.ne.s32.totalorder %s6598_s8, %s5618_s27  ;;  %p5622_p13 = scmp.lt.u32.totalorder %s5618_s27, %s6598_s8 }
  0x65   :  { %p5624_p0 = pnand %p5622_p13, %p5619_p12 }
  0x67   :  { %5627 = shalt.err (!%p5624_p0)
}
  0x68   :  { %s5628_s5 = scalar_lea.vmem %s92_s9, 1024  ;;  %p5633_p2 = scmp.lt.s32.totalorder %s92_s9, %s92_s9 }
  0x69   :  { %p5629_p1 = scmp.ne.s32.totalorder %s92_s9, %s5628_s5  ;;  %p5634_p3 = scmp.lt.s32.totalorder %s5628_s5, %s5628_s5 }
  0x6b   :  { %p5635_p4 = por %p5634_p3, %p5633_p2 }
  0x6d   :  { %p5636_p5 = pnand %p5635_p4, %p5629_p1 }
  0x6f   :  { %5639 = shalt.err (!%p5636_p5)
}
  0x70   :  { %97 = dma.hbm_to_vmem [thread:$0]  %s6598_s8, 1024, %s92_s9, [#allocation9], %s6620_s0, %s6620_s0, %s5696_s24  }
  0x71   :  { %s5640_s17 = scalar_lea.hbm %s6601_s11, 32 }
  0x72   :  { %p5641_p6 = scmp.ne.s32.totalorder %s6601_s11, %s5640_s17  ;;  %p5644_p7 = scmp.lt.u32.totalorder %s5640_s17, %s6601_s11 }
  0x74   :  { %p5646_p8 = pnand %p5644_p7, %p5641_p6 }
  0x76   :  { %5649 = shalt.err (!%p5646_p8)
}
  0x77   :  { %s5650_s19 = scalar_lea.vmem %s118_s28, 32  ;;  %p5655_p10 = scmp.lt.s32.totalorder %s118_s28, %s118_s28 }
  0x78   :  { %p5651_p9 = scmp.ne.s32.totalorder %s118_s28, %s5650_s19  ;;  %p5656_p11 = scmp.lt.s32.totalorder %s5650_s19, %s5650_s19 }
  0x7a   :  { %p5657_p12 = por %p5656_p11, %p5655_p10 }
  0x7c   :  { %p5658_p13 = pnand %p5657_p12, %p5651_p9 }
  0x7e   :  { %5661 = shalt.err (!%p5658_p13)
}
  0x7f   :  { %123 = dma.hbm_to_vmem [thread:$0]  %s6601_s11, 32, %s118_s28, [#allocation12], %s5699_s30, %s5699_s30, %s5700_s25  }
  0x80   :  { %s5705_s9 = smov [#allocation14]   ;;  %s5662_s5 = scalar_lea.hbm %s6605_s15, 16 }
  0x81   :  { %s136_s1 = sshll.u32 %s5705_s9, 4  ;;  %p5663_p0 = scmp.ne.s32.totalorder %s6605_s15, %s5662_s5  ;;  %s137_s1 = int_to_ptr.vmem [resolvable:$true] %s136_s1 }
  0x82   :  { %p5666_p1 = scmp.lt.u32.totalorder %s5662_s5, %s6605_s15 }
  0x84   :  { %p5668_p2 = pnand %p5666_p1, %p5663_p0 }
  0x86   :  { %5671 = shalt.err (!%p5668_p2)
}
  0x87   :  { %s5672_s17 = scalar_lea.vmem %s137_s1, 16  ;;  %s5676_s11 = scalar_lea.vmem %s137_s1, 32 }
  0x88   :  { %p5673_p3 = scmp.ne.s32.totalorder %s137_s1, %s5672_s17  ;;  %p5677_p4 = scmp.lt.s32.totalorder %s137_s1, %s137_s1 }
  0x89   :  { %p5678_p5 = scmp.lt.s32.totalorder %s5676_s11, %s5672_s17 }
  0x8b   :  { %p5679_p6 = por %p5678_p5, %p5677_p4 }
  0x8d   :  { %p5680_p7 = pnand %p5679_p6, %p5673_p3 }
  0x8f   :  { %5683 = shalt.err (!%p5680_p7)
}
  0x90   :  { %139 = dma.hbm_to_vmem [thread:$0]  %s6605_s15, 16, %s137_s1, [#allocation15]  }
  0x91   :  { %5684 = dma.done.wait [#allocation4], 1024  }
  0x92   :  { %5685 = vsyncadd [#allocation4], 4294966272 }
  0x93   :  { %5686 = dma.done.wait [#allocation6], 1056  }
  0x94   :  { %5687 = vsyncadd [#allocation6], 4294966240 }
  0x95   :  { %5688 = dma.done.wait [#allocation9], 1056  }
  0x96   :  { %5689 = vsyncadd [#allocation9], 4294966240 }
  0x97   :  { %5690 = dma.done.wait [#allocation12], 64  }
  0x98   :  { %5691 = vsyncadd [#allocation12], 4294967232 }
  0x99   :  { %5692 = dma.done.wait [#allocation15], 16  }
  0x9a   :  { %5693 = vsyncadd [#allocation15], 4294967280  ;;  %v174_v1 = vld [vmem:[#allocation3] sm:$0xff]  ;;  %v175_v2 = vld [vmem:[#allocation3 + $0x8] sm:$0xff]  ;;  %s6621_s23 = sld [smem:[#allocation21_spill]]  ;;  %s6622_s19 = sld [smem:[#allocation22_spill]] }
  0x9b   :  { %v176_v3 = vld [vmem:[#allocation3 + $0x10] sm:$0xff]  ;;  %v5261_v4 = vpack.c.bf16 %v175_v2, %v174_v1  ;;  %v177_v5 = vld [vmem:[#allocation3 + $0x18] sm:$0xff]  ;;  %vm185_vm0 = vcmask 261120   ;;  %v5706_v13 = vmov 0.0   ;;  %vm5707_vm1 = vmmov 0   ;;  %s5708_s5 = smov 96  }
  0x9c   :  { %v5265_v8 = vpack.c.bf16 %v177_v5, %v176_v3  ;;  %4911 = vmatprep.subr.mxu0 %v5706_v13  ;;  %4913 = vmatprep.mubr.msk.f32.mxu0 %vm5707_vm1, %v5706_v13  ;;  %v4590_v14 = vld [vmem:[%s6593_s3] ss:$0 sm:$0xff]  ;;  %vm270_vm2 = vcmask 64512   ;;  %s5709_s29 = smov 64   ;;  %s5710_s2 = smov 88   ;;  %vm1623_vm3 = vcmask 195584  }
  0x9d   :  { %5262 = vmatprep.subr.bf16.mxu1 %v5261_v4  ;;  %s5711_s26 = smov 120   ;;  %s5712_s20 = smov 56   ;;  %vm1620_vm4 = vcmask 130048   ;;  %vm1874_vm5 = vcmask 523264   ;;  %vm3848_vm6 = vcmask 1041409   ;;  %vm4579_vm7 = vcmask 1024  }
  0x9e   :  { %5264 = vmatpush3.bf16.msra.mxu1 %v5261_v4  ;;  %s5713_s17 = smov 80   ;;  %s5714_s11 = smov 112  }
  0x9f   :  { %5266 = vmatprep.subr.bf16.mxu1 %v5265_v8  ;;  %s5715_s25 = smov 48   ;;  %s5716_s28 = smov 72  }
  0xa0   :  { %v168_v6 = vld [vmem:[%s6621_s23] sm:$0xff]  ;;  %v169_v10 = vld [vmem:[%s6621_s23 + $0x8] sm:$0xff]  ;;  %s5717_s7 = smov 104   ;;  %s5718_s4 = smov 40  }
  0xa1   :  { %v170_v7 = vld [vmem:[%s6622_s19] sm:$0xff]  ;;  %v171_v11 = vld [vmem:[%s6622_s19 + $0x8] sm:$0xff]  ;;  %s6614_s23 = smov 24  }
  0xa2   :  { %v5942_v9 = vadd.f32 %v170_v7, %v168_v6  ;;  %v5952_v12 = vadd.f32 %v171_v11, %v169_v10  ;;  %5268 = vmatpush3.bf16.msra.mxu1 %v5265_v8 }
  0xa3   :  { %4901 = vmatprep.subr.mxu1 %v5706_v13 }
  0xa4   :  { %4898 = vmatprep.mubr.msk.f32.mxu1 %vm185_vm0, %v5942_v9 }
  0xa5   :  { %4899 = vmatmul.mubr.msk.f32.vlgmr.msra.gmra.mrb[0].mxu1 %vm185_vm0, %v5952_v12 }
  0xa6   :  { %4903 = vmatprep.mubr.msk.f32.mxu1 %vm5707_vm1, %v5706_v13 }
 0x178   :  { %v4900_v15 = vpop.f32.mrb[0].mxu1 }
 0x179   :  { %v258_v16 = vpop.f32.mrb[1].mxu1  ;;  %v5969_v18 = vadd.f32 %v4900_v15, %v4590_v14 }
 0x17a   :  { %v5965_v17 = vadd.f32 %v4590_v14, %v258_v16 }
 0x17c   :  { %268 = vrot.lane.b32.xlu0 %v5965_v17, %s5708_s5 }
 0x180   :  { %346 = vrot.lane.b32.xlu0 %v5969_v18, %s5708_s5 }
 0x1ee   :  { %v269_v19 = vpop.permute.xlu0 %268 }
 0x1ef   :  { %4902 = vmatpush3.xpose.msk.msra.mxu1 %vm270_vm2, %v269_v19 }
 0x1f0   :  { %4906 = vmatprep.subr.mxu1 %v5706_v13 }
 0x1f2   :  { %4904 = vmatmul.mubr.msk.f32.vlgmr.msra.gmra.mrb[2].mxu1 %vm270_vm2, %v5965_v17  ;;  %v347_v20 = vpop.permute.xlu0 %346 }
 0x1f3   :  { %4907 = vmatpush3.xpose.msk.msra.mxu1 %vm270_vm2, %v347_v20  ;;  %4908 = vmatprep.mubr.msk.f32.mxu1 %vm5707_vm1, %v5706_v13 }
 0x1f4   :  { %4916 = vmatprep.subr.mxu1 %v5706_v13 }
 0x1f6   :  { %4909 = vmatmul.mubr.msk.f32.vlgmr.msra.gmra.mrb[4].mxu1 %vm270_vm2, %v5969_v18 }
 0x1f7   :  { %4918 = vmatprep.mubr.msk.f32.mxu1 %vm5707_vm1, %v5706_v13 }
 0x2c5   :  { %v341_v21 = vpop.f32.mrb[2].mxu1 }
 0x2c6   :  { %v422_v22 = vmul.f32 0.35355338, %v341_v21  ;;  %v4905_v23 = vpop.f32.mrb[3].mxu1 }
 0x2c8   :  { %v424_v24 = vsel %vm270_vm2, %v422_v22, -inf }
 0x2c9   :  { %425 = vmax.xlane.f32.xlu1 %v424_v24  ;;  %v418_v25 = vpop.f32.mrb[4].mxu1 }
 0x2ca   :  { %v423_v26 = vmul.f32 0.35355338, %v418_v25  ;;  %v4910_v27 = vpop.f32.mrb[5].mxu1 }
 0x2cc   :  { %v427_v28 = vsel %vm270_vm2, %v423_v26, -inf }
 0x2cd   :  { %428 = vmax.xlane.f32.xlu1 %v427_v28 }
 0x2de   :  { %446 = vrot.lane.b32.xlu1 %v5965_v17, %s5709_s29 }
 0x2e2   :  { %522 = vrot.lane.b32.xlu1 %v5969_v18, %s5709_s29 }
 0x2e6   :  { %600 = vrot.lane.b32.xlu1 %v5965_v17, %s5710_s2 }
 0x2ea   :  { %678 = vrot.lane.b32.xlu1 %v5969_v18, %s5710_s2 }
 0x356   :  { %v426_v29 = vpop.xlane.xlu1 %425 }
 0x357   :  { %v430_v30 = vsub.f32 %v422_v22, %v426_v29 }
 0x359   :  { %v432_v31 = vmul.f32 1.442695, %v430_v30 }
 0x35a   :  { %v429_v32 = vpop.xlane.xlu1 %428 }
 0x35b   :  { %5428 = vpow2.f32 %v432_v31  ;;  %v431_v33 = vsub.f32 %v423_v26, %v429_v32 }
 0x35d   :  { %v434_v34 = vmul.f32 1.442695, %v431_v33 }
 0x35e   :  { %v447_v35 = vpop.permute.xlu1 %446 }
 0x35f   :  { %5430 = vpow2.f32 %v434_v34  ;;  %4912 = vmatpush3.msra.mxu0 %v447_v35 }
 0x360   :  { %4921 = vmatprep.subr.mxu0 %v5706_v13 }
 0x362   :  { %v523_v36 = vpop.permute.xlu1 %522 }
 0x363   :  { %4917 = vmatpush3.msra.mxu1 %v523_v36 }
 0x364   :  { %4926 = vmatprep.subr.mxu1 %v5706_v13 }
 0x365   :  { %v5429_v37 = vpop.eup %5428 }
 0x366   :  { %v436_v38 = vsel %vm270_vm2, %v5429_v37, 0.0  ;;  %v601_v41 = vpop.permute.xlu1 %600 }
 0x367   :  { %437 = vadd.xlane.f32.xlu0 %v436_v38 }
 0x369   :  { %v5431_v39 = vpop.eup %5430 }
 0x36a   :  { %v439_v40 = vsel %vm270_vm2, %v5431_v39, 0.0  ;;  %v679_v42 = vpop.permute.xlu1 %678 }
 0x36b   :  { %440 = vadd.xlane.f32.xlu1 %v439_v40 }
 0x37c   :  { %676 = vrot.lane.b32.xlu1 %v5969_v18, %s5711_s26 }
 0x37d   :  { %598 = vrot.lane.b32.xlu0 %v5965_v17, %s5711_s26 }
 0x3f4   :  { %v438_v43 = vpop.xlane.xlu0 %437 }
 0x3f5   :  { %5432 = vrcp.f32 %v438_v43 }
 0x3f8   :  { %v441_v44 = vpop.xlane.xlu1 %440  ;;  %v599_v49 = vpop.permute.xlu0 %598 }
 0x3f9   :  { %5434 = vrcp.f32 %v441_v44 }
 0x3fc   :  { %v677_v50 = vpop.permute.xlu1 %676 }
 0x3ff   :  { %v5433_v45 = vpop.eup %5432 }
 0x400   :  { %v444_v46 = vmul.f32 %v5433_v45, %v5429_v37 }
 0x402   :  { %4914 = vmatmul.mubr.msk.f32.vlgmr.msra.gmra.mrb[0].mxu0 %vm270_vm2, %v444_v46 }
 0x403   :  { %v5435_v47 = vpop.eup %5434  ;;  %4922 = vmatpush3.xpose.msk.msra.mxu0 %vm270_vm2, %v601_v41  ;;  %4923 = vmatprep.mubr.msk.f32.mxu0 %vm5707_vm1, %v5706_v13 }
 0x404   :  { %v445_v48 = vmul.f32 %v5435_v47, %v5431_v39  ;;  %4931 = vmatprep.subr.mxu0 %v5706_v13 }
 0x406   :  { %4919 = vmatmul.mubr.msk.f32.vlgmr.msra.gmra.mrb[6].mxu1 %vm270_vm2, %v445_v48  ;;  %4924 = vmatmul.mubr.msk.f32.vlgmr.msra.gmra.mrb[2].mxu0 %vm270_vm2, %v599_v49 }
 0x407   :  { %4927 = vmatpush3.xpose.msk.msra.mxu1 %vm270_vm2, %v679_v42  ;;  %4928 = vmatprep.mubr.msk.f32.mxu1 %vm5707_vm1, %v5706_v13 }
 0x408   :  { %4936 = vmatprep.subr.mxu1 %v5706_v13  ;;  %4933 = vmatprep.mubr.msk.f32.mxu0 %vm5707_vm1, %v5706_v13 }
 0x40a   :  { %4929 = vmatmul.mubr.msk.f32.vlgmr.msra.gmra.mrb[8].mxu1 %vm270_vm2, %v677_v50 }
 0x40b   :  { %4938 = vmatprep.mubr.msk.f32.mxu1 %vm5707_vm1, %v5706_v13 }
 0x4d5   :  { %v6019_v51 = vpop.f32.mrb[0].mxu0 }
 0x4d6   :  { %v4915_v52 = vpop.f32.mrb[1].mxu0 }
 0x4d9   :  { %v6021_v53 = vpop.f32.mrb[6].mxu1  ;;  %v672_v54 = vpop.f32.mrb[2].mxu0 }
 0x4da   :  { %v754_v55 = vmul.f32 0.35355338, %v672_v54  ;;  %v4920_v56 = vpop.f32.mrb[7].mxu1  ;;  %v4925_v57 = vpop.f32.mrb[3].mxu0 }
 0x4dc   :  { %v756_v58 = vsel %vm270_vm2, %v754_v55, -inf }
 0x4dd   :  { %v750_v59 = vpop.f32.mrb[8].mxu1  ;;  %757 = vmax.xlane.f32.xlu1 %v756_v58 }
 0x4de   :  { %v755_v60 = vmul.f32 0.35355338, %v750_v59  ;;  %v4930_v61 = vpop.f32.mrb[9].mxu1 }
 0x4e0   :  { %v759_v62 = vsel %vm270_vm2, %v755_v60, -inf }
 0x4e1   :  { %760 = vmax.xlane.f32.xlu0 %v759_v62 }
 0x4ee   :  { %778 = vrot.lane.b32.xlu1 %v5965_v17, %s5712_s20 }
 0x4f2   :  { %932 = vrot.lane.b32.xlu1 %v5965_v17, %s5713_s17 }
 0x4f6   :  { %1010 = vrot.lane.b32.xlu1 %v5969_v18, %s5713_s17 }
 0x4f7   :  { %854 = vrot.lane.b32.xlu0 %v5969_v18, %s5712_s20 }
 0x4fb   :  { %930 = vrot.lane.b32.xlu0 %v5965_v17, %s5714_s11 }
 0x56a   :  { %v758_v63 = vpop.xlane.xlu1 %757 }
 0x56b   :  { %v762_v0 = vsub.f32 %v754_v55, %v758_v63 }
 0x56d   :  { %v764_v1 = vmul.f32 1.442695, %v762_v0 }
 0x56e   :  { %v779_v2 = vpop.permute.xlu1 %778  ;;  %v761_v3 = vpop.xlane.xlu0 %760 }
 0x56f   :  { %5436 = vpow2.f32 %v764_v1  ;;  %v763_v4 = vsub.f32 %v755_v60, %v761_v3  ;;  %4932 = vmatpush3.msra.mxu0 %v779_v2 }
 0x570   :  { %4941 = vmatprep.subr.mxu0 %v5706_v13 }
 0x571   :  { %v766_v5 = vmul.f32 1.442695, %v763_v4 }
 0x572   :  { %v855_v6 = vpop.permute.xlu0 %854  ;;  %v933_v14 = vpop.permute.xlu1 %932 }
 0x573   :  { %5438 = vpow2.f32 %v766_v5  ;;  %4937 = vmatpush3.msra.mxu1 %v855_v6 }
 0x574   :  { %4946 = vmatprep.subr.mxu1 %v5706_v13 }
 0x576   :  { %v1011_v15 = vpop.permute.xlu1 %1010  ;;  %v931_v24 = vpop.permute.xlu0 %930 }
 0x579   :  { %v5437_v7 = vpop.eup %5436 }
 0x57a   :  { %v768_v8 = vsel %vm270_vm2, %v5437_v7, 0.0 }
 0x57b   :  { %769 = vadd.xlane.f32.xlu1 %v768_v8 }
 0x57d   :  { %v5439_v10 = vpop.eup %5438 }
 0x57e   :  { %v771_v11 = vsel %vm270_vm2, %v5439_v10, 0.0 }
 0x57f   :  { %772 = vadd.xlane.f32.xlu1 %v771_v11 }
 0x590   :  { %1008 = vrot.lane.b32.xlu1 %v5969_v18, %s5714_s11 }
 0x608   :  { %v770_v16 = vpop.xlane.xlu1 %769 }
 0x609   :  { %5440 = vrcp.f32 %v770_v16 }
 0x60c   :  { %v773_v19 = vpop.xlane.xlu1 %772 }
 0x60d   :  { %5442 = vrcp.f32 %v773_v19 }
 0x610   :  { %v1009_v25 = vpop.permute.xlu1 %1008 }
 0x613   :  { %v5441_v20 = vpop.eup %5440 }
 0x614   :  { %v776_v21 = vmul.f32 %v5441_v20, %v5437_v7 }
 0x616   :  { %4934 = vmatmul.mubr.msk.f32.vlgmr.msra.gmra.mrb[4].mxu0 %vm270_vm2, %v776_v21 }
 0x617   :  { %v5443_v22 = vpop.eup %5442  ;;  %4942 = vmatpush3.xpose.msk.msra.mxu0 %vm270_vm2, %v933_v14  ;;  %4943 = vmatprep.mubr.msk.f32.mxu0 %vm5707_vm1, %v5706_v13 }
 0x618   :  { %v777_v23 = vmul.f32 %v5443_v22, %v5439_v10  ;;  %4951 = vmatprep.subr.mxu0 %v5706_v13 }
 0x61a   :  { %4939 = vmatmul.mubr.msk.f32.vlgmr.msra.gmra.mrb[10].mxu1 %vm270_vm2, %v777_v23  ;;  %4944 = vmatmul.mubr.msk.f32.vlgmr.msra.gmra.mrb[6].mxu0 %vm270_vm2, %v931_v24 }
 0x61b   :  { %4947 = vmatpush3.xpose.msk.msra.mxu1 %vm270_vm2, %v1011_v15  ;;  %4948 = vmatprep.mubr.msk.f32.mxu1 %vm5707_vm1, %v5706_v13 }
 0x61c   :  { %4956 = vmatprep.subr.mxu1 %v5706_v13  ;;  %4953 = vmatprep.mubr.msk.f32.mxu0 %vm5707_vm1, %v5706_v13 }
 0x61e   :  { %4949 = vmatmul.mubr.msk.f32.vlgmr.msra.gmra.mrb[12].mxu1 %vm270_vm2, %v1009_v25 }
 0x61f   :  { %4958 = vmatprep.mubr.msk.f32.mxu1 %vm5707_vm1, %v5706_v13 }
 0x6e9   :  { %v6057_v26 = vpop.f32.mrb[4].mxu0 }
 0x6ea   :  { %v4935_v27 = vpop.f32.mrb[5].mxu0 }
 0x6ed   :  { %v6059_v28 = vpop.f32.mrb[10].mxu1  ;;  %v1004_v29 = vpop.f32.mrb[6].mxu0 }
 0x6ee   :  { %v1086_v30 = vmul.f32 0.35355338, %v1004_v29  ;;  %v4940_v31 = vpop.f32.mrb[11].mxu1  ;;  %v4945_v32 = vpop.f32.mrb[7].mxu0 }
 0x6ef   :  { %v1626_v32 = vld [vmem:[#allocation5] sm:$0xff] }
 0x6f0   :  { %v1088_v33 = vsel %vm270_vm2, %v1086_v30, -inf }
 0x6f1   :  { %v1082_v34 = vpop.f32.mrb[12].mxu1  ;;  %1089 = vmax.xlane.f32.xlu0 %v1088_v33  ;;  %v1627_v33 = vld [vmem:[#allocation5 + $0x8] sm:$0xff] }
 0x6f2   :  { %v1087_v35 = vmul.f32 0.35355338, %v1082_v34  ;;  %v4950_v36 = vpop.f32.mrb[13].mxu1  ;;  %v5269_v34 = vpack.c.bf16 %v1627_v33, %v1626_v32  ;;  %v4620_v32 = vld [vmem:[%s6596_s6] ss:$0 sm:$0xff] }
 0x6f4   :  { %v1091_v37 = vsel %vm270_vm2, %v1087_v35, -inf }
 0x6f5   :  { %1092 = vmax.xlane.f32.xlu1 %v1091_v37 }
 0x706   :  { %1110 = vrot.lane.b32.xlu1 %v5965_v17, %s5715_s25 }
 0x707   :  { %1186 = vrot.lane.b32.xlu0 %v5969_v18, %s5715_s25 }
 0x70a   :  { %1264 = vrot.lane.b32.xlu1 %v5965_v17, %s5716_s28 }
 0x70e   :  { %1342 = vrot.lane.b32.xlu1 %v5969_v18, %s5716_s28 }
 0x712   :  { %1340 = vrot.lane.b32.xlu1 %v5969_v18, %s5717_s7 }
 0x77e   :  { %v1090_v38 = vpop.xlane.xlu0 %1089 }
 0x77f   :  { %v1094_v39 = vsub.f32 %v1086_v30, %v1090_v38 }
 0x781   :  { %v1096_v40 = vmul.f32 1.442695, %v1094_v39 }
 0x782   :  { %v1093_v41 = vpop.xlane.xlu1 %1092  ;;  %v1187_v42 = vpop.permute.xlu0 %1186 }
 0x783   :  { %5444 = vpow2.f32 %v1096_v40  ;;  %v1095_v43 = vsub.f32 %v1087_v35, %v1093_v41  ;;  %4957 = vmatpush3.msra.mxu1 %v1187_v42  ;;  %v1629_v35 = vld [vmem:[#allocation5 + $0x18] sm:$0xff] }
 0x784   :  { %4966 = vmatprep.subr.mxu1 %v5706_v13 }
 0x785   :  { %v1098_v44 = vmul.f32 1.442695, %v1095_v43 }
 0x786   :  { %v1111_v45 = vpop.permute.xlu1 %1110 }
 0x787   :  { %5446 = vpow2.f32 %v1098_v44  ;;  %4952 = vmatpush3.msra.mxu0 %v1111_v45 }
 0x788   :  { %4961 = vmatprep.subr.mxu0 %v5706_v13 }
 0x78a   :  { %v1265_v54 = vpop.permute.xlu1 %1264 }
 0x78d   :  { %v5445_v46 = vpop.eup %5444 }
 0x78e   :  { %v1100_v47 = vsel %vm270_vm2, %v5445_v46, 0.0  ;;  %v1343_v58 = vpop.permute.xlu1 %1342 }
 0x78f   :  { %1101 = vadd.xlane.f32.xlu0 %v1100_v47 }
 0x791   :  { %v5447_v48 = vpop.eup %5446 }
 0x792   :  { %v1103_v49 = vsel %vm270_vm2, %v5447_v48, 0.0  ;;  %v1341_v61 = vpop.permute.xlu1 %1340 }
 0x793   :  { %1104 = vadd.xlane.f32.xlu0 %v1103_v49 }
 0x7a9   :  { %1262 = vrot.lane.b32.xlu0 %v5965_v17, %s5717_s7 }
 0x81c   :  { %v1102_v50 = vpop.xlane.xlu0 %1101 }
 0x81d   :  { %5448 = vrcp.f32 %v1102_v50 }
 0x820   :  { %v1105_v52 = vpop.xlane.xlu0 %1104 }
 0x821   :  { %5450 = vrcp.f32 %v1105_v52 }
 0x824   :  { %v1263_v60 = vpop.permute.xlu0 %1262 }
 0x827   :  { %v5449_v55 = vpop.eup %5448 }
 0x828   :  { %v1108_v56 = vmul.f32 %v5449_v55, %v5445_v46 }
 0x82a   :  { %4954 = vmatmul.mubr.msk.f32.vlgmr.msra.gmra.mrb[8].mxu0 %vm270_vm2, %v1108_v56 }
 0x82b   :  { %v5451_v57 = vpop.eup %5450  ;;  %4962 = vmatpush3.xpose.msk.msra.mxu0 %vm270_vm2, %v1265_v54  ;;  %4963 = vmatprep.mubr.msk.f32.mxu0 %vm5707_vm1, %v5706_v13 }
 0x82c   :  { %v1109_v59 = vmul.f32 %v5451_v57, %v5447_v48  ;;  %4971 = vmatprep.subr.mxu0 %v5706_v13 }
 0x82e   :  { %4959 = vmatmul.mubr.msk.f32.vlgmr.msra.gmra.mrb[14].mxu1 %vm270_vm2, %v1109_v59  ;;  %4964 = vmatmul.mubr.msk.f32.vlgmr.msra.gmra.mrb[10].mxu0 %vm270_vm2, %v1263_v60 }
 0x82f   :  { %4967 = vmatpush3.xpose.msk.msra.mxu1 %vm270_vm2, %v1343_v58  ;;  %4968 = vmatprep.mubr.msk.f32.mxu1 %vm5707_vm1, %v5706_v13 }
 0x830   :  { %4976 = vmatprep.subr.mxu1 %v5706_v13  ;;  %4973 = vmatprep.mubr.msk.f32.mxu0 %vm5707_vm1, %v5706_v13 }
 0x832   :  { %4969 = vmatmul.mubr.msk.f32.vlgmr.msra.gmra.mrb[16].mxu1 %vm270_vm2, %v1341_v61 }
 0x833   :  { %4978 = vmatprep.mubr.msk.f32.mxu1 %vm5707_vm1, %v5706_v13 }
 0x8fd   :  { %v1182_v62 = vpop.f32.mrb[8].mxu0 }
 0x8fe   :  { %v4955_v63 = vpop.f32.mrb[9].mxu0 }
 0x901   :  { %v1258_v0 = vpop.f32.mrb[14].mxu1  ;;  %v1336_v1 = vpop.f32.mrb[10].mxu0 }
 0x902   :  { %v1418_v2 = vmul.f32 0.35355338, %v1336_v1  ;;  %v4960_v3 = vpop.f32.mrb[15].mxu1  ;;  %v4965_v4 = vpop.f32.mrb[11].mxu0 }
 0x904   :  { %v1420_v5 = vsel %vm270_vm2, %v1418_v2, -inf }
 0x905   :  { %v1414_v6 = vpop.f32.mrb[16].mxu1  ;;  %1421 = vmax.xlane.f32.xlu0 %v1420_v5 }
 0x906   :  { %v1419_v7 = vmul.f32 0.35355338, %v1414_v6  ;;  %v4970_v8 = vpop.f32.mrb[17].mxu1 }
 0x908   :  { %v1423_v10 = vsel %vm270_vm2, %v1419_v7, -inf }
 0x909   :  { %1424 = vmax.xlane.f32.xlu1 %v1423_v10  ;;  %v1767_v10 = vld [vmem:[#allocation10 + $0x10] sm:$0xff] }
 0x91a   :  { %1442 = vrot.lane.b32.xlu1 %v5965_v17, %s5718_s4 }
 0x91e   :  { %1596 = vrot.lane.b32.xlu1 %v6057_v26, %s5696_s24 }
 0x922   :  { %1598 = vrot.lane.b32.xlu1 %v6059_v28, %s5696_s24 }
 0x926   :  { %1606 = vrot.lane.b32.xlu1 %v1258_v0, %s5699_s30 }
 0x992   :  { %v1422_v11 = vpop.xlane.xlu0 %1421 }
 0x993   :  { %v1426_v14 = vsub.f32 %v1418_v2, %v1422_v11  ;;  %v1768_v11 = vld [vmem:[#allocation10 + $0x18] sm:$0xff] }
 0x995   :  { %v1428_v15 = vmul.f32 1.442695, %v1426_v14  ;;  %v5281_v14 = vpack.c.bf16 %v1768_v11, %v1767_v10 }
 0x996   :  { %v1425_v16 = vpop.xlane.xlu1 %1424 }
 0x997   :  { %5452 = vpow2.f32 %v1428_v15  ;;  %v1427_v19 = vsub.f32 %v1419_v7, %v1425_v16  ;;  %v1766_v7 = vld [vmem:[#allocation10 + $0x8] sm:$0xff]  ;;  %v1859_v15 = vld [vmem:[%s6600_s10] sm:$0xff] }
 0x998   :  { %v1860_v16 = vld [vmem:[%s6600_s10 + $0x8] sm:$0xff] }
 0x999   :  { %v1430_v20 = vmul.f32 1.442695, %v1427_v19  ;;  %v1861_v19 = vld [vmem:[%s6600_s10 + $0x10] sm:$0xff] }
 0x99a   :  { %v1443_v21 = vpop.permute.xlu1 %1442 }
 0x99b   :  { %5454 = vpow2.f32 %v1430_v20  ;;  %4972 = vmatpush3.msra.mxu0 %v1443_v21  ;;  %v5285_v20 = vpack.c.bf16 %v1860_v16, %v1859_v15  ;;  %v1862_v21 = vld [vmem:[%s6600_s10 + $0x18] sm:$0xff] }
 0x99c   :  { %5270 = vmatprep.subr.bf16.mxu0 %v5269_v34 }
 0x99e   :  { %v1597_v41 = vpop.permute.xlu1 %1596 }
 0x99f   :  { %v1618_v44 = vsel %vm270_vm2, %v6019_v51, %v1597_v41  ;;  %v4617_v51 = vld [vmem:[#allocation7] ss:$0 sm:$0xff]  ;;  %v1866_v41 = vld [vmem:[%s6600_s10 + $0x38] sm:$0xff] }
 0x9a1   :  { %v5453_v22 = vpop.eup %5452 }
 0x9a2   :  { %v1432_v17 = vsel %vm270_vm2, %v5453_v22, 0.0  ;;  %v1599_v42 = vpop.permute.xlu1 %1598 }
 0x9a3   :  { %1433 = vadd.xlane.f32.xlu0 %v1432_v17  ;;  %v1619_v49 = vsel %vm270_vm2, %v6021_v53, %v1599_v42  ;;  %v1863_v17 = vld [vmem:[%s6600_s10 + $0x20] sm:$0xff] }
 0x9a5   :  { %v5455_v23 = vpop.eup %5454 }
 0x9a6   :  { %v1435_v24 = vsel %vm270_vm2, %v5455_v23, 0.0  ;;  %v1607_v45 = vpop.permute.xlu1 %1606 }
 0x9a7   :  { %1436 = vadd.xlane.f32.xlu0 %v1435_v24  ;;  %v1622_v50 = vsel %vm1620_vm4, %v1619_v49, %v1607_v45 }
 0x9bd   :  { %1518 = vrot.lane.b32.xlu0 %v5969_v18, %s5718_s4  ;;  %v1628_v18 = vld [vmem:[#allocation5 + $0x10] sm:$0xff] }
 0x9be   :  { %v5273_v36 = vpack.c.bf16 %v1629_v35, %v1628_v18 }
 0x9c1   :  { %1604 = vrot.lane.b32.xlu0 %v1182_v62, %s5699_s30 }
 0xa30   :  { %v1434_v25 = vpop.xlane.xlu0 %1433 }
 0xa31   :  { %5456 = vrcp.f32 %v1434_v25 }
 0xa34   :  { %v1437_v26 = vpop.xlane.xlu0 %1436 }
 0xa35   :  { %5458 = vrcp.f32 %v1437_v26 }
 0xa38   :  { %v1519_v27 = vpop.permute.xlu0 %1518 }
 0xa39   :  { %4977 = vmatpush3.msra.mxu1 %v1519_v27 }
 0xa3b   :  { %v5457_v28 = vpop.eup %5456 }
 0xa3c   :  { %v1440_v29 = vmul.f32 %v5457_v28, %v5453_v22  ;;  %v1605_v43 = vpop.permute.xlu0 %1604  ;;  %v5289_v22 = vpack.c.bf16 %v1862_v21, %v1861_v19  ;;  %v4628_v21 = vld [vmem:[%s6602_s12] ss:$0 sm:$0xff] }
 0xa3d   :  { %v1621_v46 = vsel %vm1620_vm4, %v1618_v44, %v1605_v43  ;;  %v4622_v43 = vld [vmem:[#allocation11] ss:$0 sm:$0xff] }
 0xa3e   :  { %4974 = vmatmul.mubr.msk.f32.vlgmr.msra.gmra.mrb[12].mxu0 %vm270_vm2, %v1440_v29 }
 0xa3f   :  { %v5459_v30 = vpop.eup %5458  ;;  %5272 = vmatpush3.bf16.msra.mxu0 %v5269_v34  ;;  %v4621_v34 = vld [vmem:[#allocation8] ss:$0 sm:$0xff] }
 0xa40   :  { %v1441_v31 = vmul.f32 %v5459_v30, %v5455_v23  ;;  %5274 = vmatprep.subr.bf16.mxu0 %v5273_v36  ;;  %v1864_v23 = vld [vmem:[%s6600_s10 + $0x28] sm:$0xff] }
 0xa41   :  { %v5293_v24 = vpack.c.bf16 %v1864_v23, %v1863_v17 }
 0xa42   :  { %4979 = vmatmul.mubr.msk.f32.vlgmr.msra.gmra.mrb[18].mxu1 %vm270_vm2, %v1441_v31 }
 0xa43   :  { %5276 = vmatpush3.bf16.msra.mxu0 %v5273_v36 }
 0xa44   :  { %5286 = vmatprep.subr.bf16.mxu0 %v5285_v20 }
 0xb11   :  { %v1514_v37 = vpop.f32.mrb[12].mxu0 }
 0xb12   :  { %1612 = vrot.lane.b32.xlu0 %v1514_v37, %s6614_s23  ;;  %v4975_v38 = vpop.f32.mrb[13].mxu0 }
 0xb15   :  { %v1590_v39 = vpop.f32.mrb[18].mxu1 }
 0xb16   :  { %1614 = vrot.lane.b32.xlu1 %v1590_v39, %s6614_s23  ;;  %v4980_v40 = vpop.f32.mrb[19].mxu1 }
 0xb17   :  { %v1865_v40 = vld [vmem:[%s6600_s10 + $0x30] sm:$0xff] }
 0xb18   :  { %v5297_v42 = vpack.c.bf16 %v1866_v41, %v1865_v40 }
 0xb84   :  { %v1613_v47 = vpop.permute.xlu0 %1612 }
 0xb85   :  { %v1624_v48 = vsel %vm1623_vm3, %v1621_v46, %v1613_v47 }
 0xb86   :  { %4989 = vmatprep.mubr.msk.f32.mxu0 %vm185_vm0, %v1624_v48 }
 0xb88   :  { %v1615_v52 = vpop.permute.xlu1 %1614 }
 0xb89   :  { %v1625_v54 = vsel %vm1623_vm3, %v1622_v50, %v1615_v52  ;;  %v4625_v50 = vld [vmem:[#allocation13] ss:$0 sm:$0xff] }
 0xb8a   :  { %4990 = vmatmul.mubr.msk.f32.vlgmr.msra.gmra.mrb[14].mxu0 %vm185_vm0, %v1625_v54 }
 0xb8b   :  { %5288 = vmatpush3.bf16.msra.mxu0 %v5285_v20 }
 0xb8c   :  { %5290 = vmatprep.subr.bf16.mxu0 %v5289_v22 }
 0xb8f   :  { %5292 = vmatpush3.bf16.msra.mxu0 %v5289_v22 }
 0xb90   :  { %5294 = vmatprep.subr.bf16.mxu0 %v5293_v24 }
 0xb93   :  { %5296 = vmatpush3.bf16.msra.mxu0 %v5293_v24  ;;  %v4629_v24 = vld [vmem:[%s6603_s13] ss:$0 sm:$0xff] }
 0xb94   :  { %5298 = vmatprep.subr.bf16.mxu0 %v5297_v42 }
 0xb97   :  { %5300 = vmatpush3.bf16.msra.mxu0 %v5297_v42 }
 0xb98   :  { %5043 = vmatprep.subr.mxu0 %v5706_v13 }
 0xc5d   :  { %v4991_v55 = vpop.f32.mrb[14].mxu0 }
 0xc5e   :  { %v1715_v56 = vadd.f32 %v4991_v55, %v4617_v51  ;;  %v1709_v57 = vpop.f32.mrb[15].mxu0 }
 0xc5f   :  { %v1710_v58 = vadd.f32 %v4617_v51, %v1709_v57 }
 0xc60   :  { %v1719_v59 = vadd.f32 %v1715_v56, %v5952_v12 }
 0xc61   :  { %v1718_v60 = vadd.f32 %v1710_v58, %v5942_v9  ;;  %v1765_v9 = vld [vmem:[#allocation10] sm:$0xff] }
 0xc62   :  { %v1725_v61 = vsel %vm185_vm0, %v1719_v59, 0.0  ;;  %v5277_v8 = vpack.c.bf16 %v1766_v7, %v1765_v9  ;;  %v2005_v9 = vld [vmem:[#allocation3 + $0x30] sm:$0xff]  ;;  %v2006_v7 = vld [vmem:[#allocation3 + $0x38] sm:$0xff] }
 0xc63   :  { %1726 = vadd.xlane.f32.xlu1 %v1725_v61  ;;  %v1722_v53 = vsel %vm185_vm0, %v1718_v60, 0.0 }
 0xc64   :  { %1723 = vadd.xlane.f32.xlu0 %v1722_v53  ;;  %5278 = vmatprep.subr.bf16.mxu1 %v5277_v8 }
 0xc65   :  { %5280 = vmatpush3.bf16.msra.mxu1 %v5277_v8  ;;  %v5305_v8 = vpack.c.bf16 %v2006_v7, %v2005_v9 }
 0xc66   :  { %5282 = vmatprep.subr.bf16.mxu1 %v5281_v14 }
 0xc69   :  { %5284 = vmatpush3.bf16.msra.mxu1 %v5281_v14 }
 0xcf0   :  { %v1727_v62 = vpop.xlane.xlu1 %1726 }
 0xcf1   :  { %v1730_v63 = vmul.f32 0.03125, %v1727_v62  ;;  %v1724_v0 = vpop.xlane.xlu0 %1723 }
 0xcf2   :  { %v1729_v1 = vmul.f32 0.03125, %v1724_v0 }
 0xcf3   :  { %v1732_v2 = vsub.f32 %v1719_v59, %v1730_v63 }
 0xcf4   :  { %v1731_v3 = vsub.f32 %v1718_v60, %v1729_v1 }
 0xcf5   :  { %v1734_v6 = vmul.f32 %v1732_v2, %v1732_v2 }
 0xcf6   :  { %v1733_v4 = vmul.f32 %v1731_v3, %v1731_v3 }
 0xcf7   :  { %v1738_v12 = vsel %vm185_vm0, %v1734_v6, 0.0  ;;  %v2004_v6 = vld [vmem:[#allocation3 + $0x28] sm:$0xff] }
 0xcf8   :  { %v1735_v5 = vsel %vm185_vm0, %v1733_v4, 0.0 }
 0xcf9   :  { %1736 = vadd.xlane.f32.xlu0 %v1735_v5  ;;  %v2003_v5 = vld [vmem:[#allocation3 + $0x20] sm:$0xff] }
 0xcfd   :  { %1739 = vadd.xlane.f32.xlu0 %v1738_v12  ;;  %v5301_v12 = vpack.c.bf16 %v2004_v6, %v2003_v5 }
 0xcff   :  { %5302 = vmatprep.subr.bf16.mxu1 %v5301_v12 }
 0xd86   :  { %v1737_v25 = vpop.xlane.xlu0 %1736 }
 0xd87   :  { %v1741_v26 = vmul.f32 0.03125, %v1737_v25 }
 0xd89   :  { %v1743_v27 = vadd.f32 1e-05, %v1741_v26 }
 0xd8a   :  { %v1740_v28 = vpop.xlane.xlu0 %1739 }
 0xd8b   :  { %5460 = vrsqrt.f32 %v1743_v27  ;;  %v1742_v29 = vmul.f32 0.03125, %v1740_v28 }
 0xd8d   :  { %v1744_v30 = vadd.f32 1e-05, %v1742_v29  ;;  %v4631_v29 = vld [vmem:[%s6593_s3 + $0x1] ss:$0 sm:$0xff]  ;;  %s6623_s3 = smov 24  }
 0xd8f   :  { %5462 = vrsqrt.f32 %v1744_v30 }
 0xd95   :  { %v5461_v31 = vpop.eup %5460 }
 0xd96   :  { %v1747_v33 = vmul.f32 %v5461_v31, %v1731_v3 }
 0xd98   :  { %v1755_v18 = vmul.f32 %v4620_v32, %v1747_v33 }
 0xd99   :  { %v5463_v35 = vpop.eup %5462 }
 0xd9a   :  { %v1748_v36 = vmul.f32 %v5463_v35, %v1732_v2  ;;  %v1763_v37 = vadd.f32 %v4621_v34, %v1755_v18 }
 0xd9c   :  { %v1756_v38 = vmul.f32 %v4620_v32, %v1748_v36  ;;  %5000 = vmatprep.mubr.msk.f32.mxu1 %vm185_vm0, %v1763_v37 }
 0xd9e   :  { %v1764_v39 = vadd.f32 %v4621_v34, %v1756_v38 }
 0xda0   :  { %5001 = vmatmul.mubr.msk.f32.vlgmr.msra.gmra.mrb[20].mxu1 %vm185_vm0, %v1764_v39 }
 0xda1   :  { %5304 = vmatpush3.bf16.msra.mxu1 %v5301_v12 }
 0xda2   :  { %5306 = vmatprep.subr.bf16.mxu1 %v5305_v8 }
 0xda5   :  { %5308 = vmatpush3.bf16.msra.mxu1 %v5305_v8 }
 0xda6   :  { %5033 = vmatprep.subr.mxu1 %v5706_v13 }
 0xe73   :  { %v5002_v44 = vpop.f32.mrb[20].mxu1 }
 0xe74   :  { %v1854_v45 = vadd.f32 %v5002_v44, %v4622_v43  ;;  %v1848_v46 = vpop.f32.mrb[21].mxu1 }
 0xe75   :  { %v1849_v47 = vadd.f32 %v4622_v43, %v1848_v46 }
 0xe76   :  { %v1858_v49 = vmax.f32 %v1854_v45, 0.0 }
 0xe77   :  { %v1857_v48 = vmax.f32 %v1849_v47, 0.0 }
 0xe79   :  { %5019 = vmatprep.mubr.msk.f32.mxu0 %vm1874_vm5, %v1857_v48 }
 0xe7a   :  { %5020 = vmatmul.mubr.msk.f32.vlgmr.msra.gmra.mrb[16].mxu0 %vm1874_vm5, %v1858_v49 }
 0xe7b   :  { %5045 = vmatprep.mubr.msk.f32.mxu0 %vm5707_vm1, %v5706_v13 }
 0xf4d   :  { %v5021_v52 = vpop.f32.mrb[16].mxu0 }
 0xf4e   :  { %v1953_v54 = vadd.f32 %v5021_v52, %v4625_v50  ;;  %v1947_v51 = vpop.f32.mrb[17].mxu0 }
 0xf4f   :  { %v1948_v55 = vadd.f32 %v4625_v50, %v1947_v51 }
 0xf50   :  { %v1957_v56 = vadd.f32 %v1953_v54, %v1764_v39 }
 0xf51   :  { %v1956_v57 = vadd.f32 %v1948_v55, %v1763_v37 }
 0xf52   :  { %v1963_v58 = vsel %vm185_vm0, %v1957_v56, 0.0 }
 0xf53   :  { %1964 = vadd.xlane.f32.xlu0 %v1963_v58  ;;  %v1960_v59 = vsel %vm185_vm0, %v1956_v57, 0.0 }
 0xf54   :  { %1961 = vadd.xlane.f32.xlu1 %v1960_v59 }
 0xfe0   :  { %v1965_v60 = vpop.xlane.xlu0 %1964 }
 0xfe1   :  { %v1967_v61 = vmul.f32 0.03125, %v1965_v60  ;;  %v1962_v53 = vpop.xlane.xlu1 %1961 }
 0xfe2   :  { %v1966_v62 = vmul.f32 0.03125, %v1962_v53 }
 0xfe3   :  { %v1969_v63 = vsub.f32 %v1957_v56, %v1967_v61 }
 0xfe4   :  { %v1968_v0 = vsub.f32 %v1956_v57, %v1966_v62 }
 0xfe5   :  { %v1971_v1 = vmul.f32 %v1969_v63, %v1969_v63 }
 0xfe6   :  { %v1970_v2 = vmul.f32 %v1968_v0, %v1968_v0 }
 0xfe7   :  { %v1975_v3 = vsel %vm185_vm0, %v1971_v1, 0.0 }
 0xfe8   :  { %1976 = vadd.xlane.f32.xlu0 %v1975_v3  ;;  %v1972_v4 = vsel %vm185_vm0, %v1970_v2, 0.0 }
 0xfe9   :  { %1973 = vadd.xlane.f32.xlu1 %v1972_v4 }
0x1075   :  { %v1977_v10 = vpop.xlane.xlu0 %1976 }
0x1076   :  { %v1979_v11 = vmul.f32 0.03125, %v1977_v10  ;;  %v1974_v14 = vpop.xlane.xlu1 %1973 }
0x1077   :  { %v1978_v15 = vmul.f32 0.03125, %v1974_v14 }
0x1078   :  { %v1981_v16 = vadd.f32 1e-05, %v1979_v11 }
0x1079   :  { %v1980_v19 = vadd.f32 1e-05, %v1978_v15 }
0x107a   :  { %5464 = vrsqrt.f32 %v1981_v16 }
0x107b   :  { %5466 = vrsqrt.f32 %v1980_v19 }
0x1084   :  { %v5465_v20 = vpop.eup %5464 }
0x1085   :  { %v5467_v22 = vpop.eup %5466  ;;  %v1985_v17 = vmul.f32 %v5465_v20, %v1969_v63 }
0x1086   :  { %v1984_v23 = vmul.f32 %v5467_v22, %v1968_v0 }
0x1087   :  { %v1993_v25 = vmul.f32 %v4628_v21, %v1985_v17 }
0x1088   :  { %v1992_v26 = vmul.f32 %v4628_v21, %v1984_v23 }
0x1089   :  { %v6176_v28 = vadd.f32 %v4629_v24, %v1993_v25 }
0x108a   :  { %v6174_v27 = vadd.f32 %v4629_v24, %v1992_v26 }
0x108c   :  { %5030 = vmatprep.mubr.msk.f32.mxu1 %vm185_vm0, %v6174_v27 }
0x108d   :  { %5031 = vmatmul.mubr.msk.f32.vlgmr.msra.gmra.mrb[22].mxu1 %vm185_vm0, %v6176_v28 }
0x108e   :  { %5035 = vmatprep.mubr.msk.f32.mxu1 %vm5707_vm1, %v5706_v13 }
0x1160   :  { %v5032_v30 = vpop.f32.mrb[22].mxu1 }
0x1161   :  { %v6187_v31 = vadd.f32 %v5032_v30, %v4631_v29  ;;  %v2087_v32 = vpop.f32.mrb[23].mxu1 }
0x1162   :  { %v6189_v33 = vadd.f32 %v4631_v29, %v2087_v32 }
0x1163   :  { %2174 = vrot.lane.b32.xlu0 %v6187_v31, %s5708_s5 }
0x1164   :  { %2097 = vrot.lane.b32.xlu1 %v6189_v33, %s5708_s5 }
0x11d5   :  { %v2175_v18 = vpop.permute.xlu0 %2174 }
0x11d6   :  { %v2098_v34 = vpop.permute.xlu1 %2097 }
0x11d7   :  { %5034 = vmatpush3.xpose.msk.msra.mxu1 %vm270_vm2, %v2098_v34 }
0x11d8   :  { %5038 = vmatprep.subr.mxu1 %v5706_v13 }
0x11da   :  { %5036 = vmatmul.mubr.msk.f32.vlgmr.msra.gmra.mrb[24].mxu1 %vm270_vm2, %v6189_v33 }
0x11db   :  { %5039 = vmatpush3.xpose.msk.msra.mxu1 %vm270_vm2, %v2175_v18  ;;  %5040 = vmatprep.mubr.msk.f32.mxu1 %vm5707_vm1, %v5706_v13 }
0x11dc   :  { %5048 = vmatprep.subr.mxu1 %v5706_v13 }
0x11de   :  { %5041 = vmatmul.mubr.msk.f32.vlgmr.msra.gmra.mrb[26].mxu1 %vm270_vm2, %v6187_v31 }
0x11df   :  { %5050 = vmatprep.mubr.msk.f32.mxu1 %vm5707_vm1, %v5706_v13 }
0x12ad   :  { %v2169_v35 = vpop.f32.mrb[24].mxu1 }
0x12ae   :  { %v2250_v36 = vmul.f32 0.35355338, %v2169_v35  ;;  %v5037_v37 = vpop.f32.mrb[25].mxu1 }
0x12b0   :  { %v2252_v38 = vsel %vm270_vm2, %v2250_v36, -inf }
0x12b1   :  { %2253 = vmax.xlane.f32.xlu1 %v2252_v38  ;;  %v2246_v39 = vpop.f32.mrb[26].mxu1 }
0x12b2   :  { %v2251_v40 = vmul.f32 0.35355338, %v2246_v39  ;;  %v5042_v41 = vpop.f32.mrb[27].mxu1 }
0x12b4   :  { %v2255_v42 = vsel %vm270_vm2, %v2251_v40, -inf }
0x12b5   :  { %2256 = vmax.xlane.f32.xlu0 %v2255_v42 }
0x12c2   :  { %2274 = vrot.lane.b32.xlu1 %v6189_v33, %s5709_s29 }
0x12c6   :  { %2428 = vrot.lane.b32.xlu1 %v6189_v33, %s5710_s2 }
0x12ca   :  { %2506 = vrot.lane.b32.xlu1 %v6187_v31, %s5710_s2 }
0x12cb   :  { %2350 = vrot.lane.b32.xlu0 %v6187_v31, %s5709_s29 }
0x133e   :  { %v2254_v43 = vpop.xlane.xlu1 %2253 }
0x133f   :  { %v2258_v44 = vsub.f32 %v2250_v36, %v2254_v43 }
0x1341   :  { %v2260_v45 = vmul.f32 1.442695, %v2258_v44 }
0x1342   :  { %v2275_v46 = vpop.permute.xlu1 %2274  ;;  %v2257_v47 = vpop.xlane.xlu0 %2256 }
0x1343   :  { %5468 = vpow2.f32 %v2260_v45  ;;  %v2259_v48 = vsub.f32 %v2251_v40, %v2257_v47  ;;  %5044 = vmatpush3.msra.mxu0 %v2275_v46 }
0x1344   :  { %5053 = vmatprep.subr.mxu0 %v5706_v13 }
0x1345   :  { %v2262_v49 = vmul.f32 1.442695, %v2259_v48 }
0x1346   :  { %v2351_v50 = vpop.permute.xlu0 %2350  ;;  %v2429_v56 = vpop.permute.xlu1 %2428 }
0x1347   :  { %5470 = vpow2.f32 %v2262_v49  ;;  %5049 = vmatpush3.msra.mxu1 %v2351_v50 }
0x1348   :  { %5058 = vmatprep.subr.mxu1 %v5706_v13 }
0x134a   :  { %v2507_v57 = vpop.permute.xlu1 %2506 }
0x134d   :  { %v5469_v52 = vpop.eup %5468 }
0x134e   :  { %v2264_v54 = vsel %vm270_vm2, %v5469_v52, 0.0 }
0x134f   :  { %2265 = vadd.xlane.f32.xlu1 %v2264_v54 }
0x1351   :  { %v5471_v51 = vpop.eup %5470 }
0x1352   :  { %v2267_v55 = vsel %vm270_vm2, %v5471_v51, 0.0 }
0x1353   :  { %2268 = vadd.xlane.f32.xlu0 %v2267_v55 }
0x1360   :  { %2504 = vrot.lane.b32.xlu1 %v6187_v31, %s5711_s26 }
0x1369   :  { %2426 = vrot.lane.b32.xlu0 %v6189_v33, %s5711_s26 }
0x13dc   :  { %v2266_v58 = vpop.xlane.xlu1 %2265 }
0x13dd   :  { %5472 = vrcp.f32 %v2266_v58 }
0x13e0   :  { %v2269_v59 = vpop.xlane.xlu0 %2268  ;;  %v2505_v0 = vpop.permute.xlu1 %2504 }
0x13e1   :  { %5474 = vrcp.f32 %v2269_v59 }
0x13e4   :  { %v2427_v63 = vpop.permute.xlu0 %2426 }
0x13e7   :  { %v5473_v60 = vpop.eup %5472 }
0x13e8   :  { %v2272_v61 = vmul.f32 %v5473_v60, %v5469_v52 }
0x13ea   :  { %5046 = vmatmul.mubr.msk.f32.vlgmr.msra.gmra.mrb[18].mxu0 %vm270_vm2, %v2272_v61 }
0x13eb   :  { %v5475_v53 = vpop.eup %5474  ;;  %5054 = vmatpush3.xpose.msk.msra.mxu0 %vm270_vm2, %v2429_v56  ;;  %5055 = vmatprep.mubr.msk.f32.mxu0 %vm5707_vm1, %v5706_v13 }
0x13ec   :  { %v2273_v62 = vmul.f32 %v5475_v53, %v5471_v51  ;;  %5063 = vmatprep.subr.mxu0 %v5706_v13 }
0x13ee   :  { %5051 = vmatmul.mubr.msk.f32.vlgmr.msra.gmra.mrb[28].mxu1 %vm270_vm2, %v2273_v62  ;;  %5056 = vmatmul.mubr.msk.f32.vlgmr.msra.gmra.mrb[20].mxu0 %vm270_vm2, %v2427_v63 }
0x13ef   :  { %5059 = vmatpush3.xpose.msk.msra.mxu1 %vm270_vm2, %v2507_v57  ;;  %5060 = vmatprep.mubr.msk.f32.mxu1 %vm5707_vm1, %v5706_v13 }
0x13f0   :  { %5068 = vmatprep.subr.mxu1 %v5706_v13  ;;  %5065 = vmatprep.mubr.msk.f32.mxu0 %vm5707_vm1, %v5706_v13 }
0x13f2   :  { %5061 = vmatmul.mubr.msk.f32.vlgmr.msra.gmra.mrb[30].mxu1 %vm270_vm2, %v2505_v0 }
0x13f3   :  { %5070 = vmatprep.mubr.msk.f32.mxu1 %vm5707_vm1, %v5706_v13 }
0x14bd   :  { %v6241_v1 = vpop.f32.mrb[18].mxu0 }
0x14be   :  { %v5047_v2 = vpop.f32.mrb[19].mxu0 }
0x14c1   :  { %v6243_v3 = vpop.f32.mrb[28].mxu1  ;;  %v2500_v4 = vpop.f32.mrb[20].mxu0 }
0x14c2   :  { %v2582_v5 = vmul.f32 0.35355338, %v2500_v4  ;;  %v5052_v6 = vpop.f32.mrb[29].mxu1  ;;  %v5057_v12 = vpop.f32.mrb[21].mxu0 }
0x14c4   :  { %v2584_v9 = vsel %vm270_vm2, %v2582_v5, -inf }
0x14c5   :  { %2585 = vmax.xlane.f32.xlu0 %v2584_v9  ;;  %v2578_v7 = vpop.f32.mrb[30].mxu1 }
0x14c6   :  { %v2583_v8 = vmul.f32 0.35355338, %v2578_v7  ;;  %v5062_v10 = vpop.f32.mrb[31].mxu1 }
0x14c8   :  { %v2587_v11 = vsel %vm270_vm2, %v2583_v8, -inf }
0x14c9   :  { %2588 = vmax.xlane.f32.xlu1 %v2587_v11 }
0x14da   :  { %2606 = vrot.lane.b32.xlu1 %v6189_v33, %s5712_s20 }
0x14db   :  { %2682 = vrot.lane.b32.xlu0 %v6187_v31, %s5712_s20 }
0x14de   :  { %2760 = vrot.lane.b32.xlu1 %v6189_v33, %s5713_s17 }
0x14e2   :  { %2838 = vrot.lane.b32.xlu1 %v6187_v31, %s5713_s17 }
0x14e6   :  { %2836 = vrot.lane.b32.xlu1 %v6187_v31, %s5714_s11 }
0x1552   :  { %v2586_v14 = vpop.xlane.xlu0 %2585 }
0x1553   :  { %v2590_v15 = vsub.f32 %v2582_v5, %v2586_v14 }
0x1555   :  { %v2592_v16 = vmul.f32 1.442695, %v2590_v15 }
0x1556   :  { %v2683_v19 = vpop.permute.xlu0 %2682  ;;  %v2589_v20 = vpop.xlane.xlu1 %2588 }
0x1557   :  { %5476 = vpow2.f32 %v2592_v16  ;;  %v2591_v21 = vsub.f32 %v2583_v8, %v2589_v20  ;;  %5069 = vmatpush3.msra.mxu1 %v2683_v19 }
0x1558   :  { %5078 = vmatprep.subr.mxu1 %v5706_v13 }
0x1559   :  { %v2594_v22 = vmul.f32 1.442695, %v2591_v21 }
0x155a   :  { %v2607_v17 = vpop.permute.xlu1 %2606 }
0x155b   :  { %5478 = vpow2.f32 %v2594_v22  ;;  %5064 = vmatpush3.msra.mxu0 %v2607_v17 }
0x155c   :  { %5073 = vmatprep.subr.mxu0 %v5706_v13 }
0x155e   :  { %v2761_v32 = vpop.permute.xlu1 %2760 }
0x1561   :  { %v5477_v23 = vpop.eup %5476 }
0x1562   :  { %v2596_v24 = vsel %vm270_vm2, %v5477_v23, 0.0  ;;  %v2839_v36 = vpop.permute.xlu1 %2838 }
0x1563   :  { %2597 = vadd.xlane.f32.xlu0 %v2596_v24 }
0x1565   :  { %v5479_v25 = vpop.eup %5478 }
0x1566   :  { %v2599_v26 = vsel %vm270_vm2, %v5479_v25, 0.0  ;;  %v2837_v39 = vpop.permute.xlu1 %2836 }
0x1567   :  { %2600 = vadd.xlane.f32.xlu0 %v2599_v26 }
0x157d   :  { %2758 = vrot.lane.b32.xlu0 %v6189_v33, %s5714_s11 }
0x15f0   :  { %v2598_v29 = vpop.xlane.xlu0 %2597 }
0x15f1   :  { %5480 = vrcp.f32 %v2598_v29 }
0x15f4   :  { %v2601_v30 = vpop.xlane.xlu0 %2600 }
0x15f5   :  { %5482 = vrcp.f32 %v2601_v30 }
0x15f8   :  { %v2759_v38 = vpop.permute.xlu0 %2758 }
0x15fb   :  { %v5481_v34 = vpop.eup %5480 }
0x15fc   :  { %v2604_v18 = vmul.f32 %v5481_v34, %v5477_v23 }
0x15fe   :  { %5066 = vmatmul.mubr.msk.f32.vlgmr.msra.gmra.mrb[22].mxu0 %vm270_vm2, %v2604_v18 }
0x15ff   :  { %v5483_v35 = vpop.eup %5482  ;;  %5074 = vmatpush3.xpose.msk.msra.mxu0 %vm270_vm2, %v2761_v32  ;;  %5075 = vmatprep.mubr.msk.f32.mxu0 %vm5707_vm1, %v5706_v13 }
0x1600   :  { %v2605_v37 = vmul.f32 %v5483_v35, %v5479_v25  ;;  %5083 = vmatprep.subr.mxu0 %v5706_v13 }
0x1602   :  { %5071 = vmatmul.mubr.msk.f32.vlgmr.msra.gmra.mrb[32].mxu1 %vm270_vm2, %v2605_v37  ;;  %5076 = vmatmul.mubr.msk.f32.vlgmr.msra.gmra.mrb[24].mxu0 %vm270_vm2, %v2759_v38 }
0x1603   :  { %5079 = vmatpush3.xpose.msk.msra.mxu1 %vm270_vm2, %v2839_v36  ;;  %5080 = vmatprep.mubr.msk.f32.mxu1 %vm5707_vm1, %v5706_v13 }
0x1604   :  { %5088 = vmatprep.subr.mxu1 %v5706_v13  ;;  %5085 = vmatprep.mubr.msk.f32.mxu0 %vm5707_vm1, %v5706_v13 }
0x1606   :  { %5081 = vmatmul.mubr.msk.f32.vlgmr.msra.gmra.mrb[34].mxu1 %vm270_vm2, %v2837_v39 }
0x1607   :  { %5090 = vmatprep.mubr.msk.f32.mxu1 %vm5707_vm1, %v5706_v13 }
0x16d1   :  { %v6279_v40 = vpop.f32.mrb[22].mxu0 }
0x16d2   :  { %v5067_v41 = vpop.f32.mrb[23].mxu0 }
0x16d5   :  { %v6281_v42 = vpop.f32.mrb[32].mxu1  ;;  %v2832_v43 = vpop.f32.mrb[24].mxu0 }
0x16d6   :  { %v2914_v44 = vmul.f32 0.35355338, %v2832_v43  ;;  %v5072_v45 = vpop.f32.mrb[33].mxu1  ;;  %v5077_v46 = vpop.f32.mrb[25].mxu0 }
0x16d7   :  { %v3453_v46 = vld [vmem:[#allocation5 + $0x20] sm:$0xff] }
0x16d8   :  { %v2916_v47 = vsel %vm270_vm2, %v2914_v44, -inf }
0x16d9   :  { %2917 = vmax.xlane.f32.xlu0 %v2916_v47  ;;  %v2910_v48 = vpop.f32.mrb[34].mxu1  ;;  %v3454_v47 = vld [vmem:[#allocation5 + $0x28] sm:$0xff] }
0x16da   :  { %v2915_v49 = vmul.f32 0.35355338, %v2910_v48  ;;  %v5082_v50 = vpop.f32.mrb[35].mxu1  ;;  %v5309_v48 = vpack.c.bf16 %v3454_v47, %v3453_v46  ;;  %v4662_v46 = vld [vmem:[%s6596_s6 + $0x1] ss:$0 sm:$0xff] }
0x16dc   :  { %v2919_v52 = vsel %vm270_vm2, %v2915_v49, -inf }
0x16dd   :  { %2920 = vmax.xlane.f32.xlu1 %v2919_v52 }
0x16ee   :  { %2938 = vrot.lane.b32.xlu1 %v6189_v33, %s5715_s25 }
0x16ef   :  { %3014 = vrot.lane.b32.xlu0 %v6187_v31, %s5715_s25 }
0x16f2   :  { %3092 = vrot.lane.b32.xlu1 %v6189_v33, %s5716_s28 }
0x16f6   :  { %3170 = vrot.lane.b32.xlu1 %v6187_v31, %s5716_s28 }
0x16fa   :  { %3168 = vrot.lane.b32.xlu1 %v6187_v31, %s5717_s7 }
0x1766   :  { %v2918_v54 = vpop.xlane.xlu0 %2917 }
0x1767   :  { %v2922_v51 = vsub.f32 %v2914_v44, %v2918_v54 }
0x1769   :  { %v2924_v55 = vmul.f32 1.442695, %v2922_v51 }
0x176a   :  { %v3015_v56 = vpop.permute.xlu0 %3014  ;;  %v2921_v57 = vpop.xlane.xlu1 %2920 }
0x176b   :  { %5484 = vpow2.f32 %v2924_v55  ;;  %v2923_v58 = vsub.f32 %v2915_v49, %v2921_v57  ;;  %5089 = vmatpush3.msra.mxu1 %v3015_v56  ;;  %v3456_v49 = vld [vmem:[#allocation5 + $0x38] sm:$0xff] }
0x176c   :  { %5098 = vmatprep.subr.mxu1 %v5706_v13 }
0x176d   :  { %v2926_v59 = vmul.f32 1.442695, %v2923_v58 }
0x176e   :  { %v2939_v60 = vpop.permute.xlu1 %2938 }
0x176f   :  { %5486 = vpow2.f32 %v2926_v59  ;;  %5084 = vmatpush3.msra.mxu0 %v2939_v60 }
0x1770   :  { %5093 = vmatprep.subr.mxu0 %v5706_v13 }
0x1772   :  { %v3093_v4 = vpop.permute.xlu1 %3092 }
0x1775   :  { %v5485_v61 = vpop.eup %5484 }
0x1776   :  { %v2928_v53 = vsel %vm270_vm2, %v5485_v61, 0.0  ;;  %v3171_v9 = vpop.permute.xlu1 %3170 }
0x1777   :  { %2929 = vadd.xlane.f32.xlu0 %v2928_v53 }
0x1779   :  { %v5487_v62 = vpop.eup %5486 }
0x177a   :  { %v2931_v63 = vsel %vm270_vm2, %v5487_v62, 0.0  ;;  %v3169_v10 = vpop.permute.xlu1 %3168 }
0x177b   :  { %2932 = vadd.xlane.f32.xlu0 %v2931_v63 }
0x1791   :  { %3090 = vrot.lane.b32.xlu0 %v6189_v33, %s5717_s7 }
0x1804   :  { %v2930_v0 = vpop.xlane.xlu0 %2929 }
0x1805   :  { %5488 = vrcp.f32 %v2930_v0 }
0x1808   :  { %v2933_v2 = vpop.xlane.xlu0 %2932 }
0x1809   :  { %5490 = vrcp.f32 %v2933_v2 }
0x180c   :  { %v3091_v8 = vpop.permute.xlu0 %3090 }
0x180f   :  { %v5489_v5 = vpop.eup %5488 }
0x1810   :  { %v2936_v6 = vmul.f32 %v5489_v5, %v5485_v61  ;;  %v4658_v5 = vld [vmem:[#allocation7 + $0x1] ss:$0 sm:$0xff] }
0x1812   :  { %5086 = vmatmul.mubr.msk.f32.vlgmr.msra.gmra.mrb[26].mxu0 %vm270_vm2, %v2936_v6 }
0x1813   :  { %v5491_v12 = vpop.eup %5490  ;;  %5094 = vmatpush3.xpose.msk.msra.mxu0 %vm270_vm2, %v3093_v4  ;;  %5095 = vmatprep.mubr.msk.f32.mxu0 %vm5707_vm1, %v5706_v13 }
0x1814   :  { %v2937_v7 = vmul.f32 %v5491_v12, %v5487_v62  ;;  %5103 = vmatprep.subr.mxu0 %v5706_v13 }
0x1816   :  { %5091 = vmatmul.mubr.msk.f32.vlgmr.msra.gmra.mrb[36].mxu1 %vm270_vm2, %v2937_v7  ;;  %5096 = vmatmul.mubr.msk.f32.vlgmr.msra.gmra.mrb[28].mxu0 %vm270_vm2, %v3091_v8 }
0x1817   :  { %5099 = vmatpush3.xpose.msk.msra.mxu1 %vm270_vm2, %v3171_v9  ;;  %5100 = vmatprep.mubr.msk.f32.mxu1 %vm5707_vm1, %v5706_v13 }
0x1818   :  { %5108 = vmatprep.subr.mxu1 %v5706_v13  ;;  %5105 = vmatprep.mubr.msk.f32.mxu0 %vm5707_vm1, %v5706_v13 }
0x181a   :  { %5101 = vmatmul.mubr.msk.f32.vlgmr.msra.gmra.mrb[38].mxu1 %vm270_vm2, %v3169_v10 }
0x181b   :  { %5110 = vmatprep.mubr.msk.f32.mxu1 %vm5707_vm1, %v5706_v13 }
0x18e5   :  { %v3010_v11 = vpop.f32.mrb[26].mxu0 }
0x18e6   :  { %v5087_v14 = vpop.f32.mrb[27].mxu0 }
0x18e9   :  { %v3086_v15 = vpop.f32.mrb[36].mxu1  ;;  %v3164_v16 = vpop.f32.mrb[28].mxu0 }
0x18ea   :  { %v3246_v19 = vmul.f32 0.35355338, %v3164_v16  ;;  %v5092_v20 = vpop.f32.mrb[37].mxu1  ;;  %v5097_v21 = vpop.f32.mrb[29].mxu0 }
0x18ec   :  { %v3248_v22 = vsel %vm270_vm2, %v3246_v19, -inf }
0x18ed   :  { %3249 = vmax.xlane.f32.xlu0 %v3248_v22  ;;  %v3242_v17 = vpop.f32.mrb[38].mxu1 }
0x18ee   :  { %v3247_v23 = vmul.f32 0.35355338, %v3242_v17  ;;  %v5102_v24 = vpop.f32.mrb[39].mxu1 }
0x18f0   :  { %v3251_v25 = vsel %vm270_vm2, %v3247_v23, -inf }
0x18f1   :  { %3252 = vmax.xlane.f32.xlu1 %v3251_v25  ;;  %v3597_v25 = vld [vmem:[#allocation10 + $0x30] sm:$0xff] }
0x1902   :  { %3270 = vrot.lane.b32.xlu1 %v6189_v33, %s5718_s4 }
0x1906   :  { %3424 = vrot.lane.b32.xlu1 %v6279_v40, %s5696_s24 }
0x190a   :  { %3426 = vrot.lane.b32.xlu1 %v6281_v42, %s5696_s24 }
0x190e   :  { %3434 = vrot.lane.b32.xlu1 %v3086_v15, %s5699_s30 }
0x197a   :  { %v3250_v26 = vpop.xlane.xlu0 %3249 }
0x197b   :  { %v3254_v29 = vsub.f32 %v3246_v19, %v3250_v26  ;;  %v3598_v26 = vld [vmem:[#allocation10 + $0x38] sm:$0xff] }
0x197d   :  { %v3256_v30 = vmul.f32 1.442695, %v3254_v29  ;;  %v5321_v29 = vpack.c.bf16 %v3598_v26, %v3597_v25  ;;  %v4684_v26 = vld [vmem:[%s6604_s14 + $0x30] sm:$0xff] }
0x197e   :  { %v3253_v32 = vpop.xlane.xlu1 %3252 }
0x197f   :  { %5492 = vpow2.f32 %v3256_v30  ;;  %v3255_v34 = vsub.f32 %v3247_v23, %v3253_v32  ;;  %v3596_v23 = vld [vmem:[#allocation10 + $0x28] sm:$0xff]  ;;  %v4667_v30 = vld [vmem:[%s6600_s10 + $0x40] sm:$0xff] }
0x1980   :  { %v4668_v32 = vld [vmem:[%s6600_s10 + $0x48] sm:$0xff] }
0x1981   :  { %v3258_v18 = vmul.f32 1.442695, %v3255_v34  ;;  %v4669_v34 = vld [vmem:[%s6600_s10 + $0x50] sm:$0xff] }
0x1982   :  { %v3271_v35 = vpop.permute.xlu1 %3270 }
0x1983   :  { %5494 = vpow2.f32 %v3258_v18  ;;  %5104 = vmatpush3.msra.mxu0 %v3271_v35  ;;  %v5325_v18 = vpack.c.bf16 %v4668_v32, %v4667_v30  ;;  %v4670_v35 = vld [vmem:[%s6600_s10 + $0x58] sm:$0xff]  ;;  %v4690_v30 = vld [vmem:[%s6604_s14 + $0x50] sm:$0xff] }
0x1984   :  { %5310 = vmatprep.subr.bf16.mxu0 %v5309_v48 }
0x1986   :  { %v3425_v56 = vpop.permute.xlu1 %3424 }
0x1987   :  { %v3446_v59 = vsel %vm270_vm2, %v6241_v1, %v3425_v56  ;;  %v4674_v56 = vld [vmem:[%s6600_s10 + $0x78] sm:$0xff] }
0x1989   :  { %v5493_v36 = vpop.eup %5492 }
0x198a   :  { %v3260_v33 = vsel %vm270_vm2, %v5493_v36, 0.0  ;;  %v3427_v57 = vpop.permute.xlu1 %3426 }
0x198b   :  { %3261 = vadd.xlane.f32.xlu0 %v3260_v33  ;;  %v3447_v63 = vsel %vm270_vm2, %v6243_v3, %v3427_v57  ;;  %v4671_v33 = vld [vmem:[%s6600_s10 + $0x60] sm:$0xff] }
0x198d   :  { %v5495_v37 = vpop.eup %5494 }
0x198e   :  { %v3263_v38 = vsel %vm270_vm2, %v5495_v37, 0.0  ;;  %v3435_v60 = vpop.permute.xlu1 %3434 }
0x198f   :  { %3264 = vadd.xlane.f32.xlu0 %v3263_v38  ;;  %v3449_v0 = vsel %vm1620_vm4, %v3447_v63, %v3435_v60 }
0x19a5   :  { %3346 = vrot.lane.b32.xlu0 %v6187_v31, %s5718_s4  ;;  %v3455_v31 = vld [vmem:[#allocation5 + $0x30] sm:$0xff] }
0x19a6   :  { %v5313_v50 = vpack.c.bf16 %v3456_v49, %v3455_v31 }
0x19a9   :  { %3432 = vrot.lane.b32.xlu0 %v3010_v11, %s5699_s30 }
0x1a18   :  { %v3262_v39 = vpop.xlane.xlu0 %3261 }
0x1a19   :  { %5496 = vrcp.f32 %v3262_v39 }
0x1a1c   :  { %v3265_v40 = vpop.xlane.xlu0 %3264 }
0x1a1d   :  { %5498 = vrcp.f32 %v3265_v40 }
0x1a20   :  { %v3347_v41 = vpop.permute.xlu0 %3346 }
0x1a21   :  { %5109 = vmatpush3.msra.mxu1 %v3347_v41 }
0x1a23   :  { %v5497_v42 = vpop.eup %5496 }
0x1a24   :  { %v3268_v43 = vmul.f32 %v5497_v42, %v5493_v36  ;;  %v3433_v58 = vpop.permute.xlu0 %3432  ;;  %v5329_v36 = vpack.c.bf16 %v4670_v35, %v4669_v34  ;;  %v4691_v34 = vld [vmem:[%s6604_s14 + $0x58] sm:$0xff] }
0x1a25   :  { %v3448_v61 = vsel %vm1620_vm4, %v3446_v59, %v3433_v58  ;;  %v4664_v58 = vld [vmem:[#allocation11 + $0x1] ss:$0 sm:$0xff] }
0x1a26   :  { %5106 = vmatmul.mubr.msk.f32.vlgmr.msra.gmra.mrb[30].mxu0 %vm270_vm2, %v3268_v43 }
0x1a27   :  { %v5499_v44 = vpop.eup %5498  ;;  %5312 = vmatpush3.bf16.msra.mxu0 %v5309_v48  ;;  %v4663_v48 = vld [vmem:[#allocation8 + $0x1] ss:$0 sm:$0xff] }
0x1a28   :  { %v3269_v45 = vmul.f32 %v5499_v44, %v5495_v37  ;;  %5314 = vmatprep.subr.bf16.mxu0 %v5313_v50  ;;  %v4672_v37 = vld [vmem:[%s6600_s10 + $0x68] sm:$0xff] }
0x1a29   :  { %v5333_v38 = vpack.c.bf16 %v4672_v37, %v4671_v33 }
0x1a2a   :  { %5111 = vmatmul.mubr.msk.f32.vlgmr.msra.gmra.mrb[40].mxu1 %vm270_vm2, %v3269_v45 }
0x1a2b   :  { %5316 = vmatpush3.bf16.msra.mxu0 %v5313_v50 }
0x1a2c   :  { %5326 = vmatprep.subr.bf16.mxu0 %v5325_v18 }
0x1af9   :  { %v3342_v52 = vpop.f32.mrb[30].mxu0 }
0x1afa   :  { %3440 = vrot.lane.b32.xlu0 %v3342_v52, %s6623_s3  ;;  %v5107_v54 = vpop.f32.mrb[31].mxu0 }
0x1afd   :  { %v3418_v51 = vpop.f32.mrb[40].mxu1 }
0x1afe   :  { %3442 = vrot.lane.b32.xlu1 %v3418_v51, %s6623_s3  ;;  %v5112_v55 = vpop.f32.mrb[41].mxu1 }
0x1aff   :  { %v4673_v55 = vld [vmem:[%s6600_s10 + $0x70] sm:$0xff] }
0x1b00   :  { %v5337_v57 = vpack.c.bf16 %v4674_v56, %v4673_v55 }
0x1b6c   :  { %v3441_v53 = vpop.permute.xlu0 %3440 }
0x1b6d   :  { %v3450_v62 = vsel %vm1623_vm3, %v3448_v61, %v3441_v53 }
0x1b6e   :  { %5121 = vmatprep.mubr.msk.f32.mxu0 %vm185_vm0, %v3450_v62 }
0x1b70   :  { %v3443_v2 = vpop.permute.xlu1 %3442 }
0x1b71   :  { %v3451_v4 = vsel %vm1623_vm3, %v3449_v0, %v3443_v2  ;;  %v4675_v0 = vld [vmem:[#allocation13 + $0x1] ss:$0 sm:$0xff] }
0x1b72   :  { %5122 = vmatmul.mubr.msk.f32.vlgmr.msra.gmra.mrb[32].mxu0 %vm185_vm0, %v3451_v4 }
0x1b73   :  { %5328 = vmatpush3.bf16.msra.mxu0 %v5325_v18  ;;  %v5357_v18 = vpack.c.bf16 %v4691_v34, %v4690_v30  ;;  %v4706_v30 = vld [vmem:[%s6604_s14 + $0xb8] sm:$0xff] }
0x1b74   :  { %5330 = vmatprep.subr.bf16.mxu0 %v5329_v36 }
0x1b77   :  { %5332 = vmatpush3.bf16.msra.mxu0 %v5329_v36 }
0x1b78   :  { %5334 = vmatprep.subr.bf16.mxu0 %v5333_v38 }
0x1b7b   :  { %5336 = vmatpush3.bf16.msra.mxu0 %v5333_v38 }
0x1b7c   :  { %5338 = vmatprep.subr.bf16.mxu0 %v5337_v57 }
0x1b7f   :  { %5340 = vmatpush3.bf16.msra.mxu0 %v5337_v57 }
0x1c45   :  { %v5123_v1 = vpop.f32.mrb[32].mxu0 }
0x1c46   :  { %v3543_v6 = vadd.f32 %v5123_v1, %v4658_v5  ;;  %v3537_v12 = vpop.f32.mrb[33].mxu0 }
0x1c47   :  { %v3538_v9 = vadd.f32 %v4658_v5, %v3537_v12 }
0x1c48   :  { %v3547_v7 = vadd.f32 %v3543_v6, %v6176_v28 }
0x1c49   :  { %v3546_v8 = vadd.f32 %v3538_v9, %v6174_v27  ;;  %v3595_v27 = vld [vmem:[#allocation10 + $0x20] sm:$0xff] }
0x1c4a   :  { %v3555_v10 = vsel %vm185_vm0, %v3547_v7, 0.0  ;;  %v5317_v24 = vpack.c.bf16 %v3596_v23, %v3595_v27  ;;  %v4689_v23 = vld [vmem:[%s6604_s14 + $0x48] sm:$0xff] }
0x1c4b   :  { %3556 = vadd.xlane.f32.xlu1 %v3555_v10  ;;  %v3552_v3 = vsel %vm185_vm0, %v3546_v8, 0.0 }
0x1c4c   :  { %3553 = vadd.xlane.f32.xlu0 %v3552_v3  ;;  %5318 = vmatprep.subr.bf16.mxu1 %v5317_v24 }
0x1c4d   :  { %5320 = vmatpush3.bf16.msra.mxu1 %v5317_v24  ;;  %v5720_v24 = vmov 0.0|0.0  }
0x1c4e   :  { %5322 = vmatprep.subr.bf16.mxu1 %v5321_v29  ;;  %5353 = vmatprep.subr.bf16.mxu0 %v5720_v24 }
0x1c51   :  { %5324 = vmatpush3.bf16.msra.mxu1 %v5321_v29  ;;  %v4685_v29 = vld [vmem:[%s6604_s14 + $0x38] sm:$0xff] }
0x1c52   :  { %5341 = vmatprep.subr.bf16.mxu1 %v5720_v24  ;;  %v5345_v32 = vpack.c.bf16 %v4685_v29, %v4684_v26  ;;  %v4705_v29 = vld [vmem:[%s6604_s14 + $0xb0] sm:$0xff] }
0x1cd8   :  { %v3557_v11 = vpop.xlane.xlu1 %3556 }
0x1cd9   :  { %v3559_v14 = vmul.f32 0.03125, %v3557_v11  ;;  %v3554_v15 = vpop.xlane.xlu0 %3553 }
0x1cda   :  { %v3558_v16 = vmul.f32 0.03125, %v3554_v15 }
0x1cdb   :  { %v3561_v19 = vsub.f32 %v3547_v7, %v3559_v14 }
0x1cdc   :  { %v3560_v20 = vsub.f32 %v3546_v8, %v3558_v16 }
0x1cdd   :  { %v3563_v17 = vmul.f32 %v3561_v19, %v3561_v19 }
0x1cde   :  { %v3562_v21 = vmul.f32 %v3560_v20, %v3560_v20 }
0x1cdf   :  { %v3567_v28 = vsel %vm185_vm0, %v3563_v17, 0.0  ;;  %v4683_v17 = vld [vmem:[%s6604_s14 + $0x28] sm:$0xff] }
0x1ce0   :  { %v3564_v22 = vsel %vm185_vm0, %v3562_v21, 0.0 }
0x1ce1   :  { %3565 = vadd.xlane.f32.xlu0 %v3564_v22  ;;  %v4682_v22 = vld [vmem:[%s6604_s14 + $0x20] sm:$0xff] }
0x1ce2   :  { %v5342_v27 = vpack.c.bf16 %v4683_v17, %v4682_v22  ;;  %v4703_v22 = vld [vmem:[%s6604_s14 + $0xa0] sm:$0xff]  ;;  %v4704_v17 = vld [vmem:[%s6604_s14 + $0xa8] sm:$0xff] }
0x1ce3   :  { %v5372_v26 = vpack.c.bf16 %v4704_v17, %v4703_v22 }
0x1ce5   :  { %3568 = vadd.xlane.f32.xlu0 %v3567_v28  ;;  %v4688_v28 = vld [vmem:[%s6604_s14 + $0x40] sm:$0xff] }
0x1ce6   :  { %v5354_v25 = vpack.c.bf16 %v4689_v23, %v4688_v28 }
0x1d6e   :  { %v3566_v39 = vpop.xlane.xlu0 %3565 }
0x1d6f   :  { %v3570_v40 = vmul.f32 0.03125, %v3566_v39 }
0x1d71   :  { %v3572_v41 = vadd.f32 1e-05, %v3570_v40 }
0x1d72   :  { %v3569_v42 = vpop.xlane.xlu0 %3568 }
0x1d73   :  { %5500 = vrsqrt.f32 %v3572_v41  ;;  %v3571_v43 = vmul.f32 0.03125, %v3569_v42  ;;  %v4680_v41 = vld [vmem:[%s6602_s12 + $0x1] ss:$0 sm:$0xff] }
0x1d75   :  { %v3573_v44 = vadd.f32 1e-05, %v3571_v43 }
0x1d77   :  { %5502 = vrsqrt.f32 %v3573_v44  ;;  %v4681_v44 = vld [vmem:[%s6603_s13 + $0x1] ss:$0 sm:$0xff] }
0x1d7d   :  { %v5501_v45 = vpop.eup %5500 }
0x1d7e   :  { %v3576_v47 = vmul.f32 %v5501_v45, %v3560_v20 }
0x1d80   :  { %v3584_v31 = vmul.f32 %v4662_v46, %v3576_v47 }
0x1d81   :  { %v5503_v49 = vpop.eup %5502 }
0x1d82   :  { %v3577_v50 = vmul.f32 %v5503_v49, %v3561_v19  ;;  %v3592_v52 = vadd.f32 %v4663_v48, %v3584_v31  ;;  %v3837_v49 = vld [vmem:[%s6604_s14 + $0x8] sm:$0xff] }
0x1d84   :  { %v3585_v54 = vmul.f32 %v4662_v46, %v3577_v50  ;;  %5132 = vmatprep.mubr.msk.f32.mxu1 %vm185_vm0, %v3592_v52  ;;  %v4698_v50 = vld [vmem:[%s6604_s14 + $0x80] sm:$0xff] }
0x1d86   :  { %v3593_v51 = vadd.f32 %v4663_v48, %v3585_v54  ;;  %v3836_v48 = vld [vmem:[%s6604_s14] sm:$0xff] }
0x1d87   :  { %v5348_v56 = vpack.c.bf16 %v3837_v49, %v3836_v48  ;;  %v4493_v48 = vld [vmem:[%s6606_s16 + $0x10] sm:$0xff] }
0x1d88   :  { %5133 = vmatmul.mubr.msk.f32.vlgmr.msra.gmra.mrb[42].mxu1 %vm185_vm0, %v3593_v51 }
0x1d89   :  { %5162 = vmatprep.mubr.msk.f32.mxu1 %vm5707_vm1, %v5706_v13  ;;  %5343 = vmatpush3.bf16.msra.mxu1 %v5342_v27 }
0x1d8a   :  { %5344 = vmatprep.subr.bf16.mxu1 %v5720_v24 }
0x1d8d   :  { %5346 = vmatpush3.bf16.msra.mxu1 %v5345_v32 }
0x1d8e   :  { %5347 = vmatprep.subr.bf16.mxu1 %v5720_v24 }
0x1e5b   :  { %v5134_v59 = vpop.f32.mrb[42].mxu1 }
0x1e5c   :  { %v3685_v60 = vadd.f32 %v5134_v59, %v4664_v58  ;;  %v3679_v61 = vpop.f32.mrb[43].mxu1  ;;  %v3838_v59 = vld [vmem:[%s6604_s14 + $0x10] sm:$0xff] }
0x1e5d   :  { %v3680_v53 = vadd.f32 %v4664_v58, %v3679_v61  ;;  %v4700_v61 = vld [vmem:[%s6604_s14 + $0x90] sm:$0xff] }
0x1e5e   :  { %v3689_v63 = vmax.f32 %v3685_v60, 0.0  ;;  %v3839_v60 = vld [vmem:[%s6604_s14 + $0x18] sm:$0xff] }
0x1e5f   :  { %v3688_v62 = vmax.f32 %v3680_v53, 0.0  ;;  %v4701_v53 = vld [vmem:[%s6604_s14 + $0x98] sm:$0xff] }
0x1e61   :  { %5151 = vmatprep.mubr.msk.f32.mxu0 %vm1874_vm5, %v3688_v62 }
0x1e62   :  { %5152 = vmatmul.mubr.msk.f32.vlgmr.msra.gmra.mrb[34].mxu0 %vm1874_vm5, %v3689_v63 }
0x1e63   :  { %5184 = vmatprep.mubr.msk.f32.mxu0 %vm5707_vm1, %v5706_v13  ;;  %5355 = vmatpush3.bf16.msra.mxu0 %v5354_v25 }
0x1e64   :  { %5356 = vmatprep.subr.bf16.mxu0 %v5720_v24 }
0x1e67   :  { %5358 = vmatpush3.bf16.msra.mxu0 %v5357_v18  ;;  %v5375_v18 = vpack.c.bf16 %v4706_v30, %v4705_v29 }
0x1e68   :  { %5365 = vmatprep.subr.bf16.mxu0 %v5720_v24 }
0x1f35   :  { %v5153_v2 = vpop.f32.mrb[34].mxu0 }
0x1f36   :  { %v3785_v4 = vadd.f32 %v5153_v2, %v4675_v0  ;;  %v3779_v5 = vpop.f32.mrb[35].mxu0  ;;  %v5369_v2 = vpack.c.bf16 %v4701_v53, %v4700_v61 }
0x1f37   :  { %v3780_v1 = vadd.f32 %v4675_v0, %v3779_v5  ;;  %v5351_v0 = vpack.c.bf16 %v3839_v60, %v3838_v59  ;;  %v4694_v5 = vld [vmem:[%s6604_s14 + $0x68] sm:$0xff] }
0x1f38   :  { %v3789_v6 = vadd.f32 %v3785_v4, %v3593_v51  ;;  %v4693_v4 = vld [vmem:[%s6604_s14 + $0x60] sm:$0xff] }
0x1f39   :  { %v3788_v12 = vadd.f32 %v3780_v1, %v3592_v52  ;;  %v4699_v52 = vld [vmem:[%s6604_s14 + $0x88] sm:$0xff]  ;;  %v4708_v1 = vld [vmem:[%s6604_s14 + $0xc0] sm:$0xff] }
0x1f3a   :  { %v3797_v9 = vsel %vm185_vm0, %v3789_v6, 0.0  ;;  %v5366_v58 = vpack.c.bf16 %v4699_v52, %v4698_v50  ;;  %v4495_v50 = vld [vmem:[%s6606_s16 + $0x20] sm:$0xff]  ;;  %v4496_v52 = vld [vmem:[%s6606_s16 + $0x28] sm:$0xff] }
0x1f3b   :  { %3798 = vadd.xlane.f32.xlu0 %v3797_v9  ;;  %v3794_v7 = vsel %vm185_vm0, %v3788_v12, 0.0 }
0x1f3c   :  { %3795 = vadd.xlane.f32.xlu1 %v3794_v7 }
0x1fc8   :  { %v3799_v8 = vpop.xlane.xlu0 %3798 }
0x1fc9   :  { %v3801_v10 = vmul.f32 0.03125, %v3799_v8  ;;  %v3796_v3 = vpop.xlane.xlu1 %3795  ;;  %v5360_v8 = vpack.c.bf16 %v4694_v5, %v4693_v4 }
0x1fca   :  { %v3800_v11 = vmul.f32 0.03125, %v3796_v3  ;;  %v4695_v3 = vld [vmem:[%s6604_s14 + $0x70] sm:$0xff] }
0x1fcb   :  { %v3803_v14 = vsub.f32 %v3789_v6, %v3801_v10  ;;  %v4709_v6 = vld [vmem:[%s6604_s14 + $0xc8] sm:$0xff] }
0x1fcc   :  { %v3802_v15 = vsub.f32 %v3788_v12, %v3800_v11  ;;  %v5378_v10 = vpack.c.bf16 %v4709_v6, %v4708_v1  ;;  %v4696_v11 = vld [vmem:[%s6604_s14 + $0x78] sm:$0xff] }
0x1fcd   :  { %v3805_v16 = vmul.f32 %v3803_v14, %v3803_v14 }
0x1fce   :  { %v3804_v19 = vmul.f32 %v3802_v15, %v3802_v15 }
0x1fcf   :  { %v3809_v20 = vsel %vm185_vm0, %v3805_v16, 0.0 }
0x1fd0   :  { %3810 = vadd.xlane.f32.xlu0 %v3809_v20  ;;  %v3806_v21 = vsel %vm185_vm0, %v3804_v19, 0.0  ;;  %v5363_v20 = vpack.c.bf16 %v4696_v11, %v4695_v3  ;;  %v4718_v11 = vld [vmem:[#allocation14] ss:$0 sm:$0xff] }
0x1fd1   :  { %3807 = vadd.xlane.f32.xlu1 %v3806_v21 }
0x205d   :  { %v3811_v35 = vpop.xlane.xlu0 %3810 }
0x205e   :  { %v3813_v36 = vmul.f32 0.03125, %v3811_v35  ;;  %v3808_v33 = vpop.xlane.xlu1 %3807  ;;  %v4713_v35 = vld [vmem:[%s6604_s14 + $0xe0] sm:$0xff] }
0x205f   :  { %v3812_v37 = vmul.f32 0.03125, %v3808_v33 }
0x2060   :  { %v3815_v38 = vadd.f32 1e-05, %v3813_v36  ;;  %v4714_v36 = vld [vmem:[%s6604_s14 + $0xe8] sm:$0xff] }
0x2061   :  { %v3814_v39 = vadd.f32 1e-05, %v3812_v37 }
0x2062   :  { %5504 = vrsqrt.f32 %v3815_v38  ;;  %v5384_v38 = vpack.c.bf16 %v4714_v36, %v4713_v35 }
0x2063   :  { %5506 = vrsqrt.f32 %v3814_v39  ;;  %v4715_v39 = vld [vmem:[%s6604_s14 + $0xf0] sm:$0xff] }
0x206c   :  { %v5505_v40 = vpop.eup %5504 }
0x206d   :  { %v5507_v42 = vpop.eup %5506  ;;  %v3819_v43 = vmul.f32 %v5505_v40, %v3803_v14  ;;  %v4710_v14 = vld [vmem:[%s6604_s14 + $0xd0] sm:$0xff]  ;;  %v4716_v40 = vld [vmem:[%s6604_s14 + $0xf8] sm:$0xff] }
0x206e   :  { %v3818_v45 = vmul.f32 %v5507_v42, %v3802_v15  ;;  %v4711_v15 = vld [vmem:[%s6604_s14 + $0xd8] sm:$0xff]  ;;  %v5387_v42 = vpack.c.bf16 %v4716_v40, %v4715_v39 }
0x206f   :  { %v3827_v46 = vmul.f32 %v4680_v41, %v3819_v43  ;;  %v5381_v21 = vpack.c.bf16 %v4711_v15, %v4710_v14 }
0x2070   :  { %v3826_v47 = vmul.f32 %v4680_v41, %v3818_v45 }
0x2071   :  { %v6429_v31 = vadd.f32 %v4681_v44, %v3827_v46  ;;  %v4491_v46 = vld [vmem:[%s6606_s16] sm:$0xff] }
0x2072   :  { %v6440_v54 = vadd.f32 %v4681_v44, %v3826_v47  ;;  %v4492_v47 = vld [vmem:[%s6606_s16 + $0x8] sm:$0xff] }
0x2073   :  { %v4002_v51 = vrot.slane %v6429_v31, 1  ;;  %v3922_v12 = vrot.slane %v6429_v31, 7  ;;  %v4164_v7 = vrot.slane %v6429_v31, 3  ;;  %v4083_v27 = vrot.slane %v6429_v31, 2 }
0x2074   :  { %v3847_v55 = vrot.slane %v6440_v54, 1  ;;  %v4001_v57 = vrot.slane %v6440_v54, 2  ;;  %v4163_v9 = vrot.slane %v6440_v54, 4  ;;  %v4082_v28 = vrot.slane %v6440_v54, 3 }
0x2075   :  { %v3923_v16 = vsel %vm3848_vm6, %v3922_v12, %v6440_v54  ;;  %v4325_v23 = vrot.slane %v6440_v54, 6  ;;  %v4326_v25 = vrot.slane %v6429_v31, 5  ;;  %v4244_v33 = vrot.slane %v6440_v54, 5 }
0x2076   :  { %v3849_v62 = vsel %vm3848_vm6, %v6429_v31, %v3847_v55  ;;  %v4003_v63 = vsel %vm3848_vm6, %v4002_v51, %v4001_v57  ;;  %v4165_v19 = vsel %vm3848_vm6, %v4164_v7, %v4163_v9  ;;  %v4084_v32 = vsel %vm3848_vm6, %v4083_v27, %v4082_v28  ;;  %v4497_v51 = vld [vmem:[%s6606_s16 + $0x30] sm:$0xff]  ;;  %v4498_v55 = vld [vmem:[%s6606_s16 + $0x38] sm:$0xff] }
0x2077   :  { %5163 = vmatmul.mubr.msk.f32.vlgmr.msra.gmra.mrb[44].mxu1 %vm185_vm0, %v3849_v62  ;;  %5185 = vmatmul.mubr.msk.f32.vlgmr.msra.gmra.mrb[36].mxu0 %vm185_vm0, %v4003_v63  ;;  %v4327_v34 = vsel %vm3848_vm6, %v4326_v25, %v4325_v23  ;;  %v4245_v37 = vrot.slane %v6429_v31, 4  ;;  %v4406_v43 = vrot.slane %v6440_v54, 7  ;;  %v4407_v44 = vrot.slane %v6429_v31, 6  ;;  %v4494_v31 = vld [vmem:[%s6606_s16 + $0x18] sm:$0xff] }
0x2078   :  { %5349 = vmatpush3.bf16.msra.mxu1 %v5348_v56  ;;  %5367 = vmatpush3.bf16.msra.mxu0 %v5366_v58  ;;  %v5393_v49 = vpack.c.bf16 %v4494_v31, %v4493_v48  ;;  %v5396_v54 = vpack.c.bf16 %v4496_v52, %v4495_v50  ;;  %v5399_v56 = vpack.c.bf16 %v4498_v55, %v4497_v51 }
0x2079   :  { %5350 = vmatprep.subr.bf16.mxu1 %v5720_v24  ;;  %5368 = vmatprep.subr.bf16.mxu0 %v5720_v24  ;;  %v4246_v41 = vsel %vm3848_vm6, %v4245_v37, %v4244_v33  ;;  %v4408_v45 = vsel %vm3848_vm6, %v4407_v44, %v4406_v43 }
0x207a   :  { %5173 = vmatprep.mubr.msk.f32.mxu1 %vm5707_vm1, %v5706_v13  ;;  %5206 = vmatprep.mubr.msk.f32.mxu0 %vm5707_vm1, %v5706_v13 }
0x207c   :  { %5352 = vmatpush3.bf16.msra.mxu1 %v5351_v0  ;;  %5370 = vmatpush3.bf16.msra.mxu0 %v5369_v2 }
0x207d   :  { %5359 = vmatprep.subr.bf16.mxu1 %v5720_v24  ;;  %5377 = vmatprep.subr.bf16.mxu0 %v5720_v24 }
0x207f   :  { %5174 = vmatmul.mubr.msk.f32.vlgmr.msra.gmra.mrb[46].mxu1 %vm185_vm0, %v3923_v16  ;;  %5207 = vmatmul.mubr.msk.f32.vlgmr.msra.gmra.mrb[38].mxu0 %vm185_vm0, %v4165_v19 }
0x2080   :  { %5361 = vmatpush3.bf16.msra.mxu1 %v5360_v8  ;;  %5379 = vmatpush3.bf16.msra.mxu0 %v5378_v10 }
0x2081   :  { %5362 = vmatprep.subr.bf16.mxu1 %v5720_v24  ;;  %5380 = vmatprep.subr.bf16.mxu0 %v5720_v24 }
0x2082   :  { %5195 = vmatprep.mubr.msk.f32.mxu1 %vm5707_vm1, %v5706_v13  ;;  %5228 = vmatprep.mubr.msk.f32.mxu0 %vm5707_vm1, %v5706_v13 }
0x2084   :  { %5364 = vmatpush3.bf16.msra.mxu1 %v5363_v20  ;;  %5382 = vmatpush3.bf16.msra.mxu0 %v5381_v21  ;;  %v4719_v20 = vld [vmem:[#allocation2] ss:$0 sm:$0xff] }
0x2085   :  { %5371 = vmatprep.subr.bf16.mxu1 %v5720_v24  ;;  %5389 = vmatprep.subr.bf16.mxu0 %v5720_v24 }
0x2087   :  { %5196 = vmatmul.mubr.msk.f32.vlgmr.msra.gmra.mrb[48].mxu1 %vm185_vm0, %v4084_v32  ;;  %5229 = vmatmul.mubr.msk.f32.vlgmr.msra.gmra.mrb[40].mxu0 %vm185_vm0, %v4327_v34 }
0x2088   :  { %5373 = vmatpush3.bf16.msra.mxu1 %v5372_v26  ;;  %5217 = vmatprep.mubr.msk.f32.mxu1 %vm5707_vm1, %v5706_v13 }
0x2089   :  { %5374 = vmatprep.subr.bf16.mxu1 %v5720_v24  ;;  %5258 = vmatprep.mubr.msk.f32.mxu0 %vm5707_vm1, %v5706_v13 }
0x208c   :  { %5376 = vmatpush3.bf16.msra.mxu1 %v5375_v18 }
0x208d   :  { %5383 = vmatprep.subr.bf16.mxu1 %v5720_v24 }
0x208f   :  { %5218 = vmatmul.mubr.msk.f32.vlgmr.msra.gmra.mrb[50].mxu1 %vm185_vm0, %v4246_v41 }
0x2090   :  { %5385 = vmatpush3.bf16.msra.mxu1 %v5384_v38  ;;  %5239 = vmatprep.mubr.msk.f32.mxu1 %vm5707_vm1, %v5706_v13  ;;  %v5390_v13 = vpack.c.bf16 %v4492_v47, %v4491_v46 }
0x2091   :  { %5386 = vmatprep.subr.bf16.mxu1 %v5720_v24 }
0x2092   :  { %5391 = vmatpush3.bf16.msra.mxu0 %v5390_v13 }
0x2093   :  { %5392 = vmatprep.subr.bf16.mxu0 %v5720_v24 }
0x2094   :  { %5388 = vmatpush3.bf16.msra.mxu1 %v5387_v42 }
0x2096   :  { %5394 = vmatpush3.bf16.msra.mxu0 %v5393_v49 }
0x2097   :  { %5240 = vmatmul.mubr.msk.f32.vlgmr.msra.gmra.mrb[52].mxu1 %vm185_vm0, %v4408_v45  ;;  %5395 = vmatprep.subr.bf16.mxu0 %v5720_v24 }
0x209a   :  { %5397 = vmatpush3.bf16.msra.mxu0 %v5396_v54 }
0x209b   :  { %5398 = vmatprep.subr.bf16.mxu0 %v5720_v24 }
0x209e   :  { %5400 = vmatpush3.bf16.msra.mxu0 %v5399_v56 }
0x214a   :  { %v3918_v57 = vpop.f32.mrb[44].mxu1  ;;  %v4072_v58 = vpop.f32.mrb[36].mxu0 }
0x214b   :  { %v5164_v59 = vpop.f32.mrb[45].mxu1  ;;  %v5186_v60 = vpop.f32.mrb[37].mxu0 }
0x2152   :  { %v3992_v61 = vpop.f32.mrb[46].mxu1  ;;  %v4234_v53 = vpop.f32.mrb[38].mxu0 }
0x2153   :  { %v3993_v62 = vadd.f32 %v3992_v61, %v3918_v57  ;;  %v5175_v63 = vpop.f32.mrb[47].mxu1  ;;  %v5208_v0 = vpop.f32.mrb[39].mxu0 }
0x2155   :  { %v4076_v24 = vadd.f32 %v4072_v58, %v3993_v62 }
0x215a   :  { %v4153_v2 = vpop.f32.mrb[48].mxu1  ;;  %v4396_v4 = vpop.f32.mrb[40].mxu0 }
0x215b   :  { %v4157_v5 = vadd.f32 %v4153_v2, %v4076_v24  ;;  %v5197_v1 = vpop.f32.mrb[49].mxu1  ;;  %v5230_v6 = vpop.f32.mrb[41].mxu0 }
0x215d   :  { %v4238_v12 = vadd.f32 %v4234_v53, %v4157_v5 }
0x2162   :  { %v4315_v9 = vpop.f32.mrb[50].mxu1 }
0x2163   :  { %v4319_v7 = vadd.f32 %v4315_v9, %v4238_v12  ;;  %v5219_v8 = vpop.f32.mrb[51].mxu1 }
0x2165   :  { %v4400_v10 = vadd.f32 %v4396_v4, %v4319_v7 }
0x216a   :  { %v4477_v3 = vpop.f32.mrb[52].mxu1 }
0x216b   :  { %v4481_v14 = vadd.f32 %v4477_v3, %v4400_v10  ;;  %v5241_v15 = vpop.f32.mrb[53].mxu1 }
0x216d   :  { %v4489_v16 = vadd.f32 %v4718_v11, %v4481_v14 }
0x216f   :  { %v4490_v19 = vmax.f32 %v4489_v16, 0.0 }
0x2171   :  { %5259 = vmatmul.mubr.msk.f32.vlgmr.msra.gmra.mrb[42].mxu0 %vm1874_vm5, %v4490_v19 }
0x2244   :  { %v4575_v21 = vpop.f32.mrb[42].mxu0 }
0x2245   :  { %v4576_v22 = vadd.f32 %v4719_v20, %v4575_v21  ;;  %v5260_v17 = vpop.f32.mrb[43].mxu0 }
0x2247   :  { %4580 = vst.msk [vmem:[%s6608_s18] sm:$0x3] %vm4579_vm7, %v4576_v22 }
0x2248   :  { %4585 = vsyncpa [#allocation4], 1 }
0x2249   :  { %4586 = vsyncpa [#allocation6], 1 }
0x224a   :  { %4587 = vsyncpa [#allocation9], 1 }
0x224b   :  { %4588 = vsyncpa [#allocation12], 1 }
0x224c   :  { %4589 = vsyncpa [#allocation15], 1 }

</bundles_post_ra>
